<compile_context>
chip_gen: v7x
topology: tpu7x:2x2x1
jax: 0.10.0
libtpu: 0.0.40
codegen_flags: <defaults>
</compile_context>

<pallas_src>
import numpy as np
import jax
import jax.numpy as jnp
from jax.experimental import pallas as pl
from jax.experimental.pallas import tpu as pltpu

# bf16 operands (patches / weights / intermediate activations); accumulation
# and the bias+pool+ReLU epilogue stay f32.  Set to jnp.float32 to recover
# exact PyTorch-f32 forward semantics.
MXU_DTYPE = jnp.bfloat16

_COMPILER_PARAMS = pltpu.CompilerParams(
    dimension_semantics=("parallel",),      # M axis is fully parallel
    vmem_limit_bytes=48 * 1024 * 1024,      # explicit; < v7x's 64 MiB physical
)


def _round_up(x, m):
    return ((x + m - 1) // m) * m


def _choose_tile(m, max_t):
    """Row-tile: multiple of 16 (bf16 sublane pack), >=2 grid steps when m is
    large enough (v7x megacore), exact divisors of m preferred, capped."""
    if m <= 16:
        return _round_up(max(m, 8), 8)
    cap = max(16, min(max_t, _round_up((m + 1) // 2, 16)))
    t = cap - (cap % 16)
    while t * 2 > cap:                      # prefer a divisor near the cap
        if m % t == 0:
            return t
        t -= 16
    return cap


# ----------------------------- Pallas kernels -----------------------------

def conv_pool_kernel(p_ref, w_ref, b_ref, o_ref):
    """Fused conv (Toeplitz matmul) + 2x2 max-pool + bias + ReLU.

    p_ref: (2, TM, K)  row-tap patches; leading axis = conv-output-row parity.
    w_ref: (K, 2*NH)   Toeplitz weights; lane = col_parity*NH + pooled_col*C + co.
    b_ref: (1, NH)     f32 bias replicated over the pooled lane layout.
    o_ref: (TM, NH)    pooled activations, NH = 256 (lane dense, unmasked vst).
    """
    nh = o_ref.shape[-1]
    w = w_ref[...]
    z0 = jnp.dot(p_ref[0], w, preferred_element_type=jnp.float32)
    z1 = jnp.dot(p_ref[1], w, preferred_element_type=jnp.float32)
    z = jnp.maximum(z0, z1)                     # 2x2 pool over row pairs
    z = jnp.maximum(z[:, :nh], z[:, nh:])       # 2x2 pool over column pairs
    # pool-before-(bias+ReLU) == reference order (bias const / window, ReLU monotone)
    o_ref[...] = jnp.maximum(z + b_ref[...], 0.0).astype(o_ref.dtype)


def linear_kernel(x_ref, w_ref, b_ref, o_ref):
    """o = x @ w + b  (N padded to 128 lanes -> unmasked stores)."""
    o_ref[...] = (
        jnp.dot(x_ref[...], w_ref[...], preferred_element_type=jnp.float32)
        + b_ref[...]
    )


# ----------------------------- wrappers ------------------------------------

def conv_pool(patches, w_t, bias_lanes, *, max_tm=512, out_dtype=MXU_DTYPE):
    """patches: (2, M, K) (leading dim = conv-output-row parity) -> (M, NH)."""
    _, m, k = patches.shape
    nh = bias_lanes.shape[-1]
    tm = _choose_tile(m, max_tm)
    m_pad = _round_up(m, tm)
    n_blocks = m_pad // tm
    if m_pad != m:
        patches = jnp.pad(patches, ((0, 0), (0, m_pad - m), (0, 0)))
    out = pl.pallas_call(
        conv_pool_kernel,
        out_shape=jax.ShapeDtypeStruct((m_pad, nh), out_dtype),
        grid=(n_blocks,),
        in_specs=[
            pl.BlockSpec((2, tm, k), lambda i: (0, i, 0)),   # streamed patches
            pl.BlockSpec((k, 2 * nh), lambda i: (0, 0)),     # resident weights
            pl.BlockSpec((1, nh), lambda i: (0, 0)),         # resident f32 bias
        ],
        out_specs=pl.BlockSpec((tm, nh), lambda i: (i, 0)),
        compiler_params=_COMPILER_PARAMS,
    )(patches, w_t, bias_lanes)
    return out[:m] if m_pad != m else out


def linear(x, w_mat, bias, *, max_tb=512):
    """x: (M, K); w_mat: (K, 128); bias: (1, 128) -> (M, 128) f32."""
    m, k = x.shape
    n = w_mat.shape[1]
    tb = _choose_tile(m, max_tb)
    m_pad = _round_up(m, tb)
    if m_pad != m:
        x = jnp.pad(x, ((0, m_pad - m), (0, 0)))
    out = pl.pallas_call(
        linear_kernel,
        out_shape=jax.ShapeDtypeStruct((m_pad, n), jnp.float32),
        grid=(m_pad // tb,),
        in_specs=[
            pl.BlockSpec((tb, k), lambda i: (i, 0)),
            pl.BlockSpec((k, n), lambda i: (0, 0)),
            pl.BlockSpec((1, n), lambda i: (0, 0)),
        ],
        out_specs=pl.BlockSpec((tb, n), lambda i: (i, 0)),
        compiler_params=_COMPILER_PARAMS,
    )(x, w_mat, bias)
    return out[:m] if m_pad != m else out


# --------------------- patch construction (XLA glue) -----------------------

def _row_tap_patches(x_pad, h_out):
    """Expand only the 5 kernel-ROW taps (column taps live in the weights).

    x_pad: (B, Hp, ...) row-padded input (already in MXU_DTYPE).
    Returns (2, B*h_out, 5*prod(...)): leading dim = output-row parity a, row
    index = b*h_out + r (conv output row i = 2r + a), lane = (row_tap, ...).
    """
    b = x_pad.shape[0]
    tail = int(np.prod(x_pad.shape[2:]))
    halves = []
    for a in range(2):
        taps = [x_pad[:, a + di: a + di + 2 * h_out - 1: 2] for di in range(5)]
        stacked = jnp.stack(taps, axis=2)               # (B, h_out, 5, ...)
        halves.append(stacked.reshape(b * h_out, 5 * tail))
    return jnp.stack(halves, axis=0)                    # (2, B*h_out, 5*tail)


# ---------------------- weight tables (built once at init) ------------------

def _col_toeplitz_selector(n_src, n_src_valid, n_out, n_out_pad, *, left_pad, k=5):
    """S[dj, w, p, c] = 1 iff valid source column w == 2*c + p + dj - left_pad.

    Source columns >= n_src_valid (dead lane-pad columns) and taps falling
    outside [0, n_src_valid) (horizontal conv padding) get exactly-zero weight,
    so neither pad lanes nor out-of-range taps can leak into the conv.
    """
    s = np.zeros((k, n_src, 2, n_out_pad), np.float32)
    for dj in range(k):
        for p in range(2):
            for c in range(n_out):
                w = 2 * c + p + dj - left_pad
                if 0 <= w < n_src_valid:
                    s[dj, w, p, c] = 1.0
    return jnp.asarray(s)


def build_conv1_tables(w1, b1):
    """w1: (16,1,5,5) OIHW; b1: (16,) -> (160, 512) bf16 Toeplitz + (1, 256) f32."""
    s = _col_toeplitz_selector(32, 32, 14, 16, left_pad=0)    # x is width-padded
    wt = jnp.einsum("jwpc,oij->iwpco", s, w1[:, 0])           # (5, 32, 2, 16, 16)
    wt = wt.reshape(5 * 32, 2 * 16 * 16).astype(MXU_DTYPE)    # K=160, N=512
    bias = jnp.concatenate([jnp.tile(b1, 14), jnp.zeros((32,), jnp.float32)])
    return wt, bias.reshape(1, 256)


def build_conv2_tables(w2, b2):
    """w2: (32,16,5,5) OIHW; b2: (32,) -> (1280, 512) bf16 Toeplitz + (1, 256) f32.

    Horizontal padding AND y1's two dead lane-columns are folded into the
    selector, so y1 feeds conv2 in its native (.., 16, 16) layout with only
    row padding: K = 5*16*16 = 1280 (128-aligned).
    """
    s = _col_toeplitz_selector(16, 14, 7, 8, left_pad=2)      # (dj, w, p, c)
    wt = jnp.einsum("jwpc,oxij->iwxpco", s, w2)               # (5, 16, 16, 2, 8, 32)
    wt = wt.reshape(5 * 16 * 16, 2 * 8 * 32).astype(MXU_DTYPE)   # K=1280, N=512
    bias = jnp.concatenate([jnp.tile(b2, 7), jnp.zeros((32,), jnp.float32)])
    return wt, bias.reshape(1, 256)


def build_linear_tables(w_out, b_out):
    """Permute w_out rows at init so no NCHW transpose is needed before it."""
    w = w_out.reshape(10, 32, 7, 7)                        # (k, co, r, c)
    w = jnp.transpose(w, (2, 3, 1, 0))                     # (r, c, co, k)
    w = jnp.pad(w, ((0, 0), (0, 1), (0, 0), (0, 118)))     # c 7->8, k 10->128
    w = w.reshape(7 * 8 * 32, 128).astype(MXU_DTYPE)       # rows match y2 layout
    b = jnp.pad(b_out, (0, 118)).reshape(1, 128)
    return w, b


def init_params(key):
    """PyTorch-style uniform(-1/sqrt(fan_in), +) init; returns kernel tables + raw."""
    ks = jax.random.split(key, 6)

    def u(k, shape, fan_in):
        bound = 1.0 / np.sqrt(fan_in)
        return jax.random.uniform(k, shape, jnp.float32, -bound, bound)

    w1 = u(ks[0], (16, 1, 5, 5), 25)
    b1 = u(ks[1], (16,), 25)
    w2 = u(ks[2], (32, 16, 5, 5), 400)
    b2 = u(ks[3], (32,), 400)
    w_out = u(ks[4], (10, 32 * 7 * 7), 32 * 7 * 7)
    b_out = u(ks[5], (10,), 32 * 7 * 7)

    w1_t, b1_l = build_conv1_tables(w1, b1)
    w2_t, b2_l = build_conv2_tables(w2, b2)
    w_lin, b_lin = build_linear_tables(w_out, b_out)
    tables = dict(w1_t=w1_t, b1_l=b1_l, w2_t=w2_t, b2_l=b2_l,
                  w_lin=w_lin, b_lin=b_lin)
    raw = dict(w1=w1, b1=b1, w2=w2, b2=b2, w_out=w_out, b_out=b_out)
    return tables, raw


# ------------------------------ forward ------------------------------------

def cnn_forward(x_nchw, params):
    b = x_nchw.shape[0]
    # Cast EARLY so the im2col patch stream is already bf16 (half the HBM bytes).
    x = x_nchw.reshape(b, 28, 28).astype(MXU_DTYPE)         # Cin = 1
    xp = jnp.pad(x, ((0, 0), (2, 2), (2, 2)))               # (B, 32, 32)

    # conv1 + ReLU + maxpool(2): -> y1 (B*14, 256) bf16, lane = col*16 + channel
    p1 = _row_tap_patches(xp, 14)                           # (2, B*14, 160)
    y1 = conv_pool(p1, params["w1_t"], params["b1_l"], max_tm=512)

    # conv2 + ReLU + maxpool(2): dead lane-columns & horizontal padding live in
    # w2_t's Toeplitz selector, so no width slice / re-pad — row pad only.
    y1 = y1.reshape(b, 14, 16, 16)                          # native layout, bf16
    y1p = jnp.pad(y1, ((0, 0), (2, 2), (0, 0), (0, 0)))     # (B, 18, 16, 16)
    p2 = _row_tap_patches(y1p, 7)                           # (2, B*7, 1280)
    y2 = conv_pool(p2, params["w2_t"], params["b2_l"], max_tm=512)

    # Flatten is a free row-major reinterpretation; w_lin rows were permuted at
    # init to match this layout, so no NCHW transpose is needed.
    feat = y2.reshape(b, 7 * 256)
    out = linear(feat, params["w_lin"], params["b_lin"])
    return out[:, :10]


# --------------------------- pure-JAX reference -----------------------------

def cnn_reference(x_nchw, raw):
    x = x_nchw.astype(jnp.float32)

    def conv(x, w, bias):
        y = jax.lax.conv_general_dilated(
            x, w, window_strides=(1, 1), padding=((2, 2), (2, 2)),
            dimension_numbers=("NCHW", "OIHW", "NCHW"),
            precision=jax.lax.Precision.HIGHEST)
        return jax.nn.relu(y + bias[None, :, None, None])

    def pool(x):
        return jax.lax.reduce_window(x, -jnp.inf, jax.lax.max,
                                     (1, 1, 2, 2), (1, 1, 2, 2), "VALID")

    y = pool(conv(x, raw["w1"], raw["b1"]))
    y = pool(conv(y, raw["w2"], raw["b2"]))
    feat = y.reshape(x.shape[0], -1)
    return jnp.dot(feat, raw["w_out"].T,
                   precision=jax.lax.Precision.HIGHEST) + raw["b_out"]


# ------------------------------- main ---------------------------------------

if __name__ == "__main__":
    key = jax.random.PRNGKey(0)
    k_param, k_x = jax.random.split(key)

    params, raw = init_params(k_param)
    # MNIST-style input; 28x28 is required by the 32*7*7 Linear layer.
    x = jax.random.normal(k_x, (2, 1, 28, 28), jnp.float32)

    out = jax.block_until_ready(jax.jit(cnn_forward)(x, params))
    ref = jax.block_until_ready(jax.jit(cnn_reference)(x, raw))

    assert out.shape == (2, 10) and out.dtype == jnp.float32
    max_err = float(jnp.max(jnp.abs(out - ref)))
    # bf16 operands / f32 accumulation typically land ~1e-3 abs for this net.
    assert bool(jnp.allclose(out, ref, atol=2e-2, rtol=2e-2)), (
        f"Pallas forward does not match reference (max |err| = {max_err})")
    print("KERNEL_OK")
</pallas_src>

<mosaic_0001>
module attributes {stable_mosaic.version = 11 : i64} {
  func.func @conv_pool_kernel(%arg0: i32, %arg1: memref<2x16x160xbf16, #tpu.memory_space<vmem>>, %arg2: memref<160x512xbf16, #tpu.memory_space<vmem>>, %arg3: memref<1x256xf32, #tpu.memory_space<vmem>>, %arg4: memref<16x256xbf16, #tpu.memory_space<vmem>>) attributes {dimension_semantics = [#tpu.dimension_semantics<parallel>], iteration_bounds = array<i64: 2>, scalar_prefetch = 0 : i64, scratch_operands = 0 : i64, tpu.core_type = #tpu.core_type<tc>, window_params = [{transform_indices = @transform_0, window_bounds = array<i64: 2, 16, 160>}, {pipeline_mode = #tpu.pipeline_mode<synchronous>, transform_indices = @transform_1, window_bounds = array<i64: 160, 512>}, {pipeline_mode = #tpu.pipeline_mode<synchronous>, transform_indices = @transform_2, window_bounds = array<i64: 1, 256>}, {transform_indices = @transform_3, window_bounds = array<i64: 16, 256>}]} {
    %c0 = arith.constant 0 : index
    %c0_0 = arith.constant 0 : index
    %0 = vector.load %arg2[%c0, %c0_0] : memref<160x512xbf16, #tpu.memory_space<vmem>>, vector<160x512xbf16>
    %c0_1 = arith.constant 0 : index
    %c0_2 = arith.constant 0 : index
    %c0_3 = arith.constant 0 : index
    %1 = vector.load %arg1[%c0_1, %c0_2, %c0_3] : memref<2x16x160xbf16, #tpu.memory_space<vmem>>, vector<1x16x160xbf16>
    %2 = vector.shape_cast %1 : vector<1x16x160xbf16> to vector<16x160xbf16>
    %cst = arith.constant dense<0.000000e+00> : vector<16x512xf32>
    %3 = tpu.matmul %2, %0, %cst {dimension_numbers = #tpu.dot_dimension_numbers<[1], [0], [0], [1], [0, 0, 1, 1], [], []>} : vector<16x160xbf16>, vector<160x512xbf16>, vector<16x512xf32> -> vector<16x512xf32>
    %c1 = arith.constant 1 : index
    %c0_4 = arith.constant 0 : index
    %c0_5 = arith.constant 0 : index
    %4 = vector.load %arg1[%c1, %c0_4, %c0_5] : memref<2x16x160xbf16, #tpu.memory_space<vmem>>, vector<1x16x160xbf16>
    %5 = vector.shape_cast %4 : vector<1x16x160xbf16> to vector<16x160xbf16>
    %cst_6 = arith.constant dense<0.000000e+00> : vector<16x512xf32>
    %6 = tpu.matmul %5, %0, %cst_6 {dimension_numbers = #tpu.dot_dimension_numbers<[1], [0], [0], [1], [0, 0, 1, 1], [], []>} : vector<16x160xbf16>, vector<160x512xbf16>, vector<16x512xf32> -> vector<16x512xf32>
    %7 = arith.maximumf %3, %6 : vector<16x512xf32>
    %8 = vector.extract_strided_slice %7 {offsets = [0, 0], sizes = [16, 256], strides = [1, 1]} : vector<16x512xf32> to vector<16x256xf32>
    %9 = vector.extract_strided_slice %7 {offsets = [0, 256], sizes = [16, 256], strides = [1, 1]} : vector<16x512xf32> to vector<16x256xf32>
    %10 = arith.maximumf %8, %9 : vector<16x256xf32>
    %c0_7 = arith.constant 0 : index
    %c0_8 = arith.constant 0 : index
    %11 = vector.load %arg3[%c0_7, %c0_8] : memref<1x256xf32, #tpu.memory_space<vmem>>, vector<1x256xf32>
    %12 = vector.broadcast %11 : vector<1x256xf32> to vector<16x256xf32>
    %13 = arith.addf %10, %12 : vector<16x256xf32>
    %cst_9 = arith.constant 0.000000e+00 : f32
    %14 = vector.broadcast %cst_9 : f32 to vector<16x256xf32>
    %15 = arith.maximumf %13, %14 : vector<16x256xf32>
    %16 = arith.truncf %15 : vector<16x256xf32> to vector<16x256xbf16>
    %c0_10 = arith.constant 0 : index
    %c0_11 = arith.constant 0 : index
    %17 = vector.load %arg4[%c0_10, %c0_11] : memref<16x256xbf16, #tpu.memory_space<vmem>>, vector<16x256xbf16>
    tpu.vector_store %arg4[%c0_10, %c0_11], %16 {strides = array<i32>} : memref<16x256xbf16, #tpu.memory_space<vmem>>, vector<16x256xbf16>,
    return
  }
  func.func @transform_0(%arg0: i32) -> (i32, i32, i32) {
    %c0_i32 = arith.constant 0 : i32
    %c0_i32_0 = arith.constant 0 : i32
    %c0_i32_1 = arith.constant 0 : i32
    return %c0_i32, %arg0, %c0_i32_0 : i32, i32, i32
  }
  func.func @transform_1(%arg0: i32) -> (i32, i32) {
    %c0_i32 = arith.constant 0 : i32
    %c0_i32_0 = arith.constant 0 : i32
    %c0_i32_1 = arith.constant 0 : i32
    return %c0_i32, %c0_i32_0 : i32, i32
  }
  func.func @transform_2(%arg0: i32) -> (i32, i32) {
    %c0_i32 = arith.constant 0 : i32
    %c0_i32_0 = arith.constant 0 : i32
    %c0_i32_1 = arith.constant 0 : i32
    return %c0_i32, %c0_i32_0 : i32, i32
  }
  func.func @transform_3(%arg0: i32) -> (i32, i32) {
    %c0_i32 = arith.constant 0 : i32
    %c0_i32_0 = arith.constant 0 : i32
    return %arg0, %c0_i32 : i32, i32
  }
}

module attributes {stable_mosaic.version = 11 : i64} {
  func.func @conv_pool_kernel(%arg0: i32, %arg1: memref<2x16x1280xbf16, #tpu.memory_space<vmem>>, %arg2: memref<1280x512xbf16, #tpu.memory_space<vmem>>, %arg3: memref<1x256xf32, #tpu.memory_space<vmem>>, %arg4: memref<16x256xbf16, #tpu.memory_space<vmem>>) attributes {dimension_semantics = [#tpu.dimension_semantics<parallel>], iteration_bounds = array<i64: 1>, scalar_prefetch = 0 : i64, scratch_operands = 0 : i64, tpu.core_type = #tpu.core_type<tc>, window_params = [{transform_indices = @transform_0, window_bounds = array<i64: 2, 16, 1280>}, {pipeline_mode = #tpu.pipeline_mode<synchronous>, transform_indices = @transform_1, window_bounds = array<i64: 1280, 512>}, {pipeline_mode = #tpu.pipeline_mode<synchronous>, transform_indices = @transform_2, window_bounds = array<i64: 1, 256>}, {transform_indices = @transform_3, window_bounds = array<i64: 16, 256>}]} {
    %c0 = arith.constant 0 : index
    %c0_0 = arith.constant 0 : index
    %0 = vector.load %arg2[%c0, %c0_0] : memref<1280x512xbf16, #tpu.memory_space<vmem>>, vector<1280x512xbf16>
    %c0_1 = arith.constant 0 : index
    %c0_2 = arith.constant 0 : index
    %c0_3 = arith.constant 0 : index
    %1 = vector.load %arg1[%c0_1, %c0_2, %c0_3] : memref<2x16x1280xbf16, #tpu.memory_space<vmem>>, vector<1x16x1280xbf16>
    %2 = vector.shape_cast %1 : vector<1x16x1280xbf16> to vector<16x1280xbf16>
    %cst = arith.constant dense<0.000000e+00> : vector<16x512xf32>
    %3 = tpu.matmul %2, %0, %cst {dimension_numbers = #tpu.dot_dimension_numbers<[1], [0], [0], [1], [0, 0, 1, 1], [], []>} : vector<16x1280xbf16>, vector<1280x512xbf16>, vector<16x512xf32> -> vector<16x512xf32>
    %c1 = arith.constant 1 : index
    %c0_4 = arith.constant 0 : index
    %c0_5 = arith.constant 0 : index
    %4 = vector.load %arg1[%c1, %c0_4, %c0_5] : memref<2x16x1280xbf16, #tpu.memory_space<vmem>>, vector<1x16x1280xbf16>
    %5 = vector.shape_cast %4 : vector<1x16x1280xbf16> to vector<16x1280xbf16>
    %cst_6 = arith.constant dense<0.000000e+00> : vector<16x512xf32>
    %6 = tpu.matmul %5, %0, %cst_6 {dimension_numbers = #tpu.dot_dimension_numbers<[1], [0], [0], [1], [0, 0, 1, 1], [], []>} : vector<16x1280xbf16>, vector<1280x512xbf16>, vector<16x512xf32> -> vector<16x512xf32>
    %7 = arith.maximumf %3, %6 : vector<16x512xf32>
    %8 = vector.extract_strided_slice %7 {offsets = [0, 0], sizes = [16, 256], strides = [1, 1]} : vector<16x512xf32> to vector<16x256xf32>
    %9 = vector.extract_strided_slice %7 {offsets = [0, 256], sizes = [16, 256], strides = [1, 1]} : vector<16x512xf32> to vector<16x256xf32>
    %10 = arith.maximumf %8, %9 : vector<16x256xf32>
    %c0_7 = arith.constant 0 : index
    %c0_8 = arith.constant 0 : index
    %11 = vector.load %arg3[%c0_7, %c0_8] : memref<1x256xf32, #tpu.memory_space<vmem>>, vector<1x256xf32>
    %12 = vector.broadcast %11 : vector<1x256xf32> to vector<16x256xf32>
    %13 = arith.addf %10, %12 : vector<16x256xf32>
    %cst_9 = arith.constant 0.000000e+00 : f32
    %14 = vector.broadcast %cst_9 : f32 to vector<16x256xf32>
    %15 = arith.maximumf %13, %14 : vector<16x256xf32>
    %16 = arith.truncf %15 : vector<16x256xf32> to vector<16x256xbf16>
    %c0_10 = arith.constant 0 : index
    %c0_11 = arith.constant 0 : index
    %17 = vector.load %arg4[%c0_10, %c0_11] : memref<16x256xbf16, #tpu.memory_space<vmem>>, vector<16x256xbf16>
    tpu.vector_store %arg4[%c0_10, %c0_11], %16 {strides = array<i32>} : memref<16x256xbf16, #tpu.memory_space<vmem>>, vector<16x256xbf16>,
    return
  }
  func.func @transform_0(%arg0: i32) -> (i32, i32, i32) {
    %c0_i32 = arith.constant 0 : i32
    %c0_i32_0 = arith.constant 0 : i32
    %c0_i32_1 = arith.constant 0 : i32
    return %c0_i32, %arg0, %c0_i32_0 : i32, i32, i32
  }
  func.func @transform_1(%arg0: i32) -> (i32, i32) {
    %c0_i32 = arith.constant 0 : i32
    %c0_i32_0 = arith.constant 0 : i32
    %c0_i32_1 = arith.constant 0 : i32
    return %c0_i32, %c0_i32_0 : i32, i32
  }
  func.func @transform_2(%arg0: i32) -> (i32, i32) {
    %c0_i32 = arith.constant 0 : i32
    %c0_i32_0 = arith.constant 0 : i32
    %c0_i32_1 = arith.constant 0 : i32
    return %c0_i32, %c0_i32_0 : i32, i32
  }
  func.func @transform_3(%arg0: i32) -> (i32, i32) {
    %c0_i32 = arith.constant 0 : i32
    %c0_i32_0 = arith.constant 0 : i32
    return %arg0, %c0_i32 : i32, i32
  }
}

module attributes {stable_mosaic.version = 11 : i64} {
  func.func @linear_kernel(%arg0: i32, %arg1: memref<8x1792xbf16, #tpu.memory_space<vmem>>, %arg2: memref<1792x128xbf16, #tpu.memory_space<vmem>>, %arg3: memref<1x128xf32, #tpu.memory_space<vmem>>, %arg4: memref<8x128xf32, #tpu.memory_space<vmem>>) attributes {dimension_semantics = [#tpu.dimension_semantics<parallel>], iteration_bounds = array<i64: 1>, scalar_prefetch = 0 : i64, scratch_operands = 0 : i64, tpu.core_type = #tpu.core_type<tc>, window_params = [{transform_indices = @transform_0, window_bounds = array<i64: 8, 1792>}, {pipeline_mode = #tpu.pipeline_mode<synchronous>, transform_indices = @transform_1, window_bounds = array<i64: 1792, 128>}, {pipeline_mode = #tpu.pipeline_mode<synchronous>, transform_indices = @transform_2, window_bounds = array<i64: 1, 128>}, {transform_indices = @transform_3, window_bounds = array<i64: 8, 128>}]} {
    %c0 = arith.constant 0 : index
    %c0_0 = arith.constant 0 : index
    %0 = vector.load %arg1[%c0, %c0_0] : memref<8x1792xbf16, #tpu.memory_space<vmem>>, vector<8x1792xbf16>
    %c0_1 = arith.constant 0 : index
    %c0_2 = arith.constant 0 : index
    %1 = vector.load %arg2[%c0_1, %c0_2] : memref<1792x128xbf16, #tpu.memory_space<vmem>>, vector<1792x128xbf16>
    %cst = arith.constant dense<0.000000e+00> : vector<8x128xf32>
    %2 = tpu.matmul %0, %1, %cst {dimension_numbers = #tpu.dot_dimension_numbers<[1], [0], [0], [1], [0, 0, 1, 1], [], []>} : vector<8x1792xbf16>, vector<1792x128xbf16>, vector<8x128xf32> -> vector<8x128xf32>
    %c0_3 = arith.constant 0 : index
    %c0_4 = arith.constant 0 : index
    %3 = vector.load %arg3[%c0_3, %c0_4] : memref<1x128xf32, #tpu.memory_space<vmem>>, vector<1x128xf32>
    %4 = vector.broadcast %3 : vector<1x128xf32> to vector<8x128xf32>
    %5 = arith.addf %2, %4 : vector<8x128xf32>
    %c0_5 = arith.constant 0 : index
    %c0_6 = arith.constant 0 : index
    %6 = vector.load %arg4[%c0_5, %c0_6] : memref<8x128xf32, #tpu.memory_space<vmem>>, vector<8x128xf32>
    tpu.vector_store %arg4[%c0_5, %c0_6], %5 {strides = array<i32>} : memref<8x128xf32, #tpu.memory_space<vmem>>, vector<8x128xf32>,
    return
  }
  func.func @transform_0(%arg0: i32) -> (i32, i32) {
    %c0_i32 = arith.constant 0 : i32
    %c0_i32_0 = arith.constant 0 : i32
    return %arg0, %c0_i32 : i32, i32
  }
  func.func @transform_1(%arg0: i32) -> (i32, i32) {
    %c0_i32 = arith.constant 0 : i32
    %c0_i32_0 = arith.constant 0 : i32
    %c0_i32_1 = arith.constant 0 : i32
    return %c0_i32, %c0_i32_0 : i32, i32
  }
  func.func @transform_2(%arg0: i32) -> (i32, i32) {
    %c0_i32 = arith.constant 0 : i32
    %c0_i32_0 = arith.constant 0 : i32
    %c0_i32_1 = arith.constant 0 : i32
    return %c0_i32, %c0_i32_0 : i32, i32
  }
  func.func @transform_3(%arg0: i32) -> (i32, i32) {
    %c0_i32 = arith.constant 0 : i32
    %c0_i32_0 = arith.constant 0 : i32
    return %arg0, %c0_i32 : i32, i32
  }
}

</mosaic_0001>

<bundles_post_ra>
// kernel: cnn_forward.3
= control target key start
LH: loop header
LB: loop body
LE: loop exit
PB: predicated region body
PF: predicated region fallthrough
CT: control target
= control target key end

     0   :  { %8 = vsyncpa [#allocation4], 0  ;;  %s1396_s0 = inlined_call_operand.vmem [shape: bf16[2,32,160], index: 0, kind: input, shape index: {}]   ;;  %s1397_s1 = inlined_call_operand.hbm [shape: bf16[160,512], index: 1, kind: input, shape index: {}]   ;;  %s1398_s2 = inlined_call_operand.hbm [shape: f32[1,256], index: 2, kind: input, shape index: {}]   ;;  %s1399_s3 = inlined_call_operand.vmem [shape: bf16[32,256], index: 3, kind: output, shape index: {}]  }
   0x1   :  { %9 = vsyncpa [#allocation6], 0  ;;  %s1127_s12 = smov 0   ;;  %s1129_s13 = smov 0  }
   0x2   :  { %s1131_s14 = smov 0  }
   0x3 LB: > { %s826_s15 = sadd.s32 4294967295, %s1101_s14   ;;  %s1144_s16 = sadd.s32 1, %s1101_s14   ;;  %s1101_s14 = sphi %s1131_s14, %s1412_s14   ;;  %s1097_s13 = sphi %s1129_s13, %s1411_s13   ;;  %s1093_s12 = sphi %s1127_s12, %s1410_s12  }
   0x4   : > { %s19_s17 = ssub.s32 %s1101_s14, %s1144_s16  ;;  %s22_s18 = sadd.s32 1, %s1097_s13 }
   0x5   : > { %p20_p0 = scmp.eq.s32.totalorder %s19_s17, 0  ;;  %p29_p1 = scmp.ne.s32.totalorder %s1097_s13, %s1093_s12 }
   0x6   : > { %p30_p2 = scmp.eq.s32.totalorder %s1101_s14, 0  ;;  %p828_p3 = scmp.ge.s32.totalorder %s1101_s14, 1 }
   0x7   : > { %s1154_s19 = scalar_select %p20_p0, %s1097_s13, %s22_s18  }
   0x8   : > { %p1156_p4 = por %p30_p2, %p29_p1  ;;  %p114_p5 = scmp.lt.s32.totalorder %s1101_s14, 3 }
   0x9   : > { %p1163_p6 = scmp.eq.s32.totalorder %s826_s15, 0  ;;  %s1103_s23 = smov [#allocation3]  }
   0xa   : > { %s1403_s20 = scalar_select %p1156_p4, 1, 0 }
   0xb   : > { %s1404_s21 = scalar_select %p1163_p6, 1, 0 }
   0xc   : > { %p1167_p7 = pnand %p828_p3, %p114_p5  ;;  %s126_s24 = sshll.u32 %s1103_s23, 4  ;;  %s127_s24 = int_to_ptr.vmem [resolvable:$true] %s126_s24 }
   0xd   : > { %s1104_s26 = smov [#allocation5]   ;;  %s1015_s30 = scalar_lea.hbm %s1397_s1, 5120 }
   0xe   : > { %s1405_s22 = scalar_select %p1167_p7, 1, 0 }
   0xf   : > { %p910_p8 = pneg %p1167_p7  ;;  %s140_s27 = sshll.u32 %s1104_s26, 4  ;;  %s1179_s27 = int_to_ptr.vmem [resolvable:$true] %s140_s27 }
  0x10   : > { %p1016_p10 = scmp.ne.s32.totalorder %s1397_s1, %s1015_s30  ;;  %p1022_p0 = scmp.lt.u32.totalorder %s1015_s30, %s1397_s1 }
  0x11   : > { %p1175_p9 = pnand %p1163_p6, %p910_p8 }
  0x13   : > { %p1017_p11 = pneg %p1175_p9 }
  0x15   : > { %p1018_p12 = pnand %p1017_p11, %p1016_p10 }
  0x17   : > { %p1019_p13 = pneg %p1018_p12 }
  0x19   : > { %p1024_p1 = pnand %p1022_p0, %p1019_p13 }
  0x1b   : > { %1027 = shalt.err (!%p1024_p1)
}
  0x1c   : > { %s1028_s8 = scalar_lea.vmem %s127_s24, 5120  ;;  %p1036_p8 = scmp.lt.s32.totalorder %s127_s24, %s127_s24 }
  0x1d   : > { %p1029_p2 = scmp.ne.s32.totalorder %s127_s24, %s1028_s8  ;;  %p1037_p6 = scmp.lt.s32.totalorder %s1028_s8, %s1028_s8 }
  0x1f   : > { %p1031_p3 = pnand %p1029_p2, %p1017_p11  ;;  %p1038_p7 = por %p1037_p6, %p1036_p8 }
  0x21   : > { %p1032_p5 = pneg %p1031_p3 }
  0x23   : > { %p1039_p4 = pnand %p1038_p7, %p1032_p5 }
  0x25   : > { %1042 = shalt.err (!%p1039_p4)
}
  0x26   : > { %s1105_s9 = smov 256   ;;  %s1106_s10 = smov 16  }
  0x27   : > { %913 = dma.hbm_to_vmem [thread:$0]  (!%p1175_p9), %s1397_s1, 5120, %s127_s24, [#allocation4], %s1105_s9, %s1105_s9, %s1106_s10  }
  0x28   : > { %s1043_s26 = scalar_lea.hbm %s1398_s2, 32 }
  0x29   : > { %p1044_p10 = scmp.ne.s32.totalorder %s1398_s2, %s1043_s26  ;;  %p1050_p7 = scmp.lt.u32.totalorder %s1043_s26, %s1398_s2 }
  0x2b   : > { %p1046_p4 = pnand %p1044_p10, %p1017_p11 }
  0x2d   : > { %p1047_p6 = pneg %p1046_p4 }
  0x2f   : > { %p1052_p12 = pnand %p1050_p7, %p1047_p6 }
  0x31   : > { %1055 = shalt.err (!%p1052_p12)
}
  0x32   : > { %s1056_s24 = scalar_lea.vmem %s1179_s27, 32  ;;  %p1064_p2 = scmp.lt.s32.totalorder %s1179_s27, %s1179_s27 }
  0x33   : > { %p1057_p13 = scmp.ne.s32.totalorder %s1179_s27, %s1056_s24  ;;  %p1065_p3 = scmp.lt.s32.totalorder %s1056_s24, %s1056_s24 }
  0x35   : > { %p1059_p0 = pnand %p1057_p13, %p1017_p11  ;;  %p1066_p5 = por %p1065_p3, %p1064_p2 }
  0x37   : > { %p1060_p1 = pneg %p1059_p0 }
  0x39   : > { %p1067_p8 = pnand %p1066_p5, %p1060_p1 }
  0x3b   : > { %1070 = shalt.err (!%p1067_p8)
}
  0x3c   : > { %916 = dma.hbm_to_vmem [thread:$0]  (!%p1175_p9), %s1398_s2, 32, %s1179_s27, [#allocation6]  }
  0x3d   : > { %p831_p10 = scmp.ge.s32.totalorder %s1101_s14, 2 }
  0x3e   : > { %p1407_p4 = scmp.ne.s32.totalorder (!%p831_p10), %s1403_s20, 0 }
  0x3f   : > { %147 = sbr.rel (%p831_p10) target bundleno = 77 (0x4d), region = 24 }
  0x46   : > { %150 = sbr.rel (!%p1407_p4) target bundleno = 77 (0x4d), region = 28  ;;  %s152_s7 = sand.u32 (%p1407_p4), 1, %s1097_s13  }
  0x47   : > { %s898_s8 = sshll.u32 (%p1407_p4), %s1101_s14, 4  ;;  %s832_s9 = sshll.u32 (%p1407_p4), %s152_s7, 5 }
  0x48   : > { %s158_s25 = scalar_lea.vmem (%p1407_p4), %s1396_s0, %s898_s8  ;;  %s154_s17 = scalar_lea.vmem (%p1407_p4), [#allocation2], %s832_s9 }
  0x49   : > { %v192_v0 = vld [vmem:[%s158_s25] sm:$0xff] (%p1407_p4)  ;;  %v194_v1 = vld [vmem:[%s158_s25 + $0x8] sm:$0xff] (%p1407_p4) }
  0x4a   : > { %v196_v2 = vld [vmem:[%s158_s25 + $0x20] sm:$0xff] (%p1407_p4)  ;;  %193 = vst [vmem:[%s154_s17] sm:$0xff] (%p1407_p4), %v192_v0  ;;  %195 = vst [vmem:[%s154_s17 + $0x8] sm:$0xff] (%p1407_p4), %v194_v1  ;;  %v198_v3 = vld [vmem:[%s158_s25 + $0x28] sm:$0xff] (%p1407_p4) }
  0x4b   : > { %197 = vst [vmem:[%s154_s17 + $0x10] sm:$0xff] (%p1407_p4), %v196_v2  ;;  %199 = vst [vmem:[%s154_s17 + $0x18] sm:$0xff] (%p1407_p4), %v198_v3 }
  0x4d PF: > { %p1408_p9 = scmp.ne.s32.totalorder %s1405_s22, 0 }
  0x4e   : > { %s211_s20 = sand.u32 (!%p1408_p9), 1, %s1093_s12   ;;  %p1409_p11 = scmp.ne.s32.totalorder (!%p1408_p9), %s1404_s21, 0 }
  0x4f   : > { %208 = sbr.rel (%p1408_p9) target bundleno = 396 (0x18c), region = 66  ;;  %s837_s27 = sshll.u32 (!%p1408_p9), %s211_s20, 5 }
  0x50   : > { %s1239_s18 = scalar_lea.vmem (!%p1408_p9), [#allocation2], %s837_s27 }
  0x56   : > { %1084 = dma.done.wait (%p1409_p11), [#allocation4], 5120  }
  0x57   : > { %1086 = vsyncadd (%p1409_p11), [#allocation4], 4294962176 }
  0x58   : > { %1088 = dma.done.wait (%p1409_p11), [#allocation6], 32  }
  0x59   : > { %1090 = vsyncadd (%p1409_p11), [#allocation6], 4294967264  ;;  %v1249_v4 = vld [vmem:[#allocation3 + $0x4] ss:$16 sps:$4 sm:$0xff]   ;;  %v1251_v5 = vld [vmem:[#allocation3 + $0xc] ss:$16 sps:$4 sm:$0xff]   ;;  %v708_v56 = vlaneseq }
  0x5a   : > { %507 = vmatprep.subr.bf16.mxu0 %v1249_v4  ;;  %v1254_v6 = vld [vmem:[#allocation3] ss:$16 sps:$4 sm:$0xff]   ;;  %v1256_v7 = vld [vmem:[#allocation3 + $0x8] ss:$16 sps:$4 sm:$0xff]   ;;  %550 = vmatprep.subr.bf16.mxu1 %v1251_v5  ;;  %v1259_v8 = vld [vmem:[#allocation3 + $0x24] ss:$16 sps:$4 sm:$0xff]  }
  0x5b   : > { %508 = vmatpush1.bf16.msra.mxu0 %v1254_v6  ;;  %551 = vmatpush1.bf16.msra.mxu1 %v1256_v7  ;;  %v1263_v9 = vld [vmem:[#allocation3 + $0x2c] ss:$16 sps:$4 sm:$0xff]   ;;  %v1265_v10 = vld [vmem:[#allocation3 + $0x20] ss:$16 sps:$4 sm:$0xff]   ;;  %v1268_v11 = vld [vmem:[#allocation3 + $0x28] ss:$16 sps:$4 sm:$0xff]  }
  0x5c   : > { %509 = vmatprep.subr.bf16.mxu0 %v1259_v8  ;;  %552 = vmatprep.subr.bf16.mxu1 %v1263_v9  ;;  %v1271_v12 = vld [vmem:[#allocation3 + $0x44] ss:$16 sps:$4 sm:$0xff]   ;;  %v1273_v13 = vld [vmem:[#allocation3 + $0x4c] ss:$16 sps:$4 sm:$0xff]   ;;  %v1275_v14 = vld [vmem:[#allocation3 + $0x40] ss:$16 sps:$4 sm:$0xff]  }
  0x5d   : > { %v1277_v15 = vld [vmem:[#allocation3 + $0x48] ss:$16 sps:$4 sm:$0xff]   ;;  %v1281_v16 = vld [vmem:[#allocation3 + $0x64] ss:$16 sps:$4 sm:$0xff]   ;;  %v1285_v17 = vld [vmem:[#allocation3 + $0x6c] ss:$16 sps:$4 sm:$0xff]  }
  0x5e   : > { %v1287_v18 = vld [vmem:[#allocation3 + $0x60] ss:$16 sps:$4 sm:$0xff]   ;;  %v1291_v19 = vld [vmem:[#allocation3 + $0x68] ss:$16 sps:$4 sm:$0xff]   ;;  %v1293_v20 = vld [vmem:[#allocation3 + $0x84] ss:$16 sps:$4 sm:$0xff]  }
  0x5f   : > { %510 = vmatpush1.bf16.msra.mxu0 %v1265_v10  ;;  %553 = vmatpush1.bf16.msra.mxu1 %v1268_v11  ;;  %v1297_v21 = vld [vmem:[#allocation3 + $0x8c] ss:$16 sps:$4 sm:$0xff]   ;;  %v1299_v22 = vld [vmem:[#allocation3 + $0x80] ss:$16 sps:$4 sm:$0xff]   ;;  %v1301_v23 = vld [vmem:[#allocation3 + $0x88] ss:$16 sps:$4 sm:$0xff]  }
  0x60   : > { %511 = vmatprep.subr.bf16.mxu0 %v1271_v12  ;;  %554 = vmatprep.subr.bf16.mxu1 %v1273_v13  ;;  %v1305_v24 = vld [vmem:[#allocation3 + $0xa4] ss:$16 sps:$4 sm:$0xff]   ;;  %v1309_v25 = vld [vmem:[#allocation3 + $0xac] ss:$16 sps:$4 sm:$0xff]   ;;  %v1311_v26 = vld [vmem:[#allocation3 + $0xa0] ss:$16 sps:$4 sm:$0xff]  }
  0x61   : > { %v1315_v27 = vld [vmem:[#allocation3 + $0xa8] ss:$16 sps:$4 sm:$0xff]   ;;  %v1317_v28 = vld [vmem:[#allocation3 + $0xc4] ss:$16 sps:$4 sm:$0xff]   ;;  %v1321_v29 = vld [vmem:[#allocation3 + $0xcc] ss:$16 sps:$4 sm:$0xff]  }
  0x62   : > { %v1323_v30 = vld [vmem:[#allocation3 + $0xc0] ss:$16 sps:$4 sm:$0xff]   ;;  %v1325_v31 = vld [vmem:[#allocation3 + $0xc8] ss:$16 sps:$4 sm:$0xff]   ;;  %v1329_v32 = vld [vmem:[#allocation3 + $0xe4] ss:$16 sps:$4 sm:$0xff]  }
  0x63   : > { %512 = vmatpush1.bf16.msra.mxu0 %v1275_v14  ;;  %555 = vmatpush1.bf16.msra.mxu1 %v1277_v15  ;;  %v1333_v33 = vld [vmem:[#allocation3 + $0xec] ss:$16 sps:$4 sm:$0xff]   ;;  %v1335_v34 = vld [vmem:[#allocation3 + $0xe0] ss:$16 sps:$4 sm:$0xff]   ;;  %vm503_vm0 = vcmask 261120   ;;  %v709_v57 = vshrl.u32 %v708_v56, 7 }
  0x64   : > { %513 = vmatprep.subr.bf16.mxu0 %v1281_v16  ;;  %556 = vmatprep.subr.bf16.mxu1 %v1285_v17  ;;  %v1011_v35 = vld [vmem:[%s1239_s18 + $0x4] ss:$8 sps:$4 sm:$0xff]   ;;  %v996_v36 = vld [vmem:[#allocation3 + $0xe8] ss:$16 sps:$4 sm:$0xff]   ;;  %v1001_v39 = vld [vmem:[#allocation3 + $0x100] ss:$16 sps:$4 sm:$0xff]  }
  0x65   : > { %v997_v37 = vld [vmem:[#allocation3 + $0x104] ss:$16 sps:$4 sm:$0xff]   ;;  %v999_v38 = vld [vmem:[#allocation3 + $0x10c] ss:$16 sps:$4 sm:$0xff]   ;;  %885 = vmatprep.mubr.msk.bf16.mxu0 %vm503_vm0, %v1011_v35  ;;  %886 = vmatprep.mubr.msk.bf16.mxu1 %vm503_vm0, %v1011_v35  ;;  %v1002_v40 = vld [vmem:[#allocation3 + $0x108] ss:$16 sps:$4 sm:$0xff]  }
  0x66   : > { %v1003_v41 = vld [vmem:[#allocation3 + $0x124] ss:$16 sps:$4 sm:$0xff]   ;;  %v1005_v42 = vld [vmem:[#allocation3 + $0x12c] ss:$16 sps:$4 sm:$0xff]   ;;  %v1007_v43 = vld [vmem:[#allocation3 + $0x120] ss:$16 sps:$4 sm:$0xff]  }
  0x67   : > { %514 = vmatpush1.bf16.msra.mxu0 %v1287_v18  ;;  %557 = vmatpush1.bf16.msra.mxu1 %v1291_v19  ;;  %v1008_v44 = vld [vmem:[#allocation3 + $0x128] ss:$16 sps:$4 sm:$0xff]   ;;  %v1012_v46 = vld [vmem:[%s1239_s18 + $0x14] ss:$8 sps:$4 sm:$0xff]   ;;  %s840_s12 = sshll.u32 %s826_s15, 1  ;;  %v710_v58 = vsub.s32 0, %v709_v57 }
  0x68   : > { %515 = vmatprep.subr.bf16.mxu0 %v1293_v20  ;;  %558 = vmatprep.subr.bf16.mxu1 %v1297_v21  ;;  %v1009_v45 = vld [vmem:[%s1239_s18] ss:$8 sps:$4 sm:$0xff]   ;;  %v1014_v47 = vld [vmem:[%s1239_s18 + $0x10] ss:$8 sps:$4 sm:$0xff]   ;;  %p245_p6 = scmp.lt.s32.totalorder %s840_s12, 3  ;;  %v714_v60 = vsub.s32 1, %v709_v57 }
  0x69   : > { %v706_v59 = vld [vmem:[#allocation5] sm:$0x3] }
  0x6a   : > { %v711_v1 = vrot.slane %v706_v59, %v710_v58  ;;  %s1414_s12 = smov (!%p245_p6, %s840_s12), 3 }
  0x6b   : > { %516 = vmatpush1.bf16.msra.mxu0 %v1299_v22  ;;  %559 = vmatpush1.bf16.msra.mxu1 %v1301_v23  ;;  %s899_s14 = sshll.u32 %s1414_s12, 3 }
  0x6c   : > { %517 = vmatprep.subr.bf16.mxu0 %v1305_v24  ;;  %560 = vmatprep.subr.bf16.mxu1 %v1309_v25  ;;  %s249_s22 = scalar_lea.vmem %s1399_s3, %s899_s14 }
  0x6f   : > { %518 = vmatpush1.bf16.msra.mxu0 %v1311_v26  ;;  %561 = vmatpush1.bf16.msra.mxu1 %v1315_v27 }
  0x70   : > { %519 = vmatprep.subr.bf16.mxu0 %v1317_v28  ;;  %562 = vmatprep.subr.bf16.mxu1 %v1321_v29 }
  0x73   : > { %520 = vmatpush1.bf16.msra.mxu0 %v1323_v30  ;;  %563 = vmatpush1.bf16.msra.mxu1 %v1325_v31 }
  0x74   : > { %521 = vmatprep.subr.bf16.mxu0 %v1329_v32  ;;  %564 = vmatprep.subr.bf16.mxu1 %v1333_v33 }
  0x77   : > { %522 = vmatpush1.bf16.msra.mxu0 %v1335_v34  ;;  %565 = vmatpush1.bf16.msra.mxu1 %v996_v36 }
  0x78   : > { %523 = vmatprep.subr.bf16.mxu0 %v997_v37  ;;  %566 = vmatprep.subr.bf16.mxu1 %v999_v38 }
  0x7b   : > { %524 = vmatpush1.bf16.msra.mxu0 %v1001_v39  ;;  %567 = vmatpush1.bf16.msra.mxu1 %v1002_v40 }
  0x7c   : > { %525 = vmatprep.subr.bf16.mxu0 %v1003_v41  ;;  %568 = vmatprep.subr.bf16.mxu1 %v1005_v42 }
  0x7f   : > { %526 = vmatpush1.bf16.msra.mxu0 %v1007_v43  ;;  %569 = vmatpush1.bf16.msra.mxu1 %v1008_v44 }
  0x80   : > { %608 = vmatprep.subr.bf16.mxu0 %v1249_v4  ;;  %651 = vmatprep.subr.bf16.mxu1 %v1251_v5 }
  0x82   : > { %540 = vmatmul.mubr.bf16.vlgmr.msra.gmra.mrb[0].mxu0 %v1009_v45  ;;  %583 = vmatmul.mubr.bf16.vlgmr.msra.gmra.mrb[0].mxu1 %v1009_v45 }
  0x83   : > { %609 = vmatpush1.bf16.msra.mxu0 %v1254_v6  ;;  %652 = vmatpush1.bf16.msra.mxu1 %v1256_v7  ;;  %v715_v6 = vrot.slane %v706_v59, %v714_v60 }
  0x84   : > { %610 = vmatprep.subr.bf16.mxu0 %v1259_v8  ;;  %653 = vmatprep.subr.bf16.mxu1 %v1263_v9 }
  0x85   : > { %891 = vmatprep.mubr.msk.bf16.mxu0 %vm503_vm0, %v1012_v46  ;;  %892 = vmatprep.mubr.msk.bf16.mxu1 %vm503_vm0, %v1012_v46 }
  0x87   : > { %611 = vmatpush1.bf16.msra.mxu0 %v1265_v10  ;;  %654 = vmatpush1.bf16.msra.mxu1 %v1268_v11 }
  0x88   : > { %612 = vmatprep.subr.bf16.mxu0 %v1271_v12  ;;  %655 = vmatprep.subr.bf16.mxu1 %v1273_v13 }
  0x8b   : > { %613 = vmatpush1.bf16.msra.mxu0 %v1275_v14  ;;  %656 = vmatpush1.bf16.msra.mxu1 %v1277_v15 }
  0x8c   : > { %614 = vmatprep.subr.bf16.mxu0 %v1281_v16  ;;  %657 = vmatprep.subr.bf16.mxu1 %v1285_v17 }
  0x8f   : > { %615 = vmatpush1.bf16.msra.mxu0 %v1287_v18  ;;  %658 = vmatpush1.bf16.msra.mxu1 %v1291_v19 }
  0x90   : > { %616 = vmatprep.subr.bf16.mxu0 %v1293_v20  ;;  %659 = vmatprep.subr.bf16.mxu1 %v1297_v21 }
  0x93   : > { %617 = vmatpush1.bf16.msra.mxu0 %v1299_v22  ;;  %660 = vmatpush1.bf16.msra.mxu1 %v1301_v23 }
  0x94   : > { %618 = vmatprep.subr.bf16.mxu0 %v1305_v24  ;;  %661 = vmatprep.subr.bf16.mxu1 %v1309_v25 }
  0x97   : > { %619 = vmatpush1.bf16.msra.mxu0 %v1311_v26  ;;  %662 = vmatpush1.bf16.msra.mxu1 %v1315_v27 }
  0x98   : > { %620 = vmatprep.subr.bf16.mxu0 %v1317_v28  ;;  %663 = vmatprep.subr.bf16.mxu1 %v1321_v29 }
  0x9b   : > { %621 = vmatpush1.bf16.msra.mxu0 %v1323_v30  ;;  %664 = vmatpush1.bf16.msra.mxu1 %v1325_v31 }
  0x9c   : > { %622 = vmatprep.subr.bf16.mxu0 %v1329_v32  ;;  %665 = vmatprep.subr.bf16.mxu1 %v1333_v33 }
  0x9f   : > { %623 = vmatpush1.bf16.msra.mxu0 %v1335_v34  ;;  %666 = vmatpush1.bf16.msra.mxu1 %v996_v36 }
  0xa0   : > { %624 = vmatprep.subr.bf16.mxu0 %v997_v37  ;;  %667 = vmatprep.subr.bf16.mxu1 %v999_v38 }
  0xa3   : > { %625 = vmatpush1.bf16.msra.mxu0 %v1001_v39  ;;  %668 = vmatpush1.bf16.msra.mxu1 %v1002_v40 }
  0xa4   : > { %626 = vmatprep.subr.bf16.mxu0 %v1003_v41  ;;  %669 = vmatprep.subr.bf16.mxu1 %v1005_v42 }
  0xa7   : > { %627 = vmatpush1.bf16.msra.mxu0 %v1007_v43  ;;  %670 = vmatpush1.bf16.msra.mxu1 %v1008_v44 }
  0xaa   : > { %641 = vmatmul.mubr.bf16.vlgmr.msra.gmra.mrb[4].mxu0 %v1014_v47  ;;  %684 = vmatmul.mubr.bf16.vlgmr.msra.gmra.mrb[4].mxu1 %v1014_v47 }
 0x155   : > { %v541_v48 = vpop.f32.mrb[0].mxu0  ;;  %v584_v49 = vpop.f32.mrb[0].mxu1 }
 0x156   : > { %v543_v50 = vpop.f32.mrb[1].mxu0  ;;  %v586_v51 = vpop.f32.mrb[1].mxu1 }
 0x157   : > { %v545_v52 = vpop.f32.mrb[2].mxu0  ;;  %v588_v53 = vpop.f32.mrb[2].mxu1 }
 0x158   : > { %v547_v54 = vpop.f32.mrb[3].mxu0  ;;  %v590_v55 = vpop.f32.mrb[3].mxu1 }
 0x17d   : > { %v642_v61 = vpop.f32.mrb[4].mxu0  ;;  %v685_v62 = vpop.f32.mrb[4].mxu1 }
 0x17e   : > { %v694_v63 = vmax.f32 %v541_v48, %v642_v61  ;;  %v696_v0 = vmax.f32 %v584_v49, %v685_v62  ;;  %v644_v2 = vpop.f32.mrb[5].mxu0  ;;  %v687_v3 = vpop.f32.mrb[5].mxu1 }
 0x17f   : > { %v695_v4 = vmax.f32 %v543_v50, %v644_v2  ;;  %v697_v5 = vmax.f32 %v586_v51, %v687_v3  ;;  %v646_v7 = vpop.f32.mrb[6].mxu0  ;;  %v689_v8 = vpop.f32.mrb[6].mxu1 }
 0x180   : > { %v702_v9 = vmax.f32 %v694_v63, %v696_v0  ;;  %v698_v10 = vmax.f32 %v545_v52, %v646_v7  ;;  %v700_v11 = vmax.f32 %v588_v53, %v689_v8  ;;  %v648_v12 = vpop.f32.mrb[7].mxu0  ;;  %v691_v13 = vpop.f32.mrb[7].mxu1 }
 0x181   : > { %v703_v14 = vmax.f32 %v695_v4, %v697_v5  ;;  %v699_v15 = vmax.f32 %v547_v54, %v648_v12  ;;  %v701_v16 = vmax.f32 %v590_v55, %v691_v13 }
 0x182   : > { %v718_v17 = vadd.f32 %v711_v1, %v702_v9  ;;  %v704_v18 = vmax.f32 %v698_v10, %v700_v11 }
 0x183   : > { %v719_v19 = vadd.f32 %v715_v6, %v703_v14  ;;  %v705_v20 = vmax.f32 %v699_v15, %v701_v16 }
 0x184   : > { %v722_v21 = vmax.f32 %v718_v17, 0.0  ;;  %v720_v22 = vadd.f32 %v711_v1, %v704_v18 }
 0x185   : > { %v723_v23 = vmax.f32 %v719_v19, 0.0  ;;  %v721_v24 = vadd.f32 %v715_v6, %v705_v20 }
 0x186   : > { %v724_v25 = vmax.f32 %v720_v22, 0.0 }
 0x187   : > { %v900_v26 = vpack.c.bf16 %v723_v23, %v722_v21  ;;  %v725_v27 = vmax.f32 %v721_v24, 0.0 }
 0x189   : > { %738 = vst [vmem:[%s249_s22] sm:$0xff] %v900_v26  ;;  %v901_v28 = vpack.c.bf16 %v725_v27, %v724_v25 }
 0x18b   : > { %739 = vst [vmem:[%s249_s22 + $0x8] sm:$0xff] %v901_v28 }
 0x18c PF: > { %p12_p7 = scmp.ge.s32.totalorder %s1144_s16, 4   ;;  %s1410_s12 = smov %s1097_s13 }
 0x18d   : > { %s1411_s13 = smov %s1154_s19  ;;  %s1412_s14 = smov %s1144_s16 }
 0x18e   :  { %14 = sbr.rel (!%p12_p7) target bundleno = 3 (0x3), region = 115 }
 0x195   :  { %764 = vsyncpa [#allocation4], 1 }
 0x196   :  { %766 = vsyncpa [#allocation4 + $0x1], 1 }
 0x197   :  { %767 = vsyncpa [#allocation6], 1 }

// kernel: cnn_forward.5
= control target key start
LH: loop header
LB: loop body
LE: loop exit
PB: predicated region body
PF: predicated region fallthrough
CT: control target
= control target key end

     0   :  { %s2049_s1 = inlined_call_operand.vmem [shape: bf16[1792,128], index: 1, kind: input, shape index: {}]   ;;  %s2050_s0 = inlined_call_operand.vmem [shape: bf16[8,1792], index: 0, kind: input, shape index: {}]   ;;  %s2051_s2 = inlined_call_operand.vmem [shape: f32[1,128], index: 2, kind: input, shape index: {}]   ;;  %s2052_s3 = inlined_call_operand.vmem [shape: f32[8,128], index: 3, kind: output, shape index: {}]  }
   0x1   :  { %v1540_v0 = vld [vmem:[%s2049_s1 + $0x40] sm:$0xff]   ;;  %v1544_v4 = vld [vmem:[%s2049_s1 + $0x48] sm:$0xff]   ;;  %v1548_v8 = vld [vmem:[%s2049_s1 + $0x50] sm:$0xff]  }
   0x2   :  { %v1541_v1 = vld [vmem:[%s2049_s1] sm:$0xff]   ;;  %1386 = vmatprep.subr.bf16.mxu0 %v1540_v0  ;;  %v1545_v5 = vld [vmem:[%s2049_s1 + $0x8] sm:$0xff]   ;;  %v1549_v9 = vld [vmem:[%s2049_s1 + $0x10] sm:$0xff]  }
   0x3   :  { %v1542_v2 = vld [vmem:[%s2049_s1 + $0xc0] sm:$0xff]   ;;  %1387 = vmatpush3.bf16.msra.mxu0 %v1541_v1  ;;  %v1546_v6 = vld [vmem:[%s2049_s1 + $0xc8] sm:$0xff]   ;;  %v1550_v10 = vld [vmem:[%s2049_s1 + $0xd0] sm:$0xff]  }
   0x4   :  { %v1543_v3 = vld [vmem:[%s2049_s1 + $0x80] sm:$0xff]   ;;  %1408 = vmatprep.subr.bf16.mxu1 %v1542_v2  ;;  %1388 = vmatprep.subr.bf16.mxu0 %v1544_v4  ;;  %v1547_v7 = vld [vmem:[%s2049_s1 + $0x88] sm:$0xff]   ;;  %v1551_v11 = vld [vmem:[%s2049_s1 + $0x90] sm:$0xff]  }
   0x5   :  { %1409 = vmatpush3.bf16.msra.mxu1 %v1543_v3  ;;  %v1552_v12 = vld [vmem:[%s2049_s1 + $0x58] sm:$0xff]   ;;  %v1556_v16 = vld [vmem:[%s2049_s1 + $0x60] sm:$0xff]   ;;  %v1560_v20 = vld [vmem:[%s2049_s1 + $0x68] sm:$0xff]  }
   0x6   :  { %1410 = vmatprep.subr.bf16.mxu1 %v1546_v6  ;;  %v1553_v13 = vld [vmem:[%s2049_s1 + $0x18] sm:$0xff]   ;;  %v1557_v17 = vld [vmem:[%s2049_s1 + $0x20] sm:$0xff]   ;;  %v1561_v21 = vld [vmem:[%s2049_s1 + $0x28] sm:$0xff]  }
   0x7   :  { %1389 = vmatpush3.bf16.msra.mxu0 %v1545_v5  ;;  %v1554_v14 = vld [vmem:[%s2049_s1 + $0xd8] sm:$0xff]   ;;  %v1558_v18 = vld [vmem:[%s2049_s1 + $0xe0] sm:$0xff]   ;;  %v1562_v22 = vld [vmem:[%s2049_s1 + $0xe8] sm:$0xff]  }
   0x8   :  { %1390 = vmatprep.subr.bf16.mxu0 %v1548_v8  ;;  %v1555_v15 = vld [vmem:[%s2049_s1 + $0x98] sm:$0xff]   ;;  %v1559_v19 = vld [vmem:[%s2049_s1 + $0xa0] sm:$0xff]   ;;  %v1563_v23 = vld [vmem:[%s2049_s1 + $0xa8] sm:$0xff]  }
   0x9   :  { %1411 = vmatpush3.bf16.msra.mxu1 %v1547_v7  ;;  %v1564_v24 = vld [vmem:[%s2049_s1 + $0x70] sm:$0xff]   ;;  %v1568_v28 = vld [vmem:[%s2049_s1 + $0x78] sm:$0xff]   ;;  %v15_v31 = vld [vmem:[%s2050_s0] sm:$0xff] }
   0xa   :  { %1412 = vmatprep.subr.bf16.mxu1 %v1550_v10  ;;  %v1565_v25 = vld [vmem:[%s2049_s1 + $0x30] sm:$0xff]   ;;  %v1569_v29 = vld [vmem:[%s2049_s1 + $0x38] sm:$0xff]   ;;  %v1260_v32 = vcombine.low %v15_v31, %v15_v31  ;;  %v1261_v33 = vcombine.high %v15_v31, %v15_v31  ;;  %v1574_v35 = vld [vmem:[%s2049_s1 + $0x140] sm:$0xff]  }
   0xb   :  { %1391 = vmatpush3.bf16.msra.mxu0 %v1549_v9  ;;  %v1566_v26 = vld [vmem:[%s2049_s1 + $0xf0] sm:$0xff]   ;;  %v1570_v30 = vld [vmem:[%s2049_s1 + $0xf8] sm:$0xff]   ;;  %v16_v36 = vld [vmem:[%s2050_s0 + $0x8] sm:$0xff] }
   0xc   :  { %1392 = vmatprep.subr.bf16.mxu0 %v1552_v12  ;;  %v1567_v27 = vld [vmem:[%s2049_s1 + $0xb0] sm:$0xff]   ;;  %v1573_v34 = vld [vmem:[%s2049_s1 + $0xb8] sm:$0xff]   ;;  %1006 = vmatprep.mubr.bf16.mxu0 %v1261_v33  ;;  %v1262_v37 = vcombine.low %v16_v36, %v16_v36  ;;  %v1263_v38 = vcombine.high %v16_v36, %v16_v36  ;;  %v1577_v39 = vld [vmem:[%s2049_s1 + $0x100] sm:$0xff]  }
   0xd   :  { %1413 = vmatpush3.bf16.msra.mxu1 %v1551_v11  ;;  %v1578_v40 = vld [vmem:[%s2049_s1 + $0x1c0] sm:$0xff]   ;;  %v1580_v42 = vld [vmem:[%s2049_s1 + $0x148] sm:$0xff]   ;;  %v1584_v46 = vld [vmem:[%s2049_s1 + $0x150] sm:$0xff]  }
   0xe   :  { %1414 = vmatprep.subr.bf16.mxu1 %v1554_v14  ;;  %1046 = vmatprep.mubr.bf16.mxu1 %v1263_v38  ;;  %v1579_v41 = vld [vmem:[%s2049_s1 + $0x180] sm:$0xff]   ;;  %v1581_v43 = vld [vmem:[%s2049_s1 + $0x108] sm:$0xff]   ;;  %v1585_v47 = vld [vmem:[%s2049_s1 + $0x110] sm:$0xff]  }
   0xf   :  { %1393 = vmatpush3.bf16.msra.mxu0 %v1553_v13  ;;  %v1582_v44 = vld [vmem:[%s2049_s1 + $0x1c8] sm:$0xff]   ;;  %v1586_v48 = vld [vmem:[%s2049_s1 + $0x1d0] sm:$0xff]   ;;  %v1588_v50 = vld [vmem:[%s2049_s1 + $0x158] sm:$0xff]  }
  0x10   :  { %1394 = vmatprep.subr.bf16.mxu0 %v1556_v16  ;;  %v1583_v45 = vld [vmem:[%s2049_s1 + $0x188] sm:$0xff]   ;;  %v1587_v49 = vld [vmem:[%s2049_s1 + $0x190] sm:$0xff]   ;;  %v1589_v51 = vld [vmem:[%s2049_s1 + $0x118] sm:$0xff]  }
  0x11   :  { %1415 = vmatpush3.bf16.msra.mxu1 %v1555_v15  ;;  %v1590_v52 = vld [vmem:[%s2049_s1 + $0x1d8] sm:$0xff]   ;;  %v1592_v54 = vld [vmem:[%s2049_s1 + $0x160] sm:$0xff]   ;;  %v1596_v58 = vld [vmem:[%s2049_s1 + $0x168] sm:$0xff]  }
  0x12   :  { %1416 = vmatprep.subr.bf16.mxu1 %v1558_v18  ;;  %v1591_v53 = vld [vmem:[%s2049_s1 + $0x198] sm:$0xff]   ;;  %v1593_v55 = vld [vmem:[%s2049_s1 + $0x120] sm:$0xff]   ;;  %v1597_v59 = vld [vmem:[%s2049_s1 + $0x128] sm:$0xff]  }
  0x13   :  { %1395 = vmatpush3.bf16.msra.mxu0 %v1557_v17  ;;  %v1594_v56 = vld [vmem:[%s2049_s1 + $0x1e0] sm:$0xff]   ;;  %v1598_v60 = vld [vmem:[%s2049_s1 + $0x1e8] sm:$0xff]   ;;  %v1600_v62 = vld [vmem:[%s2049_s1 + $0x170] sm:$0xff]  }
  0x14   :  { %1396 = vmatprep.subr.bf16.mxu0 %v1560_v20  ;;  %v1595_v57 = vld [vmem:[%s2049_s1 + $0x1a0] sm:$0xff]   ;;  %v1599_v61 = vld [vmem:[%s2049_s1 + $0x1a8] sm:$0xff]   ;;  %v1601_v63 = vld [vmem:[%s2049_s1 + $0x130] sm:$0xff]  }
  0x15   :  { %1417 = vmatpush3.bf16.msra.mxu1 %v1559_v19  ;;  %v1602_v0 = vld [vmem:[%s2049_s1 + $0x1f0] sm:$0xff]   ;;  %v1604_v2 = vld [vmem:[%s2049_s1 + $0x178] sm:$0xff]   ;;  %v1610_v9 = vld [vmem:[%s2049_s1 + $0x240] sm:$0xff]  }
  0x16   :  { %1418 = vmatprep.subr.bf16.mxu1 %v1562_v22  ;;  %v1603_v1 = vld [vmem:[%s2049_s1 + $0x1b0] sm:$0xff]   ;;  %v1605_v3 = vld [vmem:[%s2049_s1 + $0x138] sm:$0xff]   ;;  %v1613_v13 = vld [vmem:[%s2049_s1 + $0x200] sm:$0xff]  }
  0x17   :  { %1397 = vmatpush3.bf16.msra.mxu0 %v1561_v21  ;;  %v1606_v4 = vld [vmem:[%s2049_s1 + $0x1f8] sm:$0xff]   ;;  %v17_v5 = vld [vmem:[%s2050_s0 + $0x10] sm:$0xff]  ;;  %v1614_v14 = vld [vmem:[%s2049_s1 + $0x2c0] sm:$0xff]  }
  0x18   :  { %1398 = vmatprep.subr.bf16.mxu0 %v1564_v24  ;;  %v1264_v6 = vcombine.low %v17_v5, %v17_v5  ;;  %v1265_v7 = vcombine.high %v17_v5, %v17_v5  ;;  %v1609_v8 = vld [vmem:[%s2049_s1 + $0x1b8] sm:$0xff]   ;;  %v1615_v15 = vld [vmem:[%s2049_s1 + $0x280] sm:$0xff]   ;;  %v1616_v16 = vld [vmem:[%s2049_s1 + $0x248] sm:$0xff]  }
  0x19   :  { %1419 = vmatpush3.bf16.msra.mxu1 %v1563_v23  ;;  %v18_v10 = vld [vmem:[%s2050_s0 + $0x18] sm:$0xff]  ;;  %v1617_v17 = vld [vmem:[%s2049_s1 + $0x208] sm:$0xff]   ;;  %v1620_v20 = vld [vmem:[%s2049_s1 + $0x250] sm:$0xff]  }
  0x1a   :  { %1420 = vmatprep.subr.bf16.mxu1 %v1566_v26  ;;  %v1266_v11 = vcombine.low %v18_v10, %v18_v10  ;;  %v1267_v12 = vcombine.high %v18_v10, %v18_v10  ;;  %v1618_v18 = vld [vmem:[%s2049_s1 + $0x2c8] sm:$0xff]   ;;  %v1621_v21 = vld [vmem:[%s2049_s1 + $0x210] sm:$0xff]   ;;  %v1624_v24 = vld [vmem:[%s2049_s1 + $0x258] sm:$0xff]  }
  0x1b   :  { %1399 = vmatpush3.bf16.msra.mxu0 %v1565_v25  ;;  %v1619_v19 = vld [vmem:[%s2049_s1 + $0x288] sm:$0xff]   ;;  %v1622_v22 = vld [vmem:[%s2049_s1 + $0x2d0] sm:$0xff]   ;;  %v1625_v25 = vld [vmem:[%s2049_s1 + $0x218] sm:$0xff]  }
  0x1c   :  { %1400 = vmatprep.subr.bf16.mxu0 %v1568_v28  ;;  %v1623_v23 = vld [vmem:[%s2049_s1 + $0x290] sm:$0xff]   ;;  %v1626_v26 = vld [vmem:[%s2049_s1 + $0x2d8] sm:$0xff]   ;;  %v1628_v28 = vld [vmem:[%s2049_s1 + $0x260] sm:$0xff]  }
  0x1d   :  { %1421 = vmatpush3.bf16.msra.mxu1 %v1567_v27  ;;  %v1627_v27 = vld [vmem:[%s2049_s1 + $0x298] sm:$0xff]   ;;  %v1631_v31 = vld [vmem:[%s2049_s1 + $0x2a0] sm:$0xff]   ;;  %v1633_v33 = vld [vmem:[%s2049_s1 + $0x228] sm:$0xff]  }
  0x1e   :  { %1422 = vmatprep.subr.bf16.mxu1 %v1570_v30  ;;  %v1630_v30 = vld [vmem:[%s2049_s1 + $0x2e0] sm:$0xff]   ;;  %v1636_v36 = vld [vmem:[%s2049_s1 + $0x270] sm:$0xff]  }
  0x1f   :  { %1401 = vmatpush3.bf16.msra.mxu0 %v1569_v29  ;;  %v1629_v29 = vld [vmem:[%s2049_s1 + $0x220] sm:$0xff]   ;;  %v1638_v38 = vld [vmem:[%s2049_s1 + $0x2f0] sm:$0xff]  }
  0x20   :  { %1430 = vmatprep.subr.bf16.mxu0 %v1574_v35  ;;  %v1635_v35 = vld [vmem:[%s2049_s1 + $0x2a8] sm:$0xff]  }
  0x21   :  { %1423 = vmatpush3.bf16.msra.mxu1 %v1573_v34  ;;  %v1634_v34 = vld [vmem:[%s2049_s1 + $0x2e8] sm:$0xff]  }
  0x22   :  { %1007 = vmatmul.mubr.bf16.vlgmr.msra.gmra.mrb[0].mxu0 %v1260_v32  ;;  %1452 = vmatprep.subr.bf16.mxu1 %v1578_v40  ;;  %v1632_v32 = vld [vmem:[%s2049_s1 + $0x268] sm:$0xff]   ;;  %v1640_v40 = vld [vmem:[%s2049_s1 + $0x278] sm:$0xff]  }
  0x23   :  { %1431 = vmatpush3.bf16.msra.mxu0 %v1577_v39  ;;  %1086 = vmatprep.mubr.bf16.mxu0 %v1265_v7  ;;  %v1639_v39 = vld [vmem:[%s2049_s1 + $0x2b0] sm:$0xff]  }
  0x24   :  { %1047 = vmatmul.mubr.bf16.vlgmr.msra.gmra.mrb[0].mxu1 %v1262_v37  ;;  %1432 = vmatprep.subr.bf16.mxu0 %v1580_v42  ;;  %v1637_v37 = vld [vmem:[%s2049_s1 + $0x230] sm:$0xff]   ;;  %v1642_v42 = vld [vmem:[%s2049_s1 + $0x2f8] sm:$0xff]  }
  0x25   :  { %1453 = vmatpush3.bf16.msra.mxu1 %v1579_v41  ;;  %1126 = vmatprep.mubr.bf16.mxu1 %v1267_v12  ;;  %v1641_v41 = vld [vmem:[%s2049_s1 + $0x238] sm:$0xff]  }
  0x26   :  { %1454 = vmatprep.subr.bf16.mxu1 %v1582_v44 }
  0x27   :  { %1433 = vmatpush3.bf16.msra.mxu0 %v1581_v43  ;;  %v19_v43 = vld [vmem:[%s2050_s0 + $0x20] sm:$0xff] }
  0x28   :  { %1434 = vmatprep.subr.bf16.mxu0 %v1584_v46  ;;  %v1268_v44 = vcombine.low %v19_v43, %v19_v43  ;;  %v1645_v46 = vld [vmem:[%s2049_s1 + $0x2b8] sm:$0xff]  }
  0x29   :  { %1455 = vmatpush3.bf16.msra.mxu1 %v1583_v45  ;;  %v1269_v45 = vcombine.high %v19_v43, %v19_v43 }
  0x2a   :  { %1456 = vmatprep.subr.bf16.mxu1 %v1586_v48  ;;  %v20_v48 = vld [vmem:[%s2050_s0 + $0x28] sm:$0xff] }
  0x2b   :  { %1435 = vmatpush3.bf16.msra.mxu0 %v1585_v47  ;;  %v1646_v47 = vld [vmem:[%s2049_s1 + $0x340] sm:$0xff]  }
  0x2c   :  { %1436 = vmatprep.subr.bf16.mxu0 %v1588_v50  ;;  %v1271_v50 = vcombine.high %v20_v48, %v20_v48 }
  0x2d   :  { %1457 = vmatpush3.bf16.msra.mxu1 %v1587_v49  ;;  %v1270_v49 = vcombine.low %v20_v48, %v20_v48 }
  0x2e   :  { %1458 = vmatprep.subr.bf16.mxu1 %v1590_v52  ;;  %v1650_v52 = vld [vmem:[%s2049_s1 + $0x348] sm:$0xff]  }
  0x2f   :  { %1437 = vmatpush3.bf16.msra.mxu0 %v1589_v51  ;;  %v1649_v51 = vld [vmem:[%s2049_s1 + $0x300] sm:$0xff]  }
  0x30   :  { %1438 = vmatprep.subr.bf16.mxu0 %v1592_v54  ;;  %v1652_v54 = vld [vmem:[%s2049_s1 + $0x350] sm:$0xff]  }
  0x31   :  { %1459 = vmatpush3.bf16.msra.mxu1 %v1591_v53  ;;  %v1651_v53 = vld [vmem:[%s2049_s1 + $0x308] sm:$0xff]  }
  0x32   :  { %1460 = vmatprep.subr.bf16.mxu1 %v1594_v56  ;;  %v1654_v56 = vld [vmem:[%s2049_s1 + $0x358] sm:$0xff]  }
  0x33   :  { %1439 = vmatpush3.bf16.msra.mxu0 %v1593_v55  ;;  %v1653_v55 = vld [vmem:[%s2049_s1 + $0x310] sm:$0xff]  }
  0x34   :  { %1440 = vmatprep.subr.bf16.mxu0 %v1596_v58  ;;  %v1656_v58 = vld [vmem:[%s2049_s1 + $0x360] sm:$0xff]  }
  0x35   :  { %1461 = vmatpush3.bf16.msra.mxu1 %v1595_v57  ;;  %v1655_v57 = vld [vmem:[%s2049_s1 + $0x318] sm:$0xff]  }
  0x36   :  { %1462 = vmatprep.subr.bf16.mxu1 %v1598_v60  ;;  %v1658_v60 = vld [vmem:[%s2049_s1 + $0x368] sm:$0xff]  }
  0x37   :  { %1441 = vmatpush3.bf16.msra.mxu0 %v1597_v59  ;;  %v1657_v59 = vld [vmem:[%s2049_s1 + $0x320] sm:$0xff]  }
  0x38   :  { %1442 = vmatprep.subr.bf16.mxu0 %v1600_v62 }
  0x39   :  { %1463 = vmatpush3.bf16.msra.mxu1 %v1599_v61  ;;  %v21_v61 = vld [vmem:[%s2050_s0 + $0x30] sm:$0xff] }
  0x3a   :  { %1464 = vmatprep.subr.bf16.mxu1 %v1602_v0  ;;  %v1273_v62 = vcombine.high %v21_v61, %v21_v61  ;;  %v1660_v0 = vld [vmem:[%s2049_s1 + $0x370] sm:$0xff]  }
  0x3b   :  { %1443 = vmatpush3.bf16.msra.mxu0 %v1601_v63  ;;  %v1659_v63 = vld [vmem:[%s2049_s1 + $0x328] sm:$0xff]  }
  0x3c   :  { %1444 = vmatprep.subr.bf16.mxu0 %v1604_v2  ;;  %v1662_v2 = vld [vmem:[%s2049_s1 + $0x378] sm:$0xff]  }
  0x3d   :  { %1465 = vmatpush3.bf16.msra.mxu1 %v1603_v1  ;;  %v1661_v1 = vld [vmem:[%s2049_s1 + $0x330] sm:$0xff]  }
  0x3e   :  { %1466 = vmatprep.subr.bf16.mxu1 %v1606_v4  ;;  %v1272_v4 = vcombine.low %v21_v61, %v21_v61 }
  0x3f   :  { %1445 = vmatpush3.bf16.msra.mxu0 %v1605_v3  ;;  %v1663_v3 = vld [vmem:[%s2049_s1 + $0x338] sm:$0xff]  }
  0x40   :  { %1474 = vmatprep.subr.bf16.mxu0 %v1610_v9 }
  0x41   :  { %1467 = vmatpush3.bf16.msra.mxu1 %v1609_v8 }
  0x42   :  { %1087 = vmatmul.mubr.bf16.vlgmr.msra.gmra.mrb[4].mxu0 %v1264_v6  ;;  %1496 = vmatprep.subr.bf16.mxu1 %v1614_v14  ;;  %v1259_v6 = vld [vmem:[%s2051_s2] ss:$0 sm:$0xff] }
  0x43   :  { %1475 = vmatpush3.bf16.msra.mxu0 %v1613_v13  ;;  %1166 = vmatprep.mubr.bf16.mxu0 %v1269_v45 }
  0x44   :  { %1127 = vmatmul.mubr.bf16.vlgmr.msra.gmra.mrb[4].mxu1 %v1266_v11  ;;  %1476 = vmatprep.subr.bf16.mxu0 %v1616_v16 }
  0x45   :  { %1497 = vmatpush3.bf16.msra.mxu1 %v1615_v15  ;;  %1206 = vmatprep.mubr.bf16.mxu1 %v1271_v50 }
  0x46   :  { %1498 = vmatprep.subr.bf16.mxu1 %v1618_v18 }
  0x47   :  { %1477 = vmatpush3.bf16.msra.mxu0 %v1617_v17 }
  0x48   :  { %1478 = vmatprep.subr.bf16.mxu0 %v1620_v20 }
  0x49   :  { %1499 = vmatpush3.bf16.msra.mxu1 %v1619_v19 }
  0x4a   :  { %1500 = vmatprep.subr.bf16.mxu1 %v1622_v22 }
  0x4b   :  { %1479 = vmatpush3.bf16.msra.mxu0 %v1621_v21 }
  0x4c   :  { %1480 = vmatprep.subr.bf16.mxu0 %v1624_v24 }
  0x4d   :  { %1501 = vmatpush3.bf16.msra.mxu1 %v1623_v23 }
  0x4e   :  { %1502 = vmatprep.subr.bf16.mxu1 %v1626_v26 }
  0x4f   :  { %1481 = vmatpush3.bf16.msra.mxu0 %v1625_v25 }
  0x50   :  { %1482 = vmatprep.subr.bf16.mxu0 %v1628_v28 }
  0x51   :  { %1503 = vmatpush3.bf16.msra.mxu1 %v1627_v27 }
  0x52   :  { %1504 = vmatprep.subr.bf16.mxu1 %v1630_v30 }
  0x53   :  { %1483 = vmatpush3.bf16.msra.mxu0 %v1629_v29 }
  0x54   :  { %1484 = vmatprep.subr.bf16.mxu0 %v1632_v32 }
  0x55   :  { %1505 = vmatpush3.bf16.msra.mxu1 %v1631_v31 }
  0x56   :  { %1506 = vmatprep.subr.bf16.mxu1 %v1634_v34 }
  0x57   :  { %1485 = vmatpush3.bf16.msra.mxu0 %v1633_v33 }
  0x58   :  { %1486 = vmatprep.subr.bf16.mxu0 %v1636_v36 }
  0x59   :  { %1507 = vmatpush3.bf16.msra.mxu1 %v1635_v35 }
  0x5a   :  { %1508 = vmatprep.subr.bf16.mxu1 %v1638_v38 }
  0x5b   :  { %1487 = vmatpush3.bf16.msra.mxu0 %v1637_v37 }
  0x5c   :  { %1488 = vmatprep.subr.bf16.mxu0 %v1640_v40 }
  0x5d   :  { %1509 = vmatpush3.bf16.msra.mxu1 %v1639_v39 }
  0x5e   :  { %1510 = vmatprep.subr.bf16.mxu1 %v1642_v42 }
  0x5f   :  { %1489 = vmatpush3.bf16.msra.mxu0 %v1641_v41 }
  0x60   :  { %1518 = vmatprep.subr.bf16.mxu0 %v1646_v47 }
  0x61   :  { %1511 = vmatpush3.bf16.msra.mxu1 %v1645_v46 }
  0x62   :  { %1167 = vmatmul.mubr.bf16.vlgmr.msra.gmra.mrb[8].mxu0 %v1268_v44 }
  0x63   :  { %1519 = vmatpush3.bf16.msra.mxu0 %v1649_v51  ;;  %1246 = vmatprep.mubr.bf16.mxu0 %v1273_v62 }
  0x64   :  { %1207 = vmatmul.mubr.bf16.vlgmr.msra.gmra.mrb[8].mxu1 %v1270_v49  ;;  %1520 = vmatprep.subr.bf16.mxu0 %v1650_v52 }
  0x67   :  { %1521 = vmatpush3.bf16.msra.mxu0 %v1651_v53 }
  0x68   :  { %1522 = vmatprep.subr.bf16.mxu0 %v1652_v54 }
  0x6b   :  { %1523 = vmatpush3.bf16.msra.mxu0 %v1653_v55 }
  0x6c   :  { %1524 = vmatprep.subr.bf16.mxu0 %v1654_v56 }
  0x6f   :  { %1525 = vmatpush3.bf16.msra.mxu0 %v1655_v57 }
  0x70   :  { %1526 = vmatprep.subr.bf16.mxu0 %v1656_v58 }
  0x73   :  { %1527 = vmatpush3.bf16.msra.mxu0 %v1657_v59 }
  0x74   :  { %1528 = vmatprep.subr.bf16.mxu0 %v1658_v60 }
  0x77   :  { %1529 = vmatpush3.bf16.msra.mxu0 %v1659_v63 }
  0x78   :  { %1530 = vmatprep.subr.bf16.mxu0 %v1660_v0 }
  0x7b   :  { %1531 = vmatpush3.bf16.msra.mxu0 %v1661_v1 }
  0x7c   :  { %1532 = vmatprep.subr.bf16.mxu0 %v1662_v2 }
  0x7f   :  { %1533 = vmatpush3.bf16.msra.mxu0 %v1663_v3 }
  0x82   :  { %1247 = vmatmul.mubr.bf16.vlgmr.msra.gmra.mrb[12].mxu0 %v1272_v4 }
  0xf5   :  { %v1402_v5 = vpop.f32.mrb[0].mxu0 }
  0xf6   :  { %v1403_v7 = vpop.f32.mrb[1].mxu0 }
  0xf7   :  { %v1404_v8 = vadd.f32 %v1403_v7, %v1402_v5  ;;  %v1405_v9 = vpop.f32.mrb[2].mxu0  ;;  %v1424_v10 = vpop.f32.mrb[0].mxu1 }
  0xf8   :  { %v1406_v11 = vpop.f32.mrb[3].mxu0  ;;  %v1425_v12 = vpop.f32.mrb[1].mxu1 }
  0xf9   :  { %v1009_v13 = vadd.f32 %v1404_v8, %v1259_v6  ;;  %v1426_v14 = vadd.f32 %v1425_v12, %v1424_v10  ;;  %v1427_v15 = vpop.f32.mrb[2].mxu1 }
  0xfa   :  { %v1428_v16 = vpop.f32.mrb[3].mxu1 }
  0xfb   :  { %v1049_v17 = vadd.f32 %v1426_v14, %v1009_v13 }
 0x115   :  { %v1446_v18 = vpop.f32.mrb[4].mxu0 }
 0x116   :  { %v1447_v19 = vpop.f32.mrb[5].mxu0 }
 0x117   :  { %v1448_v20 = vadd.f32 %v1447_v19, %v1446_v18  ;;  %v1449_v21 = vpop.f32.mrb[6].mxu0  ;;  %v1468_v22 = vpop.f32.mrb[4].mxu1 }
 0x118   :  { %v1450_v23 = vpop.f32.mrb[7].mxu0  ;;  %v1469_v25 = vpop.f32.mrb[5].mxu1 }
 0x119   :  { %v1089_v24 = vadd.f32 %v1448_v20, %v1049_v17  ;;  %v1470_v26 = vadd.f32 %v1469_v25, %v1468_v22  ;;  %v1471_v27 = vpop.f32.mrb[6].mxu1 }
 0x11a   :  { %v1472_v28 = vpop.f32.mrb[7].mxu1 }
 0x11b   :  { %v1129_v29 = vadd.f32 %v1470_v26, %v1089_v24 }
 0x135   :  { %v1490_v30 = vpop.f32.mrb[8].mxu0 }
 0x136   :  { %v1491_v31 = vpop.f32.mrb[9].mxu0 }
 0x137   :  { %v1492_v32 = vadd.f32 %v1491_v31, %v1490_v30  ;;  %v1493_v33 = vpop.f32.mrb[10].mxu0  ;;  %v1512_v34 = vpop.f32.mrb[8].mxu1 }
 0x138   :  { %v1494_v35 = vpop.f32.mrb[11].mxu0  ;;  %v1513_v36 = vpop.f32.mrb[9].mxu1 }
 0x139   :  { %v1169_v37 = vadd.f32 %v1492_v32, %v1129_v29  ;;  %v1514_v38 = vadd.f32 %v1513_v36, %v1512_v34  ;;  %v1515_v39 = vpop.f32.mrb[10].mxu1 }
 0x13a   :  { %v1516_v40 = vpop.f32.mrb[11].mxu1 }
 0x13b   :  { %v1209_v41 = vadd.f32 %v1514_v38, %v1169_v37 }
 0x155   :  { %v1534_v42 = vpop.f32.mrb[12].mxu0 }
 0x156   :  { %v1535_v43 = vpop.f32.mrb[13].mxu0 }
 0x157   :  { %v1536_v44 = vadd.f32 %v1535_v43, %v1534_v42  ;;  %v1537_v45 = vpop.f32.mrb[14].mxu0 }
 0x158   :  { %v1538_v46 = vpop.f32.mrb[15].mxu0 }
 0x159   :  { %v1249_v47 = vadd.f32 %v1536_v44, %v1209_v41 }
 0x15b   :  { %1254 = vst [vmem:[%s2052_s3] sm:$0xff] %v1249_v47 }

// kernel: cnn_forward.4
= control target key start
LH: loop header
LB: loop body
LE: loop exit
PB: predicated region body
PF: predicated region fallthrough
CT: control target
= control target key end

     0   :  { %s6246_s1 = inlined_call_operand.vmem [shape: bf16[1280,512], index: 1, kind: input, shape index: {}]   ;;  %s6247_s0 = inlined_call_operand.vmem [shape: bf16[2,16,1280], index: 0, kind: input, shape index: {}]   ;;  %s6248_s2 = inlined_call_operand.vmem [shape: f32[1,256], index: 2, kind: input, shape index: {}]   ;;  %s6249_s3 = inlined_call_operand.vmem [shape: bf16[16,256], index: 3, kind: output, shape index: {}]  }
   0x1   :  { %v3383_v0 = vld [vmem:[%s6246_s1 + $0x4] ss:$16 sps:$4 sm:$0xff]   ;;  %v3385_v1 = vld [vmem:[%s6246_s1 + $0xc] ss:$16 sps:$4 sm:$0xff]   ;;  %v3387_v2 = vld [vmem:[%s6246_s1] ss:$16 sps:$4 sm:$0xff]  }
   0x2   :  { %1994 = vmatprep.subr.bf16.mxu0 %v3383_v0  ;;  %v3388_v3 = vld [vmem:[%s6246_s1 + $0x8] ss:$16 sps:$4 sm:$0xff]   ;;  %2209 = vmatprep.subr.bf16.mxu1 %v3385_v1  ;;  %v3389_v4 = vld [vmem:[%s6246_s1 + $0x24] ss:$16 sps:$4 sm:$0xff]   ;;  %v3391_v5 = vld [vmem:[%s6246_s1 + $0x2c] ss:$16 sps:$4 sm:$0xff]  }
   0x3   :  { %1995 = vmatpush1.bf16.msra.mxu0 %v3387_v2  ;;  %2210 = vmatpush1.bf16.msra.mxu1 %v3388_v3  ;;  %v3393_v6 = vld [vmem:[%s6246_s1 + $0x20] ss:$16 sps:$4 sm:$0xff]   ;;  %v3394_v7 = vld [vmem:[%s6246_s1 + $0x28] ss:$16 sps:$4 sm:$0xff]   ;;  %v3395_v8 = vld [vmem:[%s6246_s1 + $0x44] ss:$16 sps:$4 sm:$0xff]  }
   0x4   :  { %1996 = vmatprep.subr.bf16.mxu0 %v3389_v4  ;;  %2211 = vmatprep.subr.bf16.mxu1 %v3391_v5  ;;  %v3397_v9 = vld [vmem:[%s6246_s1 + $0x4c] ss:$16 sps:$4 sm:$0xff]   ;;  %v3399_v10 = vld [vmem:[%s6246_s1 + $0x40] ss:$16 sps:$4 sm:$0xff]   ;;  %v3400_v11 = vld [vmem:[%s6246_s1 + $0x48] ss:$16 sps:$4 sm:$0xff]  }
   0x5   :  { %v3401_v12 = vld [vmem:[%s6246_s1 + $0x64] ss:$16 sps:$4 sm:$0xff]   ;;  %v3403_v13 = vld [vmem:[%s6246_s1 + $0x6c] ss:$16 sps:$4 sm:$0xff]   ;;  %v3405_v14 = vld [vmem:[%s6246_s1 + $0x60] ss:$16 sps:$4 sm:$0xff]  }
   0x6   :  { %v3406_v15 = vld [vmem:[%s6246_s1 + $0x68] ss:$16 sps:$4 sm:$0xff]   ;;  %v3407_v16 = vld [vmem:[%s6246_s1 + $0x84] ss:$16 sps:$4 sm:$0xff]   ;;  %v3409_v17 = vld [vmem:[%s6246_s1 + $0x8c] ss:$16 sps:$4 sm:$0xff]  }
   0x7   :  { %1997 = vmatpush1.bf16.msra.mxu0 %v3393_v6  ;;  %2212 = vmatpush1.bf16.msra.mxu1 %v3394_v7  ;;  %v3411_v18 = vld [vmem:[%s6246_s1 + $0x80] ss:$16 sps:$4 sm:$0xff]   ;;  %v3412_v19 = vld [vmem:[%s6246_s1 + $0x88] ss:$16 sps:$4 sm:$0xff]   ;;  %v3413_v20 = vld [vmem:[%s6246_s1 + $0xa4] ss:$16 sps:$4 sm:$0xff]  }
   0x8   :  { %1998 = vmatprep.subr.bf16.mxu0 %v3395_v8  ;;  %2213 = vmatprep.subr.bf16.mxu1 %v3397_v9  ;;  %v3415_v21 = vld [vmem:[%s6246_s1 + $0xac] ss:$16 sps:$4 sm:$0xff]   ;;  %v3417_v22 = vld [vmem:[%s6246_s1 + $0xa0] ss:$16 sps:$4 sm:$0xff]   ;;  %v3418_v23 = vld [vmem:[%s6246_s1 + $0xa8] ss:$16 sps:$4 sm:$0xff]  }
   0x9   :  { %v3419_v24 = vld [vmem:[%s6246_s1 + $0xc4] ss:$16 sps:$4 sm:$0xff]   ;;  %v3421_v25 = vld [vmem:[%s6246_s1 + $0xcc] ss:$16 sps:$4 sm:$0xff]   ;;  %v3423_v26 = vld [vmem:[%s6246_s1 + $0xc0] ss:$16 sps:$4 sm:$0xff]  }
   0xa   :  { %v3424_v27 = vld [vmem:[%s6246_s1 + $0xc8] ss:$16 sps:$4 sm:$0xff]   ;;  %v3425_v28 = vld [vmem:[%s6246_s1 + $0xe4] ss:$16 sps:$4 sm:$0xff]   ;;  %v3427_v29 = vld [vmem:[%s6246_s1 + $0xec] ss:$16 sps:$4 sm:$0xff]  }
   0xb   :  { %1999 = vmatpush1.bf16.msra.mxu0 %v3399_v10  ;;  %2214 = vmatpush1.bf16.msra.mxu1 %v3400_v11  ;;  %v3429_v30 = vld [vmem:[%s6246_s1 + $0xe0] ss:$16 sps:$4 sm:$0xff]   ;;  %v3430_v31 = vld [vmem:[%s6246_s1 + $0xe8] ss:$16 sps:$4 sm:$0xff]   ;;  %v3431_v32 = vld [vmem:[%s6246_s1 + $0x104] ss:$16 sps:$4 sm:$0xff]  }
   0xc   :  { %2000 = vmatprep.subr.bf16.mxu0 %v3401_v12  ;;  %2215 = vmatprep.subr.bf16.mxu1 %v3403_v13  ;;  %v3433_v33 = vld [vmem:[%s6246_s1 + $0x10c] ss:$16 sps:$4 sm:$0xff]   ;;  %v3435_v34 = vld [vmem:[%s6246_s1 + $0x100] ss:$16 sps:$4 sm:$0xff]   ;;  %v3436_v35 = vld [vmem:[%s6246_s1 + $0x108] ss:$16 sps:$4 sm:$0xff]  }
   0xd   :  { %v3437_v36 = vld [vmem:[%s6246_s1 + $0x124] ss:$16 sps:$4 sm:$0xff]   ;;  %v3439_v37 = vld [vmem:[%s6246_s1 + $0x12c] ss:$16 sps:$4 sm:$0xff]   ;;  %v3441_v38 = vld [vmem:[%s6246_s1 + $0x120] ss:$16 sps:$4 sm:$0xff]  }
   0xe   :  { %v3442_v39 = vld [vmem:[%s6246_s1 + $0x128] ss:$16 sps:$4 sm:$0xff]   ;;  %v3443_v40 = vld [vmem:[%s6246_s1 + $0x144] ss:$16 sps:$4 sm:$0xff]   ;;  %v3445_v41 = vld [vmem:[%s6246_s1 + $0x14c] ss:$16 sps:$4 sm:$0xff]  }
   0xf   :  { %2001 = vmatpush1.bf16.msra.mxu0 %v3405_v14  ;;  %2216 = vmatpush1.bf16.msra.mxu1 %v3406_v15  ;;  %v3447_v42 = vld [vmem:[%s6246_s1 + $0x140] ss:$16 sps:$4 sm:$0xff]   ;;  %v3448_v43 = vld [vmem:[%s6246_s1 + $0x148] ss:$16 sps:$4 sm:$0xff]   ;;  %v3449_v44 = vld [vmem:[%s6246_s1 + $0x164] ss:$16 sps:$4 sm:$0xff]  }
  0x10   :  { %2002 = vmatprep.subr.bf16.mxu0 %v3407_v16  ;;  %2217 = vmatprep.subr.bf16.mxu1 %v3409_v17  ;;  %v3451_v45 = vld [vmem:[%s6246_s1 + $0x16c] ss:$16 sps:$4 sm:$0xff]   ;;  %v3453_v46 = vld [vmem:[%s6246_s1 + $0x160] ss:$16 sps:$4 sm:$0xff]   ;;  %v3454_v47 = vld [vmem:[%s6246_s1 + $0x168] ss:$16 sps:$4 sm:$0xff]  }
  0x11   :  { %v3481_v48 = vld [vmem:[%s6247_s0 + $0x4] ss:$40 sps:$4 sm:$0xff]   ;;  %v3459_v51 = vld [vmem:[%s6246_s1 + $0x180] ss:$16 sps:$4 sm:$0xff]   ;;  %v3460_v52 = vld [vmem:[%s6246_s1 + $0x188] ss:$16 sps:$4 sm:$0xff]  }
  0x12   :  { %v3455_v49 = vld [vmem:[%s6246_s1 + $0x184] ss:$16 sps:$4 sm:$0xff]   ;;  %v3457_v50 = vld [vmem:[%s6246_s1 + $0x18c] ss:$16 sps:$4 sm:$0xff]   ;;  %2026 = vmatprep.mubr.bf16.mxu0 %v3481_v48  ;;  %2241 = vmatprep.mubr.bf16.mxu1 %v3481_v48  ;;  %v3465_v55 = vld [vmem:[%s6246_s1 + $0x1a0] ss:$16 sps:$4 sm:$0xff]  }
  0x13   :  { %2003 = vmatpush1.bf16.msra.mxu0 %v3411_v18  ;;  %2218 = vmatpush1.bf16.msra.mxu1 %v3412_v19  ;;  %v3461_v53 = vld [vmem:[%s6246_s1 + $0x1a4] ss:$16 sps:$4 sm:$0xff]   ;;  %v3463_v54 = vld [vmem:[%s6246_s1 + $0x1ac] ss:$16 sps:$4 sm:$0xff]   ;;  %v3466_v56 = vld [vmem:[%s6246_s1 + $0x1a8] ss:$16 sps:$4 sm:$0xff]  }
  0x14   :  { %2004 = vmatprep.subr.bf16.mxu0 %v3413_v20  ;;  %2219 = vmatprep.subr.bf16.mxu1 %v3415_v21  ;;  %v3467_v57 = vld [vmem:[%s6246_s1 + $0x1c4] ss:$16 sps:$4 sm:$0xff]   ;;  %v3469_v58 = vld [vmem:[%s6246_s1 + $0x1cc] ss:$16 sps:$4 sm:$0xff]   ;;  %v3471_v59 = vld [vmem:[%s6246_s1 + $0x1c0] ss:$16 sps:$4 sm:$0xff]  }
  0x15   :  { %v3472_v60 = vld [vmem:[%s6246_s1 + $0x1c8] ss:$16 sps:$4 sm:$0xff]   ;;  %v3473_v61 = vld [vmem:[%s6246_s1 + $0x1e4] ss:$16 sps:$4 sm:$0xff]   ;;  %v3475_v62 = vld [vmem:[%s6246_s1 + $0x1ec] ss:$16 sps:$4 sm:$0xff]  }
  0x16   :  { %v3477_v63 = vld [vmem:[%s6246_s1 + $0x1e0] ss:$16 sps:$4 sm:$0xff]   ;;  %v3478_v0 = vld [vmem:[%s6246_s1 + $0x1e8] ss:$16 sps:$4 sm:$0xff]   ;;  %v3484_v1 = vld [vmem:[%s6246_s1 + $0x204] ss:$16 sps:$4 sm:$0xff]  }
  0x17   :  { %2005 = vmatpush1.bf16.msra.mxu0 %v3417_v22  ;;  %2220 = vmatpush1.bf16.msra.mxu1 %v3418_v23  ;;  %v3487_v2 = vld [vmem:[%s6246_s1 + $0x20c] ss:$16 sps:$4 sm:$0xff]   ;;  %v3479_v3 = vld [vmem:[%s6247_s0] ss:$40 sps:$4 sm:$0xff]   ;;  %v3490_v6 = vld [vmem:[%s6246_s1 + $0x224] ss:$16 sps:$4 sm:$0xff]  }
  0x18   :  { %2006 = vmatprep.subr.bf16.mxu0 %v3419_v24  ;;  %2221 = vmatprep.subr.bf16.mxu1 %v3421_v25  ;;  %v3482_v4 = vld [vmem:[%s6246_s1 + $0x200] ss:$16 sps:$4 sm:$0xff]   ;;  %v3485_v5 = vld [vmem:[%s6246_s1 + $0x208] ss:$16 sps:$4 sm:$0xff]   ;;  %v3493_v7 = vld [vmem:[%s6246_s1 + $0x22c] ss:$16 sps:$4 sm:$0xff]  }
  0x19   :  { %v3488_v8 = vld [vmem:[%s6246_s1 + $0x220] ss:$16 sps:$4 sm:$0xff]   ;;  %v3491_v9 = vld [vmem:[%s6246_s1 + $0x228] ss:$16 sps:$4 sm:$0xff]   ;;  %v3496_v10 = vld [vmem:[%s6246_s1 + $0x244] ss:$16 sps:$4 sm:$0xff]  }
  0x1a   :  { %v3499_v11 = vld [vmem:[%s6246_s1 + $0x24c] ss:$16 sps:$4 sm:$0xff]   ;;  %v3494_v12 = vld [vmem:[%s6246_s1 + $0x240] ss:$16 sps:$4 sm:$0xff]   ;;  %v3497_v13 = vld [vmem:[%s6246_s1 + $0x248] ss:$16 sps:$4 sm:$0xff]  }
  0x1b   :  { %2007 = vmatpush1.bf16.msra.mxu0 %v3423_v26  ;;  %2222 = vmatpush1.bf16.msra.mxu1 %v3424_v27  ;;  %v3502_v14 = vld [vmem:[%s6246_s1 + $0x264] ss:$16 sps:$4 sm:$0xff]   ;;  %v3505_v15 = vld [vmem:[%s6246_s1 + $0x26c] ss:$16 sps:$4 sm:$0xff]   ;;  %v3500_v16 = vld [vmem:[%s6246_s1 + $0x260] ss:$16 sps:$4 sm:$0xff]  }
  0x1c   :  { %2008 = vmatprep.subr.bf16.mxu0 %v3425_v28  ;;  %2223 = vmatprep.subr.bf16.mxu1 %v3427_v29  ;;  %v3503_v17 = vld [vmem:[%s6246_s1 + $0x268] ss:$16 sps:$4 sm:$0xff]   ;;  %v3508_v18 = vld [vmem:[%s6246_s1 + $0x284] ss:$16 sps:$4 sm:$0xff]   ;;  %v3511_v19 = vld [vmem:[%s6246_s1 + $0x28c] ss:$16 sps:$4 sm:$0xff]  }
  0x1d   :  { %v3506_v20 = vld [vmem:[%s6246_s1 + $0x280] ss:$16 sps:$4 sm:$0xff]   ;;  %v3509_v21 = vld [vmem:[%s6246_s1 + $0x288] ss:$16 sps:$4 sm:$0xff]   ;;  %v3514_v22 = vld [vmem:[%s6246_s1 + $0x2a4] ss:$16 sps:$4 sm:$0xff]  }
  0x1e   :  { %v3517_v23 = vld [vmem:[%s6246_s1 + $0x2ac] ss:$16 sps:$4 sm:$0xff]   ;;  %v3512_v24 = vld [vmem:[%s6246_s1 + $0x2a0] ss:$16 sps:$4 sm:$0xff]   ;;  %v3515_v25 = vld [vmem:[%s6246_s1 + $0x2a8] ss:$16 sps:$4 sm:$0xff]  }
  0x1f   :  { %2009 = vmatpush1.bf16.msra.mxu0 %v3429_v30  ;;  %2224 = vmatpush1.bf16.msra.mxu1 %v3430_v31  ;;  %v3520_v26 = vld [vmem:[%s6246_s1 + $0x2c4] ss:$16 sps:$4 sm:$0xff]   ;;  %v3523_v27 = vld [vmem:[%s6246_s1 + $0x2cc] ss:$16 sps:$4 sm:$0xff]   ;;  %v3518_v28 = vld [vmem:[%s6246_s1 + $0x2c0] ss:$16 sps:$4 sm:$0xff]  }
  0x20   :  { %2010 = vmatprep.subr.bf16.mxu0 %v3431_v32  ;;  %2225 = vmatprep.subr.bf16.mxu1 %v3433_v33  ;;  %v3521_v29 = vld [vmem:[%s6246_s1 + $0x2c8] ss:$16 sps:$4 sm:$0xff]   ;;  %v3580_v30 = vld [vmem:[%s6247_s0 + $0xc] ss:$40 sps:$4 sm:$0xff]   ;;  %v3524_v33 = vld [vmem:[%s6246_s1 + $0x2e0] ss:$16 sps:$4 sm:$0xff]  }
  0x21   :  { %v3526_v31 = vld [vmem:[%s6246_s1 + $0x2e4] ss:$16 sps:$4 sm:$0xff]   ;;  %v3529_v32 = vld [vmem:[%s6246_s1 + $0x2ec] ss:$16 sps:$4 sm:$0xff]  }
  0x22   :  { %v3553_v48 = vld [vmem:[%s6246_s1 + $0x36c] ss:$16 sps:$4 sm:$0xff]  }
  0x23   :  { %2011 = vmatpush1.bf16.msra.mxu0 %v3435_v34  ;;  %2226 = vmatpush1.bf16.msra.mxu1 %v3436_v35  ;;  %v3527_v34 = vld [vmem:[%s6246_s1 + $0x2e8] ss:$16 sps:$4 sm:$0xff]   ;;  %v3532_v35 = vld [vmem:[%s6246_s1 + $0x304] ss:$16 sps:$4 sm:$0xff]  }
  0x24   :  { %2012 = vmatprep.subr.bf16.mxu0 %v3437_v36  ;;  %2227 = vmatprep.subr.bf16.mxu1 %v3439_v37  ;;  %v3535_v36 = vld [vmem:[%s6246_s1 + $0x30c] ss:$16 sps:$4 sm:$0xff]   ;;  %v3530_v37 = vld [vmem:[%s6246_s1 + $0x300] ss:$16 sps:$4 sm:$0xff]  }
  0x27   :  { %2013 = vmatpush1.bf16.msra.mxu0 %v3441_v38  ;;  %2228 = vmatpush1.bf16.msra.mxu1 %v3442_v39  ;;  %v3533_v38 = vld [vmem:[%s6246_s1 + $0x308] ss:$16 sps:$4 sm:$0xff]   ;;  %v3538_v39 = vld [vmem:[%s6246_s1 + $0x324] ss:$16 sps:$4 sm:$0xff]  }
  0x28   :  { %2014 = vmatprep.subr.bf16.mxu0 %v3443_v40  ;;  %2229 = vmatprep.subr.bf16.mxu1 %v3445_v41  ;;  %v3541_v40 = vld [vmem:[%s6246_s1 + $0x32c] ss:$16 sps:$4 sm:$0xff]   ;;  %v3536_v41 = vld [vmem:[%s6246_s1 + $0x320] ss:$16 sps:$4 sm:$0xff]  }
  0x2b   :  { %2015 = vmatpush1.bf16.msra.mxu0 %v3447_v42  ;;  %2230 = vmatpush1.bf16.msra.mxu1 %v3448_v43  ;;  %v3539_v42 = vld [vmem:[%s6246_s1 + $0x328] ss:$16 sps:$4 sm:$0xff]   ;;  %v3544_v43 = vld [vmem:[%s6246_s1 + $0x344] ss:$16 sps:$4 sm:$0xff]  }
  0x2c   :  { %2016 = vmatprep.subr.bf16.mxu0 %v3449_v44  ;;  %2231 = vmatprep.subr.bf16.mxu1 %v3451_v45  ;;  %v3547_v44 = vld [vmem:[%s6246_s1 + $0x34c] ss:$16 sps:$4 sm:$0xff]   ;;  %v3542_v45 = vld [vmem:[%s6246_s1 + $0x340] ss:$16 sps:$4 sm:$0xff]  }
  0x2f   :  { %2017 = vmatpush1.bf16.msra.mxu0 %v3453_v46  ;;  %2232 = vmatpush1.bf16.msra.mxu1 %v3454_v47  ;;  %v3545_v46 = vld [vmem:[%s6246_s1 + $0x348] ss:$16 sps:$4 sm:$0xff]   ;;  %v3550_v47 = vld [vmem:[%s6246_s1 + $0x364] ss:$16 sps:$4 sm:$0xff]  }
  0x30   :  { %2018 = vmatprep.subr.bf16.mxu0 %v3455_v49  ;;  %2233 = vmatprep.subr.bf16.mxu1 %v3457_v50  ;;  %v3548_v49 = vld [vmem:[%s6246_s1 + $0x360] ss:$16 sps:$4 sm:$0xff]   ;;  %v3551_v50 = vld [vmem:[%s6246_s1 + $0x368] ss:$16 sps:$4 sm:$0xff]  }
  0x33   :  { %2019 = vmatpush1.bf16.msra.mxu0 %v3459_v51  ;;  %2234 = vmatpush1.bf16.msra.mxu1 %v3460_v52  ;;  %v3556_v51 = vld [vmem:[%s6246_s1 + $0x384] ss:$16 sps:$4 sm:$0xff]   ;;  %v3559_v52 = vld [vmem:[%s6246_s1 + $0x38c] ss:$16 sps:$4 sm:$0xff]  }
  0x34   :  { %2020 = vmatprep.subr.bf16.mxu0 %v3461_v53  ;;  %2235 = vmatprep.subr.bf16.mxu1 %v3463_v54  ;;  %v3554_v53 = vld [vmem:[%s6246_s1 + $0x380] ss:$16 sps:$4 sm:$0xff]   ;;  %v3557_v54 = vld [vmem:[%s6246_s1 + $0x388] ss:$16 sps:$4 sm:$0xff]  }
  0x37   :  { %2021 = vmatpush1.bf16.msra.mxu0 %v3465_v55  ;;  %2236 = vmatpush1.bf16.msra.mxu1 %v3466_v56  ;;  %v3562_v55 = vld [vmem:[%s6246_s1 + $0x3a4] ss:$16 sps:$4 sm:$0xff]   ;;  %v3565_v56 = vld [vmem:[%s6246_s1 + $0x3ac] ss:$16 sps:$4 sm:$0xff]  }
  0x38   :  { %2022 = vmatprep.subr.bf16.mxu0 %v3467_v57  ;;  %2237 = vmatprep.subr.bf16.mxu1 %v3469_v58  ;;  %v3560_v57 = vld [vmem:[%s6246_s1 + $0x3a0] ss:$16 sps:$4 sm:$0xff]   ;;  %v3563_v58 = vld [vmem:[%s6246_s1 + $0x3a8] ss:$16 sps:$4 sm:$0xff]  }
  0x3b   :  { %2023 = vmatpush1.bf16.msra.mxu0 %v3471_v59  ;;  %2238 = vmatpush1.bf16.msra.mxu1 %v3472_v60  ;;  %v3568_v59 = vld [vmem:[%s6246_s1 + $0x3c4] ss:$16 sps:$4 sm:$0xff]   ;;  %v3571_v60 = vld [vmem:[%s6246_s1 + $0x3cc] ss:$16 sps:$4 sm:$0xff]  }
  0x3c   :  { %2024 = vmatprep.subr.bf16.mxu0 %v3473_v61  ;;  %2239 = vmatprep.subr.bf16.mxu1 %v3475_v62  ;;  %v3566_v61 = vld [vmem:[%s6246_s1 + $0x3c0] ss:$16 sps:$4 sm:$0xff]   ;;  %v3569_v62 = vld [vmem:[%s6246_s1 + $0x3c8] ss:$16 sps:$4 sm:$0xff]  }
  0x3f   :  { %2025 = vmatpush1.bf16.msra.mxu0 %v3477_v63  ;;  %2240 = vmatpush1.bf16.msra.mxu1 %v3478_v0  ;;  %v3574_v63 = vld [vmem:[%s6246_s1 + $0x3e4] ss:$16 sps:$4 sm:$0xff]   ;;  %v3577_v0 = vld [vmem:[%s6246_s1 + $0x3ec] ss:$16 sps:$4 sm:$0xff]  }
  0x40   :  { %2037 = vmatprep.subr.bf16.mxu0 %v3484_v1  ;;  %2252 = vmatprep.subr.bf16.mxu1 %v3487_v2  ;;  %v3572_v1 = vld [vmem:[%s6246_s1 + $0x3e0] ss:$16 sps:$4 sm:$0xff]   ;;  %v3575_v2 = vld [vmem:[%s6246_s1 + $0x3e8] ss:$16 sps:$4 sm:$0xff]  }
  0x42   :  { %2027 = vmatmul.mubr.bf16.vlgmr.msra.gmra.mrb[0].mxu0 %v3479_v3  ;;  %2242 = vmatmul.mubr.bf16.vlgmr.msra.gmra.mrb[0].mxu1 %v3479_v3  ;;  %v3583_v3 = vld [vmem:[%s6246_s1 + $0x404] ss:$16 sps:$4 sm:$0xff]  }
  0x43   :  { %2038 = vmatpush1.bf16.msra.mxu0 %v3482_v4  ;;  %2253 = vmatpush1.bf16.msra.mxu1 %v3485_v5  ;;  %v3586_v4 = vld [vmem:[%s6246_s1 + $0x40c] ss:$16 sps:$4 sm:$0xff]   ;;  %v3578_v5 = vld [vmem:[%s6247_s0 + $0x8] ss:$40 sps:$4 sm:$0xff]  }
  0x44   :  { %2039 = vmatprep.subr.bf16.mxu0 %v3490_v6  ;;  %2254 = vmatprep.subr.bf16.mxu1 %v3493_v7  ;;  %v3581_v6 = vld [vmem:[%s6246_s1 + $0x400] ss:$16 sps:$4 sm:$0xff]   ;;  %v3584_v7 = vld [vmem:[%s6246_s1 + $0x408] ss:$16 sps:$4 sm:$0xff]  }
  0x45   :  { %2069 = vmatprep.mubr.bf16.mxu0 %v3580_v30  ;;  %2284 = vmatprep.mubr.bf16.mxu1 %v3580_v30  ;;  %v3622_v30 = vld [vmem:[%s6246_s1 + $0x4cc] ss:$16 sps:$4 sm:$0xff]  }
  0x47   :  { %2040 = vmatpush1.bf16.msra.mxu0 %v3488_v8  ;;  %2255 = vmatpush1.bf16.msra.mxu1 %v3491_v9  ;;  %v3589_v8 = vld [vmem:[%s6246_s1 + $0x424] ss:$16 sps:$4 sm:$0xff]   ;;  %v3592_v9 = vld [vmem:[%s6246_s1 + $0x42c] ss:$16 sps:$4 sm:$0xff]  }
  0x48   :  { %2041 = vmatprep.subr.bf16.mxu0 %v3496_v10  ;;  %2256 = vmatprep.subr.bf16.mxu1 %v3499_v11  ;;  %v3587_v10 = vld [vmem:[%s6246_s1 + $0x420] ss:$16 sps:$4 sm:$0xff]   ;;  %v3590_v11 = vld [vmem:[%s6246_s1 + $0x428] ss:$16 sps:$4 sm:$0xff]  }
  0x4b   :  { %2042 = vmatpush1.bf16.msra.mxu0 %v3494_v12  ;;  %2257 = vmatpush1.bf16.msra.mxu1 %v3497_v13  ;;  %v3679_v12 = vld [vmem:[%s6247_s0 + $0x14] ss:$40 sps:$4 sm:$0xff]  }
  0x4c   :  { %2043 = vmatprep.subr.bf16.mxu0 %v3502_v14  ;;  %2258 = vmatprep.subr.bf16.mxu1 %v3505_v15  ;;  %v3595_v13 = vld [vmem:[%s6246_s1 + $0x444] ss:$16 sps:$4 sm:$0xff]   ;;  %v3598_v14 = vld [vmem:[%s6246_s1 + $0x44c] ss:$16 sps:$4 sm:$0xff]   ;;  %v3593_v15 = vld [vmem:[%s6246_s1 + $0x440] ss:$16 sps:$4 sm:$0xff]  }
  0x4f   :  { %2044 = vmatpush1.bf16.msra.mxu0 %v3500_v16  ;;  %2259 = vmatpush1.bf16.msra.mxu1 %v3503_v17  ;;  %v3596_v16 = vld [vmem:[%s6246_s1 + $0x448] ss:$16 sps:$4 sm:$0xff]   ;;  %v3601_v17 = vld [vmem:[%s6246_s1 + $0x464] ss:$16 sps:$4 sm:$0xff]  }
  0x50   :  { %2045 = vmatprep.subr.bf16.mxu0 %v3508_v18  ;;  %2260 = vmatprep.subr.bf16.mxu1 %v3511_v19  ;;  %v3604_v18 = vld [vmem:[%s6246_s1 + $0x46c] ss:$16 sps:$4 sm:$0xff]   ;;  %v3599_v19 = vld [vmem:[%s6246_s1 + $0x460] ss:$16 sps:$4 sm:$0xff]  }
  0x53   :  { %2046 = vmatpush1.bf16.msra.mxu0 %v3506_v20  ;;  %2261 = vmatpush1.bf16.msra.mxu1 %v3509_v21  ;;  %v3602_v20 = vld [vmem:[%s6246_s1 + $0x468] ss:$16 sps:$4 sm:$0xff]   ;;  %v3607_v21 = vld [vmem:[%s6246_s1 + $0x484] ss:$16 sps:$4 sm:$0xff]  }
  0x54   :  { %2047 = vmatprep.subr.bf16.mxu0 %v3514_v22  ;;  %2262 = vmatprep.subr.bf16.mxu1 %v3517_v23  ;;  %v3610_v22 = vld [vmem:[%s6246_s1 + $0x48c] ss:$16 sps:$4 sm:$0xff]   ;;  %v3605_v23 = vld [vmem:[%s6246_s1 + $0x480] ss:$16 sps:$4 sm:$0xff]  }
  0x57   :  { %2048 = vmatpush1.bf16.msra.mxu0 %v3512_v24  ;;  %2263 = vmatpush1.bf16.msra.mxu1 %v3515_v25  ;;  %v3608_v24 = vld [vmem:[%s6246_s1 + $0x488] ss:$16 sps:$4 sm:$0xff]   ;;  %v3613_v25 = vld [vmem:[%s6246_s1 + $0x4a4] ss:$16 sps:$4 sm:$0xff]  }
  0x58   :  { %2049 = vmatprep.subr.bf16.mxu0 %v3520_v26  ;;  %2264 = vmatprep.subr.bf16.mxu1 %v3523_v27  ;;  %v3616_v26 = vld [vmem:[%s6246_s1 + $0x4ac] ss:$16 sps:$4 sm:$0xff]   ;;  %v3611_v27 = vld [vmem:[%s6246_s1 + $0x4a0] ss:$16 sps:$4 sm:$0xff]  }
  0x5b   :  { %2050 = vmatpush1.bf16.msra.mxu0 %v3518_v28  ;;  %2265 = vmatpush1.bf16.msra.mxu1 %v3521_v29  ;;  %v3614_v28 = vld [vmem:[%s6246_s1 + $0x4a8] ss:$16 sps:$4 sm:$0xff]   ;;  %v3619_v29 = vld [vmem:[%s6246_s1 + $0x4c4] ss:$16 sps:$4 sm:$0xff]  }
  0x5c   :  { %2051 = vmatprep.subr.bf16.mxu0 %v3526_v31  ;;  %2266 = vmatprep.subr.bf16.mxu1 %v3529_v32  ;;  %v3617_v31 = vld [vmem:[%s6246_s1 + $0x4c0] ss:$16 sps:$4 sm:$0xff]   ;;  %v3620_v32 = vld [vmem:[%s6246_s1 + $0x4c8] ss:$16 sps:$4 sm:$0xff]  }
  0x5f   :  { %2052 = vmatpush1.bf16.msra.mxu0 %v3524_v33  ;;  %2267 = vmatpush1.bf16.msra.mxu1 %v3527_v34  ;;  %v3625_v33 = vld [vmem:[%s6246_s1 + $0x4e4] ss:$16 sps:$4 sm:$0xff]   ;;  %v3628_v34 = vld [vmem:[%s6246_s1 + $0x4ec] ss:$16 sps:$4 sm:$0xff]  }
  0x60   :  { %2053 = vmatprep.subr.bf16.mxu0 %v3532_v35  ;;  %2268 = vmatprep.subr.bf16.mxu1 %v3535_v36  ;;  %v3623_v35 = vld [vmem:[%s6246_s1 + $0x4e0] ss:$16 sps:$4 sm:$0xff]   ;;  %v3626_v36 = vld [vmem:[%s6246_s1 + $0x4e8] ss:$16 sps:$4 sm:$0xff]  }
  0x63   :  { %2054 = vmatpush1.bf16.msra.mxu0 %v3530_v37  ;;  %2269 = vmatpush1.bf16.msra.mxu1 %v3533_v38  ;;  %v3631_v37 = vld [vmem:[%s6246_s1 + $0x504] ss:$16 sps:$4 sm:$0xff]   ;;  %v3634_v38 = vld [vmem:[%s6246_s1 + $0x50c] ss:$16 sps:$4 sm:$0xff]  }
  0x64   :  { %2055 = vmatprep.subr.bf16.mxu0 %v3538_v39  ;;  %2270 = vmatprep.subr.bf16.mxu1 %v3541_v40  ;;  %v3629_v39 = vld [vmem:[%s6246_s1 + $0x500] ss:$16 sps:$4 sm:$0xff]   ;;  %v3632_v40 = vld [vmem:[%s6246_s1 + $0x508] ss:$16 sps:$4 sm:$0xff]  }
  0x67   :  { %2056 = vmatpush1.bf16.msra.mxu0 %v3536_v41  ;;  %2271 = vmatpush1.bf16.msra.mxu1 %v3539_v42  ;;  %v3637_v41 = vld [vmem:[%s6246_s1 + $0x524] ss:$16 sps:$4 sm:$0xff]   ;;  %v3640_v42 = vld [vmem:[%s6246_s1 + $0x52c] ss:$16 sps:$4 sm:$0xff]  }
  0x68   :  { %2057 = vmatprep.subr.bf16.mxu0 %v3544_v43  ;;  %2272 = vmatprep.subr.bf16.mxu1 %v3547_v44  ;;  %v3635_v43 = vld [vmem:[%s6246_s1 + $0x520] ss:$16 sps:$4 sm:$0xff]   ;;  %v3638_v44 = vld [vmem:[%s6246_s1 + $0x528] ss:$16 sps:$4 sm:$0xff]  }
  0x6b   :  { %2058 = vmatpush1.bf16.msra.mxu0 %v3542_v45  ;;  %2273 = vmatpush1.bf16.msra.mxu1 %v3545_v46  ;;  %v3643_v45 = vld [vmem:[%s6246_s1 + $0x544] ss:$16 sps:$4 sm:$0xff]   ;;  %v3646_v46 = vld [vmem:[%s6246_s1 + $0x54c] ss:$16 sps:$4 sm:$0xff]  }
  0x6c   :  { %2059 = vmatprep.subr.bf16.mxu0 %v3550_v47  ;;  %2274 = vmatprep.subr.bf16.mxu1 %v3553_v48  ;;  %v3641_v47 = vld [vmem:[%s6246_s1 + $0x540] ss:$16 sps:$4 sm:$0xff]   ;;  %v3644_v48 = vld [vmem:[%s6246_s1 + $0x548] ss:$16 sps:$4 sm:$0xff]  }
  0x6f   :  { %2060 = vmatpush1.bf16.msra.mxu0 %v3548_v49  ;;  %2275 = vmatpush1.bf16.msra.mxu1 %v3551_v50  ;;  %v3649_v49 = vld [vmem:[%s6246_s1 + $0x564] ss:$16 sps:$4 sm:$0xff]   ;;  %v3652_v50 = vld [vmem:[%s6246_s1 + $0x56c] ss:$16 sps:$4 sm:$0xff]  }
  0x70   :  { %2061 = vmatprep.subr.bf16.mxu0 %v3556_v51  ;;  %2276 = vmatprep.subr.bf16.mxu1 %v3559_v52  ;;  %v3647_v51 = vld [vmem:[%s6246_s1 + $0x560] ss:$16 sps:$4 sm:$0xff]   ;;  %v3650_v52 = vld [vmem:[%s6246_s1 + $0x568] ss:$16 sps:$4 sm:$0xff]  }
  0x73   :  { %2062 = vmatpush1.bf16.msra.mxu0 %v3554_v53  ;;  %2277 = vmatpush1.bf16.msra.mxu1 %v3557_v54  ;;  %v3655_v53 = vld [vmem:[%s6246_s1 + $0x584] ss:$16 sps:$4 sm:$0xff]   ;;  %v3658_v54 = vld [vmem:[%s6246_s1 + $0x58c] ss:$16 sps:$4 sm:$0xff]  }
  0x74   :  { %2063 = vmatprep.subr.bf16.mxu0 %v3562_v55  ;;  %2278 = vmatprep.subr.bf16.mxu1 %v3565_v56  ;;  %v3653_v55 = vld [vmem:[%s6246_s1 + $0x580] ss:$16 sps:$4 sm:$0xff]   ;;  %v3656_v56 = vld [vmem:[%s6246_s1 + $0x588] ss:$16 sps:$4 sm:$0xff]  }
  0x77   :  { %2064 = vmatpush1.bf16.msra.mxu0 %v3560_v57  ;;  %2279 = vmatpush1.bf16.msra.mxu1 %v3563_v58  ;;  %v3661_v57 = vld [vmem:[%s6246_s1 + $0x5a4] ss:$16 sps:$4 sm:$0xff]   ;;  %v3664_v58 = vld [vmem:[%s6246_s1 + $0x5ac] ss:$16 sps:$4 sm:$0xff]  }
  0x78   :  { %2065 = vmatprep.subr.bf16.mxu0 %v3568_v59  ;;  %2280 = vmatprep.subr.bf16.mxu1 %v3571_v60  ;;  %v3659_v59 = vld [vmem:[%s6246_s1 + $0x5a0] ss:$16 sps:$4 sm:$0xff]   ;;  %v3662_v60 = vld [vmem:[%s6246_s1 + $0x5a8] ss:$16 sps:$4 sm:$0xff]  }
  0x7b   :  { %2066 = vmatpush1.bf16.msra.mxu0 %v3566_v61  ;;  %2281 = vmatpush1.bf16.msra.mxu1 %v3569_v62  ;;  %v3667_v61 = vld [vmem:[%s6246_s1 + $0x5c4] ss:$16 sps:$4 sm:$0xff]   ;;  %v3670_v62 = vld [vmem:[%s6246_s1 + $0x5cc] ss:$16 sps:$4 sm:$0xff]  }
  0x7c   :  { %2067 = vmatprep.subr.bf16.mxu0 %v3574_v63  ;;  %2282 = vmatprep.subr.bf16.mxu1 %v3577_v0  ;;  %v3665_v63 = vld [vmem:[%s6246_s1 + $0x5c0] ss:$16 sps:$4 sm:$0xff]   ;;  %v3668_v0 = vld [vmem:[%s6246_s1 + $0x5c8] ss:$16 sps:$4 sm:$0xff]  }
  0x7f   :  { %2068 = vmatpush1.bf16.msra.mxu0 %v3572_v1  ;;  %2283 = vmatpush1.bf16.msra.mxu1 %v3575_v2  ;;  %v3673_v1 = vld [vmem:[%s6246_s1 + $0x5e4] ss:$16 sps:$4 sm:$0xff]   ;;  %v3676_v2 = vld [vmem:[%s6246_s1 + $0x5ec] ss:$16 sps:$4 sm:$0xff]  }
  0x80   :  { %2080 = vmatprep.subr.bf16.mxu0 %v3583_v3  ;;  %2295 = vmatprep.subr.bf16.mxu1 %v3586_v4  ;;  %v3671_v3 = vld [vmem:[%s6246_s1 + $0x5e0] ss:$16 sps:$4 sm:$0xff]   ;;  %v3674_v4 = vld [vmem:[%s6246_s1 + $0x5e8] ss:$16 sps:$4 sm:$0xff]  }
  0x82   :  { %2070 = vmatmul.mubr.bf16.vlgmr.msra.gmra.mrb[0].mxu0 %v3578_v5  ;;  %2285 = vmatmul.mubr.bf16.vlgmr.msra.gmra.mrb[0].mxu1 %v3578_v5  ;;  %v3682_v5 = vld [vmem:[%s6246_s1 + $0x604] ss:$16 sps:$4 sm:$0xff]  }
  0x83   :  { %2081 = vmatpush1.bf16.msra.mxu0 %v3581_v6  ;;  %2296 = vmatpush1.bf16.msra.mxu1 %v3584_v7  ;;  %v3685_v6 = vld [vmem:[%s6246_s1 + $0x60c] ss:$16 sps:$4 sm:$0xff]   ;;  %v3677_v7 = vld [vmem:[%s6247_s0 + $0x10] ss:$40 sps:$4 sm:$0xff]  }
  0x84   :  { %2082 = vmatprep.subr.bf16.mxu0 %v3589_v8  ;;  %2297 = vmatprep.subr.bf16.mxu1 %v3592_v9  ;;  %v3680_v8 = vld [vmem:[%s6246_s1 + $0x600] ss:$16 sps:$4 sm:$0xff]   ;;  %v3683_v9 = vld [vmem:[%s6246_s1 + $0x608] ss:$16 sps:$4 sm:$0xff]  }
  0x85   :  { %2112 = vmatprep.mubr.bf16.mxu0 %v3679_v12  ;;  %2327 = vmatprep.mubr.bf16.mxu1 %v3679_v12  ;;  %v3778_v12 = vld [vmem:[%s6247_s0 + $0x1c] ss:$40 sps:$4 sm:$0xff]  }
  0x87   :  { %2083 = vmatpush1.bf16.msra.mxu0 %v3587_v10  ;;  %2298 = vmatpush1.bf16.msra.mxu1 %v3590_v11  ;;  %v3688_v10 = vld [vmem:[%s6246_s1 + $0x624] ss:$16 sps:$4 sm:$0xff]   ;;  %v3691_v11 = vld [vmem:[%s6246_s1 + $0x62c] ss:$16 sps:$4 sm:$0xff]  }
  0x88   :  { %2084 = vmatprep.subr.bf16.mxu0 %v3595_v13  ;;  %2299 = vmatprep.subr.bf16.mxu1 %v3598_v14  ;;  %v3686_v13 = vld [vmem:[%s6246_s1 + $0x620] ss:$16 sps:$4 sm:$0xff]   ;;  %v3689_v14 = vld [vmem:[%s6246_s1 + $0x628] ss:$16 sps:$4 sm:$0xff]  }
  0x8b   :  { %2085 = vmatpush1.bf16.msra.mxu0 %v3593_v15  ;;  %2300 = vmatpush1.bf16.msra.mxu1 %v3596_v16  ;;  %v3694_v15 = vld [vmem:[%s6246_s1 + $0x644] ss:$16 sps:$4 sm:$0xff]   ;;  %v3697_v16 = vld [vmem:[%s6246_s1 + $0x64c] ss:$16 sps:$4 sm:$0xff]  }
  0x8c   :  { %2086 = vmatprep.subr.bf16.mxu0 %v3601_v17  ;;  %2301 = vmatprep.subr.bf16.mxu1 %v3604_v18  ;;  %v3692_v17 = vld [vmem:[%s6246_s1 + $0x640] ss:$16 sps:$4 sm:$0xff]   ;;  %v3695_v18 = vld [vmem:[%s6246_s1 + $0x648] ss:$16 sps:$4 sm:$0xff]  }
  0x8f   :  { %2087 = vmatpush1.bf16.msra.mxu0 %v3599_v19  ;;  %2302 = vmatpush1.bf16.msra.mxu1 %v3602_v20  ;;  %v4753_v19 = vld [vmem:[%s6246_s1 + $0x664] ss:$16 sps:$4 sm:$0xff]   ;;  %v4758_v20 = vld [vmem:[%s6246_s1 + $0x66c] ss:$16 sps:$4 sm:$0xff]  }
  0x90   :  { %2088 = vmatprep.subr.bf16.mxu0 %v3607_v21  ;;  %2303 = vmatprep.subr.bf16.mxu1 %v3610_v22  ;;  %v4763_v21 = vld [vmem:[%s6246_s1 + $0x660] ss:$16 sps:$4 sm:$0xff]   ;;  %v4768_v22 = vld [vmem:[%s6246_s1 + $0x668] ss:$16 sps:$4 sm:$0xff]  }
  0x93   :  { %2089 = vmatpush1.bf16.msra.mxu0 %v3605_v23  ;;  %2304 = vmatpush1.bf16.msra.mxu1 %v3608_v24  ;;  %v4773_v23 = vld [vmem:[%s6246_s1 + $0x684] ss:$16 sps:$4 sm:$0xff]   ;;  %v4780_v24 = vld [vmem:[%s6246_s1 + $0x68c] ss:$16 sps:$4 sm:$0xff]  }
  0x94   :  { %2090 = vmatprep.subr.bf16.mxu0 %v3613_v25  ;;  %2305 = vmatprep.subr.bf16.mxu1 %v3616_v26  ;;  %v4785_v25 = vld [vmem:[%s6246_s1 + $0x680] ss:$16 sps:$4 sm:$0xff]   ;;  %v4790_v26 = vld [vmem:[%s6246_s1 + $0x688] ss:$16 sps:$4 sm:$0xff]  }
  0x97   :  { %2091 = vmatpush1.bf16.msra.mxu0 %v3611_v27  ;;  %2306 = vmatpush1.bf16.msra.mxu1 %v3614_v28  ;;  %v4797_v27 = vld [vmem:[%s6246_s1 + $0x6a4] ss:$16 sps:$4 sm:$0xff]   ;;  %v4804_v28 = vld [vmem:[%s6246_s1 + $0x6ac] ss:$16 sps:$4 sm:$0xff]  }
  0x98   :  { %2092 = vmatprep.subr.bf16.mxu0 %v3619_v29  ;;  %2307 = vmatprep.subr.bf16.mxu1 %v3622_v30  ;;  %v4809_v29 = vld [vmem:[%s6246_s1 + $0x6a0] ss:$16 sps:$4 sm:$0xff]   ;;  %v4814_v30 = vld [vmem:[%s6246_s1 + $0x6a8] ss:$16 sps:$4 sm:$0xff]  }
  0x9b   :  { %2093 = vmatpush1.bf16.msra.mxu0 %v3617_v31  ;;  %2308 = vmatpush1.bf16.msra.mxu1 %v3620_v32  ;;  %v4821_v31 = vld [vmem:[%s6246_s1 + $0x6c4] ss:$16 sps:$4 sm:$0xff]   ;;  %v4828_v32 = vld [vmem:[%s6246_s1 + $0x6cc] ss:$16 sps:$4 sm:$0xff]  }
  0x9c   :  { %2094 = vmatprep.subr.bf16.mxu0 %v3625_v33  ;;  %2309 = vmatprep.subr.bf16.mxu1 %v3628_v34  ;;  %v4833_v33 = vld [vmem:[%s6246_s1 + $0x6c0] ss:$16 sps:$4 sm:$0xff]   ;;  %v4838_v34 = vld [vmem:[%s6246_s1 + $0x6c8] ss:$16 sps:$4 sm:$0xff]  }
  0x9f   :  { %2095 = vmatpush1.bf16.msra.mxu0 %v3623_v35  ;;  %2310 = vmatpush1.bf16.msra.mxu1 %v3626_v36  ;;  %v4845_v35 = vld [vmem:[%s6246_s1 + $0x6e4] ss:$16 sps:$4 sm:$0xff]   ;;  %v4852_v36 = vld [vmem:[%s6246_s1 + $0x6ec] ss:$16 sps:$4 sm:$0xff]  }
  0xa0   :  { %2096 = vmatprep.subr.bf16.mxu0 %v3631_v37  ;;  %2311 = vmatprep.subr.bf16.mxu1 %v3634_v38  ;;  %v4857_v37 = vld [vmem:[%s6246_s1 + $0x6e0] ss:$16 sps:$4 sm:$0xff]   ;;  %v4862_v38 = vld [vmem:[%s6246_s1 + $0x6e8] ss:$16 sps:$4 sm:$0xff]  }
  0xa3   :  { %2097 = vmatpush1.bf16.msra.mxu0 %v3629_v39  ;;  %2312 = vmatpush1.bf16.msra.mxu1 %v3632_v40  ;;  %v4867_v39 = vld [vmem:[%s6246_s1 + $0x704] ss:$16 sps:$4 sm:$0xff]   ;;  %v4872_v40 = vld [vmem:[%s6246_s1 + $0x70c] ss:$16 sps:$4 sm:$0xff]  }
  0xa4   :  { %2098 = vmatprep.subr.bf16.mxu0 %v3637_v41  ;;  %2313 = vmatprep.subr.bf16.mxu1 %v3640_v42  ;;  %v4883_v41 = vld [vmem:[%s6246_s1 + $0x700] ss:$16 sps:$4 sm:$0xff]   ;;  %v4888_v42 = vld [vmem:[%s6246_s1 + $0x708] ss:$16 sps:$4 sm:$0xff]  }
  0xa7   :  { %2099 = vmatpush1.bf16.msra.mxu0 %v3635_v43  ;;  %2314 = vmatpush1.bf16.msra.mxu1 %v3638_v44  ;;  %v4895_v43 = vld [vmem:[%s6246_s1 + $0x724] ss:$16 sps:$4 sm:$0xff]   ;;  %v4900_v44 = vld [vmem:[%s6246_s1 + $0x72c] ss:$16 sps:$4 sm:$0xff]  }
  0xa8   :  { %2100 = vmatprep.subr.bf16.mxu0 %v3643_v45  ;;  %2315 = vmatprep.subr.bf16.mxu1 %v3646_v46  ;;  %v4907_v45 = vld [vmem:[%s6246_s1 + $0x720] ss:$16 sps:$4 sm:$0xff]   ;;  %v4912_v46 = vld [vmem:[%s6246_s1 + $0x728] ss:$16 sps:$4 sm:$0xff]  }
  0xab   :  { %2101 = vmatpush1.bf16.msra.mxu0 %v3641_v47  ;;  %2316 = vmatpush1.bf16.msra.mxu1 %v3644_v48  ;;  %v4919_v47 = vld [vmem:[%s6246_s1 + $0x744] ss:$16 sps:$4 sm:$0xff]   ;;  %v4924_v48 = vld [vmem:[%s6246_s1 + $0x74c] ss:$16 sps:$4 sm:$0xff]  }
  0xac   :  { %2102 = vmatprep.subr.bf16.mxu0 %v3649_v49  ;;  %2317 = vmatprep.subr.bf16.mxu1 %v3652_v50  ;;  %v4931_v49 = vld [vmem:[%s6246_s1 + $0x740] ss:$16 sps:$4 sm:$0xff]   ;;  %v4936_v50 = vld [vmem:[%s6246_s1 + $0x748] ss:$16 sps:$4 sm:$0xff]  }
  0xaf   :  { %2103 = vmatpush1.bf16.msra.mxu0 %v3647_v51  ;;  %2318 = vmatpush1.bf16.msra.mxu1 %v3650_v52  ;;  %v4943_v51 = vld [vmem:[%s6246_s1 + $0x764] ss:$16 sps:$4 sm:$0xff]   ;;  %v4948_v52 = vld [vmem:[%s6246_s1 + $0x76c] ss:$16 sps:$4 sm:$0xff]  }
  0xb0   :  { %2104 = vmatprep.subr.bf16.mxu0 %v3655_v53  ;;  %2319 = vmatprep.subr.bf16.mxu1 %v3658_v54  ;;  %v4955_v53 = vld [vmem:[%s6246_s1 + $0x760] ss:$16 sps:$4 sm:$0xff]   ;;  %v4960_v54 = vld [vmem:[%s6246_s1 + $0x768] ss:$16 sps:$4 sm:$0xff]  }
  0xb3   :  { %2105 = vmatpush1.bf16.msra.mxu0 %v3653_v55  ;;  %2320 = vmatpush1.bf16.msra.mxu1 %v3656_v56  ;;  %v4967_v55 = vld [vmem:[%s6246_s1 + $0x784] ss:$16 sps:$4 sm:$0xff]   ;;  %v4972_v56 = vld [vmem:[%s6246_s1 + $0x78c] ss:$16 sps:$4 sm:$0xff]  }
  0xb4   :  { %2106 = vmatprep.subr.bf16.mxu0 %v3661_v57  ;;  %2321 = vmatprep.subr.bf16.mxu1 %v3664_v58  ;;  %v4979_v57 = vld [vmem:[%s6246_s1 + $0x780] ss:$16 sps:$4 sm:$0xff]   ;;  %v4984_v58 = vld [vmem:[%s6246_s1 + $0x788] ss:$16 sps:$4 sm:$0xff]  }
  0xb7   :  { %2107 = vmatpush1.bf16.msra.mxu0 %v3659_v59  ;;  %2322 = vmatpush1.bf16.msra.mxu1 %v3662_v60  ;;  %v4991_v59 = vld [vmem:[%s6246_s1 + $0x7a4] ss:$16 sps:$4 sm:$0xff]   ;;  %v4996_v60 = vld [vmem:[%s6246_s1 + $0x7ac] ss:$16 sps:$4 sm:$0xff]  }
  0xb8   :  { %2108 = vmatprep.subr.bf16.mxu0 %v3667_v61  ;;  %2323 = vmatprep.subr.bf16.mxu1 %v3670_v62  ;;  %v5003_v61 = vld [vmem:[%s6246_s1 + $0x7a0] ss:$16 sps:$4 sm:$0xff]   ;;  %v5008_v62 = vld [vmem:[%s6246_s1 + $0x7a8] ss:$16 sps:$4 sm:$0xff]  }
  0xbb   :  { %2109 = vmatpush1.bf16.msra.mxu0 %v3665_v63  ;;  %2324 = vmatpush1.bf16.msra.mxu1 %v3668_v0  ;;  %v5015_v63 = vld [vmem:[%s6246_s1 + $0x7c4] ss:$16 sps:$4 sm:$0xff]   ;;  %v5020_v0 = vld [vmem:[%s6246_s1 + $0x7cc] ss:$16 sps:$4 sm:$0xff]  }
  0xbc   :  { %2110 = vmatprep.subr.bf16.mxu0 %v3673_v1  ;;  %2325 = vmatprep.subr.bf16.mxu1 %v3676_v2  ;;  %v5027_v1 = vld [vmem:[%s6246_s1 + $0x7c0] ss:$16 sps:$4 sm:$0xff]   ;;  %v5032_v2 = vld [vmem:[%s6246_s1 + $0x7c8] ss:$16 sps:$4 sm:$0xff]  }
  0xbf   :  { %2111 = vmatpush1.bf16.msra.mxu0 %v3671_v3  ;;  %2326 = vmatpush1.bf16.msra.mxu1 %v3674_v4  ;;  %v5039_v3 = vld [vmem:[%s6246_s1 + $0x7e4] ss:$16 sps:$4 sm:$0xff]   ;;  %v5044_v4 = vld [vmem:[%s6246_s1 + $0x7ec] ss:$16 sps:$4 sm:$0xff]  }
  0xc0   :  { %2123 = vmatprep.subr.bf16.mxu0 %v3682_v5  ;;  %2338 = vmatprep.subr.bf16.mxu1 %v3685_v6  ;;  %v5051_v5 = vld [vmem:[%s6246_s1 + $0x7e0] ss:$16 sps:$4 sm:$0xff]   ;;  %v5056_v6 = vld [vmem:[%s6246_s1 + $0x7e8] ss:$16 sps:$4 sm:$0xff]  }
  0xc2   :  { %2113 = vmatmul.mubr.bf16.vlgmr.msra.gmra.mrb[0].mxu0 %v3677_v7  ;;  %2328 = vmatmul.mubr.bf16.vlgmr.msra.gmra.mrb[0].mxu1 %v3677_v7  ;;  %v5063_v7 = vld [vmem:[%s6246_s1 + $0x804] ss:$16 sps:$4 sm:$0xff]  }
  0xc3   :  { %2124 = vmatpush1.bf16.msra.mxu0 %v3680_v8  ;;  %2339 = vmatpush1.bf16.msra.mxu1 %v3683_v9  ;;  %v5068_v8 = vld [vmem:[%s6246_s1 + $0x80c] ss:$16 sps:$4 sm:$0xff]   ;;  %v3776_v9 = vld [vmem:[%s6247_s0 + $0x18] ss:$40 sps:$4 sm:$0xff]  }
  0xc4   :  { %2125 = vmatprep.subr.bf16.mxu0 %v3688_v10  ;;  %2340 = vmatprep.subr.bf16.mxu1 %v3691_v11  ;;  %v5078_v10 = vld [vmem:[%s6246_s1 + $0x800] ss:$16 sps:$4 sm:$0xff]   ;;  %v5083_v11 = vld [vmem:[%s6246_s1 + $0x808] ss:$16 sps:$4 sm:$0xff]  }
  0xc5   :  { %2155 = vmatprep.mubr.bf16.mxu0 %v3778_v12  ;;  %2370 = vmatprep.mubr.bf16.mxu1 %v3778_v12  ;;  %v5090_v12 = vld [vmem:[%s6246_s1 + $0x824] ss:$16 sps:$4 sm:$0xff]  }
  0xc7   :  { %2126 = vmatpush1.bf16.msra.mxu0 %v3686_v13  ;;  %2341 = vmatpush1.bf16.msra.mxu1 %v3689_v14  ;;  %v5095_v13 = vld [vmem:[%s6246_s1 + $0x82c] ss:$16 sps:$4 sm:$0xff]  }
  0xc8   :  { %2127 = vmatprep.subr.bf16.mxu0 %v3694_v15  ;;  %2342 = vmatprep.subr.bf16.mxu1 %v3697_v16  ;;  %6308 = vst [vmem:[#allocation2_spill] sm:$0xff] %v5095_v13  ;;  %v3877_v14 = vld [vmem:[%s6247_s0 + $0x24] ss:$40 sps:$4 sm:$0xff]   ;;  %v5105_v15 = vld [vmem:[%s6246_s1 + $0x820] ss:$16 sps:$4 sm:$0xff]  }
  0xc9   :  { %6309 = vst [vmem:[#allocation3_spill] sm:$0xff] %v5105_v15  ;;  %v5110_v16 = vld [vmem:[%s6246_s1 + $0x828] ss:$16 sps:$4 sm:$0xff]  }
  0xca   :  { %6310 = vst [vmem:[#allocation4_spill] sm:$0xff] %v5110_v16 }
  0xcb   :  { %2128 = vmatpush1.bf16.msra.mxu0 %v3692_v17  ;;  %2343 = vmatpush1.bf16.msra.mxu1 %v3695_v18  ;;  %v5117_v17 = vld [vmem:[%s6246_s1 + $0x844] ss:$16 sps:$4 sm:$0xff]   ;;  %v5122_v18 = vld [vmem:[%s6246_s1 + $0x84c] ss:$16 sps:$4 sm:$0xff]  }
  0xcc   :  { %2129 = vmatprep.subr.bf16.mxu0 %v4753_v19  ;;  %2344 = vmatprep.subr.bf16.mxu1 %v4758_v20  ;;  %6311 = vst [vmem:[#allocation5_spill] sm:$0xff] %v5117_v17  ;;  %6312 = vst [vmem:[#allocation6_spill] sm:$0xff] %v5122_v18 }
  0xcf   :  { %2130 = vmatpush1.bf16.msra.mxu0 %v4763_v21  ;;  %2345 = vmatpush1.bf16.msra.mxu1 %v4768_v22 }
  0xd0   :  { %2131 = vmatprep.subr.bf16.mxu0 %v4773_v23  ;;  %2346 = vmatprep.subr.bf16.mxu1 %v4780_v24 }
  0xd3   :  { %2132 = vmatpush1.bf16.msra.mxu0 %v4785_v25  ;;  %2347 = vmatpush1.bf16.msra.mxu1 %v4790_v26 }
  0xd4   :  { %2133 = vmatprep.subr.bf16.mxu0 %v4797_v27  ;;  %2348 = vmatprep.subr.bf16.mxu1 %v4804_v28 }
  0xd7   :  { %2134 = vmatpush1.bf16.msra.mxu0 %v4809_v29  ;;  %2349 = vmatpush1.bf16.msra.mxu1 %v4814_v30 }
  0xd8   :  { %2135 = vmatprep.subr.bf16.mxu0 %v4821_v31  ;;  %2350 = vmatprep.subr.bf16.mxu1 %v4828_v32 }
  0xdb   :  { %2136 = vmatpush1.bf16.msra.mxu0 %v4833_v33  ;;  %2351 = vmatpush1.bf16.msra.mxu1 %v4838_v34 }
  0xdc   :  { %2137 = vmatprep.subr.bf16.mxu0 %v4845_v35  ;;  %2352 = vmatprep.subr.bf16.mxu1 %v4852_v36 }
  0xdf   :  { %2138 = vmatpush1.bf16.msra.mxu0 %v4857_v37  ;;  %2353 = vmatpush1.bf16.msra.mxu1 %v4862_v38 }
  0xe0   :  { %2139 = vmatprep.subr.bf16.mxu0 %v4867_v39  ;;  %2354 = vmatprep.subr.bf16.mxu1 %v4872_v40 }
  0xe3   :  { %2140 = vmatpush1.bf16.msra.mxu0 %v4883_v41  ;;  %2355 = vmatpush1.bf16.msra.mxu1 %v4888_v42 }
  0xe4   :  { %2141 = vmatprep.subr.bf16.mxu0 %v4895_v43  ;;  %2356 = vmatprep.subr.bf16.mxu1 %v4900_v44 }
  0xe7   :  { %2142 = vmatpush1.bf16.msra.mxu0 %v4907_v45  ;;  %2357 = vmatpush1.bf16.msra.mxu1 %v4912_v46 }
  0xe8   :  { %2143 = vmatprep.subr.bf16.mxu0 %v4919_v47  ;;  %2358 = vmatprep.subr.bf16.mxu1 %v4924_v48 }
  0xeb   :  { %2144 = vmatpush1.bf16.msra.mxu0 %v4931_v49  ;;  %2359 = vmatpush1.bf16.msra.mxu1 %v4936_v50 }
  0xec   :  { %2145 = vmatprep.subr.bf16.mxu0 %v4943_v51  ;;  %2360 = vmatprep.subr.bf16.mxu1 %v4948_v52 }
  0xef   :  { %2146 = vmatpush1.bf16.msra.mxu0 %v4955_v53  ;;  %2361 = vmatpush1.bf16.msra.mxu1 %v4960_v54 }
  0xf0   :  { %2147 = vmatprep.subr.bf16.mxu0 %v4967_v55  ;;  %2362 = vmatprep.subr.bf16.mxu1 %v4972_v56 }
  0xf3   :  { %2148 = vmatpush1.bf16.msra.mxu0 %v4979_v57  ;;  %2363 = vmatpush1.bf16.msra.mxu1 %v4984_v58 }
  0xf4   :  { %2149 = vmatprep.subr.bf16.mxu0 %v4991_v59  ;;  %2364 = vmatprep.subr.bf16.mxu1 %v4996_v60 }
  0xf7   :  { %2150 = vmatpush1.bf16.msra.mxu0 %v5003_v61  ;;  %2365 = vmatpush1.bf16.msra.mxu1 %v5008_v62 }
  0xf8   :  { %2151 = vmatprep.subr.bf16.mxu0 %v5015_v63  ;;  %2366 = vmatprep.subr.bf16.mxu1 %v5020_v0 }
  0xfb   :  { %2152 = vmatpush1.bf16.msra.mxu0 %v5027_v1  ;;  %2367 = vmatpush1.bf16.msra.mxu1 %v5032_v2 }
  0xfc   :  { %2153 = vmatprep.subr.bf16.mxu0 %v5039_v3  ;;  %2368 = vmatprep.subr.bf16.mxu1 %v5044_v4 }
  0xff   :  { %2154 = vmatpush1.bf16.msra.mxu0 %v5051_v5  ;;  %2369 = vmatpush1.bf16.msra.mxu1 %v5056_v6 }
 0x100   :  { %2166 = vmatprep.subr.bf16.mxu0 %v5063_v7  ;;  %2381 = vmatprep.subr.bf16.mxu1 %v5068_v8 }
 0x102   :  { %2156 = vmatmul.mubr.bf16.vlgmr.msra.gmra.mrb[0].mxu0 %v3776_v9  ;;  %2371 = vmatmul.mubr.bf16.vlgmr.msra.gmra.mrb[0].mxu1 %v3776_v9  ;;  %v5129_v9 = vld [vmem:[%s6246_s1 + $0x840] ss:$16 sps:$4 sm:$0xff]  }
 0x103   :  { %2167 = vmatpush1.bf16.msra.mxu0 %v5078_v10  ;;  %2382 = vmatpush1.bf16.msra.mxu1 %v5083_v11  ;;  %6313 = vst [vmem:[#allocation7_spill] sm:$0xff] %v5129_v9 }
 0x104   :  { %2168 = vmatprep.subr.bf16.mxu0 %v5090_v12  ;;  %2383 = vmatprep.subr.bf16.mxu1 %v5095_v13  ;;  %v5134_v13 = vld [vmem:[%s6246_s1 + $0x848] ss:$16 sps:$4 sm:$0xff]  }
 0x105   :  { %2198 = vmatprep.mubr.bf16.mxu0 %v3877_v14  ;;  %2413 = vmatprep.mubr.bf16.mxu1 %v3877_v14  ;;  %6314 = vst [vmem:[#allocation8_spill] sm:$0xff] %v5134_v13  ;;  %v5141_v14 = vld [vmem:[%s6246_s1 + $0x864] ss:$16 sps:$4 sm:$0xff]  }
 0x106   :  { %6315 = vst [vmem:[#allocation9_spill] sm:$0xff] %v5141_v14 }
 0x107   :  { %2169 = vmatpush1.bf16.msra.mxu0 %v5105_v15  ;;  %2384 = vmatpush1.bf16.msra.mxu1 %v5110_v16  ;;  %v5146_v16 = vld [vmem:[%s6246_s1 + $0x86c] ss:$16 sps:$4 sm:$0xff]  }
 0x108   :  { %2170 = vmatprep.subr.bf16.mxu0 %v5117_v17  ;;  %2385 = vmatprep.subr.bf16.mxu1 %v5122_v18  ;;  %6316 = vst [vmem:[#allocation10_spill] sm:$0xff] %v5146_v16  ;;  %v5153_v17 = vld [vmem:[%s6246_s1 + $0x860] ss:$16 sps:$4 sm:$0xff]   ;;  %v5158_v18 = vld [vmem:[%s6246_s1 + $0x868] ss:$16 sps:$4 sm:$0xff]  }
 0x109   :  { %6317 = vst [vmem:[#allocation11_spill] sm:$0xff] %v5153_v17  ;;  %6318 = vst [vmem:[#allocation12_spill] sm:$0xff] %v5158_v18  ;;  %v3894_v15 = vld [vmem:[%s6246_s1 + $0xc] ss:$16 sps:$4 sm:$0xff]  }
 0x10b   :  { %2171 = vmatpush1.bf16.msra.mxu0 %v5129_v9  ;;  %2386 = vmatpush1.bf16.msra.mxu1 %v5134_v13  ;;  %v5165_v9 = vld [vmem:[%s6246_s1 + $0x884] ss:$16 sps:$4 sm:$0xff]   ;;  %v5170_v13 = vld [vmem:[%s6246_s1 + $0x88c] ss:$16 sps:$4 sm:$0xff]  }
 0x10c   :  { %2172 = vmatprep.subr.bf16.mxu0 %v5141_v14  ;;  %2387 = vmatprep.subr.bf16.mxu1 %v5146_v16  ;;  %6319 = vst [vmem:[#allocation13_spill] sm:$0xff] %v5165_v9  ;;  %6320 = vst [vmem:[#allocation14_spill] sm:$0xff] %v5170_v13  ;;  %v5177_v14 = vld [vmem:[%s6246_s1 + $0x880] ss:$16 sps:$4 sm:$0xff]   ;;  %v5182_v16 = vld [vmem:[%s6246_s1 + $0x888] ss:$16 sps:$4 sm:$0xff]  }
 0x10d   :  { %6321 = vst [vmem:[#allocation15_spill] sm:$0xff] %v5177_v14  ;;  %6322 = vst [vmem:[#allocation16_spill] sm:$0xff] %v5182_v16 }
 0x10f   :  { %2173 = vmatpush1.bf16.msra.mxu0 %v5153_v17  ;;  %2388 = vmatpush1.bf16.msra.mxu1 %v5158_v18  ;;  %v5189_v17 = vld [vmem:[%s6246_s1 + $0x8a4] ss:$16 sps:$4 sm:$0xff]   ;;  %v5194_v18 = vld [vmem:[%s6246_s1 + $0x8ac] ss:$16 sps:$4 sm:$0xff]  }
 0x110   :  { %2174 = vmatprep.subr.bf16.mxu0 %v5165_v9  ;;  %2389 = vmatprep.subr.bf16.mxu1 %v5170_v13  ;;  %6323 = vst [vmem:[#allocation17_spill] sm:$0xff] %v5189_v17  ;;  %6324 = vst [vmem:[#allocation18_spill] sm:$0xff] %v5194_v18  ;;  %v5201_v9 = vld [vmem:[%s6246_s1 + $0x8a0] ss:$16 sps:$4 sm:$0xff]   ;;  %v5206_v13 = vld [vmem:[%s6246_s1 + $0x8a8] ss:$16 sps:$4 sm:$0xff]  }
 0x111   :  { %6325 = vst [vmem:[#allocation19_spill] sm:$0xff] %v5201_v9  ;;  %6326 = vst [vmem:[#allocation20_spill] sm:$0xff] %v5206_v13 }
 0x113   :  { %2175 = vmatpush1.bf16.msra.mxu0 %v5177_v14  ;;  %2390 = vmatpush1.bf16.msra.mxu1 %v5182_v16  ;;  %v5213_v14 = vld [vmem:[%s6246_s1 + $0x8c4] ss:$16 sps:$4 sm:$0xff]   ;;  %v5218_v16 = vld [vmem:[%s6246_s1 + $0x8cc] ss:$16 sps:$4 sm:$0xff]  }
 0x114   :  { %2176 = vmatprep.subr.bf16.mxu0 %v5189_v17  ;;  %2391 = vmatprep.subr.bf16.mxu1 %v5194_v18  ;;  %6327 = vst [vmem:[#allocation21_spill] sm:$0xff] %v5213_v14  ;;  %6328 = vst [vmem:[#allocation22_spill] sm:$0xff] %v5218_v16  ;;  %v5225_v17 = vld [vmem:[%s6246_s1 + $0x8c0] ss:$16 sps:$4 sm:$0xff]   ;;  %v5230_v18 = vld [vmem:[%s6246_s1 + $0x8c8] ss:$16 sps:$4 sm:$0xff]  }
 0x115   :  { %6329 = vst [vmem:[#allocation23_spill] sm:$0xff] %v5225_v17  ;;  %6330 = vst [vmem:[#allocation24_spill] sm:$0xff] %v5230_v18 }
 0x117   :  { %2177 = vmatpush1.bf16.msra.mxu0 %v5201_v9  ;;  %2392 = vmatpush1.bf16.msra.mxu1 %v5206_v13  ;;  %v5237_v9 = vld [vmem:[%s6246_s1 + $0x8e4] ss:$16 sps:$4 sm:$0xff]   ;;  %v5242_v13 = vld [vmem:[%s6246_s1 + $0x8ec] ss:$16 sps:$4 sm:$0xff]  }
 0x118   :  { %2178 = vmatprep.subr.bf16.mxu0 %v5213_v14  ;;  %2393 = vmatprep.subr.bf16.mxu1 %v5218_v16  ;;  %6331 = vst [vmem:[#allocation25_spill] sm:$0xff] %v5237_v9  ;;  %6332 = vst [vmem:[#allocation26_spill] sm:$0xff] %v5242_v13  ;;  %v5249_v14 = vld [vmem:[%s6246_s1 + $0x8e0] ss:$16 sps:$4 sm:$0xff]   ;;  %v5254_v16 = vld [vmem:[%s6246_s1 + $0x8e8] ss:$16 sps:$4 sm:$0xff]  }
 0x119   :  { %6333 = vst [vmem:[#allocation27_spill] sm:$0xff] %v5249_v14  ;;  %6334 = vst [vmem:[#allocation28_spill] sm:$0xff] %v5254_v16 }
 0x11b   :  { %2179 = vmatpush1.bf16.msra.mxu0 %v5225_v17  ;;  %2394 = vmatpush1.bf16.msra.mxu1 %v5230_v18  ;;  %v5261_v17 = vld [vmem:[%s6246_s1 + $0x904] ss:$16 sps:$4 sm:$0xff]   ;;  %v5266_v18 = vld [vmem:[%s6246_s1 + $0x90c] ss:$16 sps:$4 sm:$0xff]  }
 0x11c   :  { %2180 = vmatprep.subr.bf16.mxu0 %v5237_v9  ;;  %2395 = vmatprep.subr.bf16.mxu1 %v5242_v13  ;;  %6335 = vst [vmem:[#allocation29_spill] sm:$0xff] %v5261_v17  ;;  %6336 = vst [vmem:[#allocation30_spill] sm:$0xff] %v5266_v18  ;;  %v5273_v9 = vld [vmem:[%s6246_s1 + $0x900] ss:$16 sps:$4 sm:$0xff]   ;;  %v5278_v13 = vld [vmem:[%s6246_s1 + $0x908] ss:$16 sps:$4 sm:$0xff]  }
 0x11d   :  { %6337 = vst [vmem:[#allocation31_spill] sm:$0xff] %v5273_v9  ;;  %6338 = vst [vmem:[#allocation32_spill] sm:$0xff] %v5278_v13 }
 0x11f   :  { %2181 = vmatpush1.bf16.msra.mxu0 %v5249_v14  ;;  %2396 = vmatpush1.bf16.msra.mxu1 %v5254_v16  ;;  %v5285_v14 = vld [vmem:[%s6246_s1 + $0x924] ss:$16 sps:$4 sm:$0xff]   ;;  %v5290_v16 = vld [vmem:[%s6246_s1 + $0x92c] ss:$16 sps:$4 sm:$0xff]  }
 0x120   :  { %2182 = vmatprep.subr.bf16.mxu0 %v5261_v17  ;;  %2397 = vmatprep.subr.bf16.mxu1 %v5266_v18  ;;  %6339 = vst [vmem:[#allocation33_spill] sm:$0xff] %v5285_v14  ;;  %6340 = vst [vmem:[#allocation34_spill] sm:$0xff] %v5290_v16  ;;  %v5297_v17 = vld [vmem:[%s6246_s1 + $0x920] ss:$16 sps:$4 sm:$0xff]   ;;  %v5302_v18 = vld [vmem:[%s6246_s1 + $0x928] ss:$16 sps:$4 sm:$0xff]  }
 0x121   :  { %6341 = vst [vmem:[#allocation35_spill] sm:$0xff] %v5297_v17  ;;  %6342 = vst [vmem:[#allocation36_spill] sm:$0xff] %v5302_v18 }
 0x123   :  { %2183 = vmatpush1.bf16.msra.mxu0 %v5273_v9  ;;  %2398 = vmatpush1.bf16.msra.mxu1 %v5278_v13  ;;  %v5309_v9 = vld [vmem:[%s6246_s1 + $0x944] ss:$16 sps:$4 sm:$0xff]   ;;  %v5314_v13 = vld [vmem:[%s6246_s1 + $0x94c] ss:$16 sps:$4 sm:$0xff]  }
 0x124   :  { %2184 = vmatprep.subr.bf16.mxu0 %v5285_v14  ;;  %2399 = vmatprep.subr.bf16.mxu1 %v5290_v16  ;;  %6343 = vst [vmem:[#allocation37_spill] sm:$0xff] %v5309_v9  ;;  %6344 = vst [vmem:[#allocation38_spill] sm:$0xff] %v5314_v13  ;;  %v5321_v14 = vld [vmem:[%s6246_s1 + $0x940] ss:$16 sps:$4 sm:$0xff]   ;;  %v5326_v16 = vld [vmem:[%s6246_s1 + $0x948] ss:$16 sps:$4 sm:$0xff]  }
 0x125   :  { %6345 = vst [vmem:[#allocation39_spill] sm:$0xff] %v5321_v14  ;;  %6346 = vst [vmem:[#allocation40_spill] sm:$0xff] %v5326_v16 }
 0x127   :  { %2185 = vmatpush1.bf16.msra.mxu0 %v5297_v17  ;;  %2400 = vmatpush1.bf16.msra.mxu1 %v5302_v18  ;;  %v5333_v17 = vld [vmem:[%s6246_s1 + $0x964] ss:$16 sps:$4 sm:$0xff]   ;;  %v5338_v18 = vld [vmem:[%s6246_s1 + $0x96c] ss:$16 sps:$4 sm:$0xff]  }
 0x128   :  { %2186 = vmatprep.subr.bf16.mxu0 %v5309_v9  ;;  %2401 = vmatprep.subr.bf16.mxu1 %v5314_v13  ;;  %6347 = vst [vmem:[#allocation41_spill] sm:$0xff] %v5333_v17  ;;  %6348 = vst [vmem:[#allocation42_spill] sm:$0xff] %v5338_v18  ;;  %v5345_v9 = vld [vmem:[%s6246_s1 + $0x960] ss:$16 sps:$4 sm:$0xff]   ;;  %v5350_v13 = vld [vmem:[%s6246_s1 + $0x968] ss:$16 sps:$4 sm:$0xff]  }
 0x129   :  { %6349 = vst [vmem:[#allocation43_spill] sm:$0xff] %v5345_v9  ;;  %6350 = vst [vmem:[#allocation44_spill] sm:$0xff] %v5350_v13 }
 0x12b   :  { %2187 = vmatpush1.bf16.msra.mxu0 %v5321_v14  ;;  %2402 = vmatpush1.bf16.msra.mxu1 %v5326_v16  ;;  %v5357_v14 = vld [vmem:[%s6246_s1 + $0x984] ss:$16 sps:$4 sm:$0xff]   ;;  %v5362_v16 = vld [vmem:[%s6246_s1 + $0x98c] ss:$16 sps:$4 sm:$0xff]  }
 0x12c   :  { %2188 = vmatprep.subr.bf16.mxu0 %v5333_v17  ;;  %2403 = vmatprep.subr.bf16.mxu1 %v5338_v18  ;;  %6351 = vst [vmem:[#allocation45_spill] sm:$0xff] %v5357_v14  ;;  %6352 = vst [vmem:[#allocation46_spill] sm:$0xff] %v5362_v16  ;;  %v5369_v17 = vld [vmem:[%s6246_s1 + $0x980] ss:$16 sps:$4 sm:$0xff]   ;;  %v5374_v18 = vld [vmem:[%s6246_s1 + $0x988] ss:$16 sps:$4 sm:$0xff]  }
 0x12d   :  { %6353 = vst [vmem:[#allocation47_spill] sm:$0xff] %v5369_v17  ;;  %6354 = vst [vmem:[#allocation48_spill] sm:$0xff] %v5374_v18 }
 0x12f   :  { %2189 = vmatpush1.bf16.msra.mxu0 %v5345_v9  ;;  %2404 = vmatpush1.bf16.msra.mxu1 %v5350_v13  ;;  %v5381_v9 = vld [vmem:[%s6246_s1 + $0x9a4] ss:$16 sps:$4 sm:$0xff]   ;;  %v5386_v13 = vld [vmem:[%s6246_s1 + $0x9ac] ss:$16 sps:$4 sm:$0xff]  }
 0x130   :  { %2190 = vmatprep.subr.bf16.mxu0 %v5357_v14  ;;  %2405 = vmatprep.subr.bf16.mxu1 %v5362_v16  ;;  %6355 = vst [vmem:[#allocation49_spill] sm:$0xff] %v5381_v9  ;;  %6356 = vst [vmem:[#allocation50_spill] sm:$0xff] %v5386_v13  ;;  %v5393_v14 = vld [vmem:[%s6246_s1 + $0x9a0] ss:$16 sps:$4 sm:$0xff]   ;;  %v5398_v16 = vld [vmem:[%s6246_s1 + $0x9a8] ss:$16 sps:$4 sm:$0xff]  }
 0x131   :  { %6357 = vst [vmem:[#allocation51_spill] sm:$0xff] %v5393_v14  ;;  %6358 = vst [vmem:[#allocation52_spill] sm:$0xff] %v5398_v16 }
 0x133   :  { %2191 = vmatpush1.bf16.msra.mxu0 %v5369_v17  ;;  %2406 = vmatpush1.bf16.msra.mxu1 %v5374_v18  ;;  %v5405_v17 = vld [vmem:[%s6246_s1 + $0x9c4] ss:$16 sps:$4 sm:$0xff]   ;;  %v5410_v18 = vld [vmem:[%s6246_s1 + $0x9cc] ss:$16 sps:$4 sm:$0xff]  }
 0x134   :  { %2192 = vmatprep.subr.bf16.mxu0 %v5381_v9  ;;  %2407 = vmatprep.subr.bf16.mxu1 %v5386_v13  ;;  %6359 = vst [vmem:[#allocation53_spill] sm:$0xff] %v5405_v17  ;;  %6360 = vst [vmem:[#allocation54_spill] sm:$0xff] %v5410_v18  ;;  %v5417_v9 = vld [vmem:[%s6246_s1 + $0x9c0] ss:$16 sps:$4 sm:$0xff]   ;;  %v5422_v13 = vld [vmem:[%s6246_s1 + $0x9c8] ss:$16 sps:$4 sm:$0xff]  }
 0x135   :  { %6361 = vst [vmem:[#allocation55_spill] sm:$0xff] %v5417_v9  ;;  %6362 = vst [vmem:[#allocation56_spill] sm:$0xff] %v5422_v13 }
 0x137   :  { %2193 = vmatpush1.bf16.msra.mxu0 %v5393_v14  ;;  %2408 = vmatpush1.bf16.msra.mxu1 %v5398_v16  ;;  %v5429_v14 = vld [vmem:[%s6246_s1 + $0x9e4] ss:$16 sps:$4 sm:$0xff]   ;;  %v5434_v16 = vld [vmem:[%s6246_s1 + $0x9ec] ss:$16 sps:$4 sm:$0xff]  }
 0x138   :  { %2194 = vmatprep.subr.bf16.mxu0 %v5405_v17  ;;  %2409 = vmatprep.subr.bf16.mxu1 %v5410_v18  ;;  %6363 = vst [vmem:[#allocation57_spill] sm:$0xff] %v5434_v16  ;;  %v5441_v17 = vld [vmem:[%s6246_s1 + $0x9e0] ss:$16 sps:$4 sm:$0xff]   ;;  %v5446_v18 = vld [vmem:[%s6246_s1 + $0x9e8] ss:$16 sps:$4 sm:$0xff]  }
 0x139   :  { %6364 = vst [vmem:[#allocation58_spill] sm:$0xff] %v5441_v17  ;;  %6365 = vst [vmem:[#allocation59_spill] sm:$0xff] %v5446_v18 }
 0x13b   :  { %2195 = vmatpush1.bf16.msra.mxu0 %v5417_v9  ;;  %2410 = vmatpush1.bf16.msra.mxu1 %v5422_v13  ;;  %v3875_v9 = vld [vmem:[%s6247_s0 + $0x20] ss:$40 sps:$4 sm:$0xff]   ;;  %v3893_v13 = vld [vmem:[%s6246_s1 + $0x4] ss:$16 sps:$4 sm:$0xff]  }
 0x13c   :  { %2196 = vmatprep.subr.bf16.mxu0 %v5429_v14  ;;  %2411 = vmatprep.subr.bf16.mxu1 %v5434_v16  ;;  %v3880_v16 = vld [vmem:[%s6247_s0 + $0x54] ss:$40 sps:$4 sm:$0xff]  }
 0x13f   :  { %2197 = vmatpush1.bf16.msra.mxu0 %v5441_v17  ;;  %2412 = vmatpush1.bf16.msra.mxu1 %v5446_v18  ;;  %v3895_v18 = vld [vmem:[%s6246_s1] ss:$16 sps:$4 sm:$0xff]   ;;  %v3898_v17 = vld [vmem:[%s6246_s1 + $0x2c] ss:$16 sps:$4 sm:$0xff]  }
 0x140   :  { %2485 = vmatprep.subr.bf16.mxu0 %v3893_v13  ;;  %2700 = vmatprep.subr.bf16.mxu1 %v3894_v15  ;;  %v3896_v13 = vld [vmem:[%s6246_s1 + $0x8] ss:$16 sps:$4 sm:$0xff]   ;;  %v3897_v15 = vld [vmem:[%s6246_s1 + $0x24] ss:$16 sps:$4 sm:$0xff]  }
 0x142   :  { %2199 = vmatmul.mubr.bf16.vlgmr.msra.gmra.mrb[0].mxu0 %v3875_v9  ;;  %2414 = vmatmul.mubr.bf16.vlgmr.msra.gmra.mrb[0].mxu1 %v3875_v9  ;;  %v3900_v9 = vld [vmem:[%s6246_s1 + $0x28] ss:$16 sps:$4 sm:$0xff]  }
 0x143   :  { %2486 = vmatpush1.bf16.msra.mxu0 %v3895_v18  ;;  %2701 = vmatpush1.bf16.msra.mxu1 %v3896_v13  ;;  %v3899_v18 = vld [vmem:[%s6246_s1 + $0x20] ss:$16 sps:$4 sm:$0xff]   ;;  %v3901_v13 = vld [vmem:[%s6246_s1 + $0x44] ss:$16 sps:$4 sm:$0xff]  }
 0x144   :  { %2487 = vmatprep.subr.bf16.mxu0 %v3897_v15  ;;  %2702 = vmatprep.subr.bf16.mxu1 %v3898_v17  ;;  %v3902_v17 = vld [vmem:[%s6246_s1 + $0x4c] ss:$16 sps:$4 sm:$0xff]   ;;  %v3904_v15 = vld [vmem:[%s6246_s1 + $0x48] ss:$16 sps:$4 sm:$0xff]  }
 0x145   :  { %2517 = vmatprep.mubr.bf16.mxu0 %v3880_v16  ;;  %2732 = vmatprep.mubr.bf16.mxu1 %v3880_v16  ;;  %v3903_v16 = vld [vmem:[%s6246_s1 + $0x40] ss:$16 sps:$4 sm:$0xff]  }
 0x147   :  { %2488 = vmatpush1.bf16.msra.mxu0 %v3899_v18  ;;  %2703 = vmatpush1.bf16.msra.mxu1 %v3900_v9  ;;  %v3905_v18 = vld [vmem:[%s6246_s1 + $0x64] ss:$16 sps:$4 sm:$0xff]   ;;  %v3906_v9 = vld [vmem:[%s6246_s1 + $0x6c] ss:$16 sps:$4 sm:$0xff]  }
 0x148   :  { %2489 = vmatprep.subr.bf16.mxu0 %v3901_v13  ;;  %2704 = vmatprep.subr.bf16.mxu1 %v3902_v17  ;;  %v3907_v13 = vld [vmem:[%s6246_s1 + $0x60] ss:$16 sps:$4 sm:$0xff]   ;;  %v3908_v17 = vld [vmem:[%s6246_s1 + $0x68] ss:$16 sps:$4 sm:$0xff]  }
 0x14b   :  { %2490 = vmatpush1.bf16.msra.mxu0 %v3903_v16  ;;  %2705 = vmatpush1.bf16.msra.mxu1 %v3904_v15  ;;  %v3909_v16 = vld [vmem:[%s6246_s1 + $0x84] ss:$16 sps:$4 sm:$0xff]   ;;  %v3910_v15 = vld [vmem:[%s6246_s1 + $0x8c] ss:$16 sps:$4 sm:$0xff]  }
 0x14c   :  { %2491 = vmatprep.subr.bf16.mxu0 %v3905_v18  ;;  %2706 = vmatprep.subr.bf16.mxu1 %v3906_v9  ;;  %v3911_v18 = vld [vmem:[%s6246_s1 + $0x80] ss:$16 sps:$4 sm:$0xff]   ;;  %v3912_v9 = vld [vmem:[%s6246_s1 + $0x88] ss:$16 sps:$4 sm:$0xff]  }
 0x14f   :  { %2492 = vmatpush1.bf16.msra.mxu0 %v3907_v13  ;;  %2707 = vmatpush1.bf16.msra.mxu1 %v3908_v17  ;;  %v3913_v13 = vld [vmem:[%s6246_s1 + $0xa4] ss:$16 sps:$4 sm:$0xff]   ;;  %v3914_v17 = vld [vmem:[%s6246_s1 + $0xac] ss:$16 sps:$4 sm:$0xff]  }
 0x150   :  { %2493 = vmatprep.subr.bf16.mxu0 %v3909_v16  ;;  %2708 = vmatprep.subr.bf16.mxu1 %v3910_v15  ;;  %v3915_v16 = vld [vmem:[%s6246_s1 + $0xa0] ss:$16 sps:$4 sm:$0xff]   ;;  %v3916_v15 = vld [vmem:[%s6246_s1 + $0xa8] ss:$16 sps:$4 sm:$0xff]  }
 0x153   :  { %2494 = vmatpush1.bf16.msra.mxu0 %v3911_v18  ;;  %2709 = vmatpush1.bf16.msra.mxu1 %v3912_v9  ;;  %v3917_v18 = vld [vmem:[%s6246_s1 + $0xc4] ss:$16 sps:$4 sm:$0xff]   ;;  %v3918_v9 = vld [vmem:[%s6246_s1 + $0xcc] ss:$16 sps:$4 sm:$0xff]  }
 0x154   :  { %2495 = vmatprep.subr.bf16.mxu0 %v3913_v13  ;;  %2710 = vmatprep.subr.bf16.mxu1 %v3914_v17  ;;  %v3919_v13 = vld [vmem:[%s6246_s1 + $0xc0] ss:$16 sps:$4 sm:$0xff]   ;;  %v3920_v17 = vld [vmem:[%s6246_s1 + $0xc8] ss:$16 sps:$4 sm:$0xff]  }
 0x157   :  { %2496 = vmatpush1.bf16.msra.mxu0 %v3915_v16  ;;  %2711 = vmatpush1.bf16.msra.mxu1 %v3916_v15  ;;  %v3921_v16 = vld [vmem:[%s6246_s1 + $0xe4] ss:$16 sps:$4 sm:$0xff]   ;;  %v3922_v15 = vld [vmem:[%s6246_s1 + $0xec] ss:$16 sps:$4 sm:$0xff]  }
 0x158   :  { %2497 = vmatprep.subr.bf16.mxu0 %v3917_v18  ;;  %2712 = vmatprep.subr.bf16.mxu1 %v3918_v9  ;;  %v3923_v18 = vld [vmem:[%s6246_s1 + $0xe0] ss:$16 sps:$4 sm:$0xff]   ;;  %v3924_v9 = vld [vmem:[%s6246_s1 + $0xe8] ss:$16 sps:$4 sm:$0xff]  }
 0x15b   :  { %2498 = vmatpush1.bf16.msra.mxu0 %v3919_v13  ;;  %2713 = vmatpush1.bf16.msra.mxu1 %v3920_v17  ;;  %v3925_v13 = vld [vmem:[%s6246_s1 + $0x104] ss:$16 sps:$4 sm:$0xff]   ;;  %v3926_v17 = vld [vmem:[%s6246_s1 + $0x10c] ss:$16 sps:$4 sm:$0xff]  }
 0x15c   :  { %2499 = vmatprep.subr.bf16.mxu0 %v3921_v16  ;;  %2714 = vmatprep.subr.bf16.mxu1 %v3922_v15  ;;  %v3927_v16 = vld [vmem:[%s6246_s1 + $0x100] ss:$16 sps:$4 sm:$0xff]   ;;  %v3928_v15 = vld [vmem:[%s6246_s1 + $0x108] ss:$16 sps:$4 sm:$0xff]  }
 0x15f   :  { %2500 = vmatpush1.bf16.msra.mxu0 %v3923_v18  ;;  %2715 = vmatpush1.bf16.msra.mxu1 %v3924_v9  ;;  %v3929_v18 = vld [vmem:[%s6246_s1 + $0x124] ss:$16 sps:$4 sm:$0xff]   ;;  %v3930_v9 = vld [vmem:[%s6246_s1 + $0x12c] ss:$16 sps:$4 sm:$0xff]  }
 0x160   :  { %2501 = vmatprep.subr.bf16.mxu0 %v3925_v13  ;;  %2716 = vmatprep.subr.bf16.mxu1 %v3926_v17  ;;  %v3931_v13 = vld [vmem:[%s6246_s1 + $0x120] ss:$16 sps:$4 sm:$0xff]   ;;  %v3932_v17 = vld [vmem:[%s6246_s1 + $0x128] ss:$16 sps:$4 sm:$0xff]  }
 0x163   :  { %2502 = vmatpush1.bf16.msra.mxu0 %v3927_v16  ;;  %2717 = vmatpush1.bf16.msra.mxu1 %v3928_v15  ;;  %v3933_v16 = vld [vmem:[%s6246_s1 + $0x144] ss:$16 sps:$4 sm:$0xff]   ;;  %v3934_v15 = vld [vmem:[%s6246_s1 + $0x14c] ss:$16 sps:$4 sm:$0xff]  }
 0x164   :  { %2503 = vmatprep.subr.bf16.mxu0 %v3929_v18  ;;  %2718 = vmatprep.subr.bf16.mxu1 %v3930_v9  ;;  %v3935_v18 = vld [vmem:[%s6246_s1 + $0x140] ss:$16 sps:$4 sm:$0xff]   ;;  %v3936_v9 = vld [vmem:[%s6246_s1 + $0x148] ss:$16 sps:$4 sm:$0xff]  }
 0x167   :  { %2504 = vmatpush1.bf16.msra.mxu0 %v3931_v13  ;;  %2719 = vmatpush1.bf16.msra.mxu1 %v3932_v17  ;;  %v3937_v13 = vld [vmem:[%s6246_s1 + $0x164] ss:$16 sps:$4 sm:$0xff]   ;;  %v3938_v17 = vld [vmem:[%s6246_s1 + $0x16c] ss:$16 sps:$4 sm:$0xff]  }
 0x168   :  { %2505 = vmatprep.subr.bf16.mxu0 %v3933_v16  ;;  %2720 = vmatprep.subr.bf16.mxu1 %v3934_v15  ;;  %v3939_v16 = vld [vmem:[%s6246_s1 + $0x160] ss:$16 sps:$4 sm:$0xff]   ;;  %v3940_v15 = vld [vmem:[%s6246_s1 + $0x168] ss:$16 sps:$4 sm:$0xff]  }
 0x16b   :  { %2506 = vmatpush1.bf16.msra.mxu0 %v3935_v18  ;;  %2721 = vmatpush1.bf16.msra.mxu1 %v3936_v9  ;;  %v3941_v18 = vld [vmem:[%s6246_s1 + $0x184] ss:$16 sps:$4 sm:$0xff]   ;;  %v3942_v9 = vld [vmem:[%s6246_s1 + $0x18c] ss:$16 sps:$4 sm:$0xff]  }
 0x16c   :  { %2507 = vmatprep.subr.bf16.mxu0 %v3937_v13  ;;  %2722 = vmatprep.subr.bf16.mxu1 %v3938_v17  ;;  %v3943_v13 = vld [vmem:[%s6246_s1 + $0x180] ss:$16 sps:$4 sm:$0xff]   ;;  %v3944_v17 = vld [vmem:[%s6246_s1 + $0x188] ss:$16 sps:$4 sm:$0xff]  }
 0x16f   :  { %2508 = vmatpush1.bf16.msra.mxu0 %v3939_v16  ;;  %2723 = vmatpush1.bf16.msra.mxu1 %v3940_v15  ;;  %v3945_v16 = vld [vmem:[%s6246_s1 + $0x1a4] ss:$16 sps:$4 sm:$0xff]   ;;  %v3946_v15 = vld [vmem:[%s6246_s1 + $0x1ac] ss:$16 sps:$4 sm:$0xff]  }
 0x170   :  { %2509 = vmatprep.subr.bf16.mxu0 %v3941_v18  ;;  %2724 = vmatprep.subr.bf16.mxu1 %v3942_v9  ;;  %v3947_v18 = vld [vmem:[%s6246_s1 + $0x1a0] ss:$16 sps:$4 sm:$0xff]   ;;  %v3948_v9 = vld [vmem:[%s6246_s1 + $0x1a8] ss:$16 sps:$4 sm:$0xff]  }
 0x173   :  { %2510 = vmatpush1.bf16.msra.mxu0 %v3943_v13  ;;  %2725 = vmatpush1.bf16.msra.mxu1 %v3944_v17  ;;  %v3949_v13 = vld [vmem:[%s6246_s1 + $0x1c4] ss:$16 sps:$4 sm:$0xff]   ;;  %v3950_v17 = vld [vmem:[%s6246_s1 + $0x1cc] ss:$16 sps:$4 sm:$0xff]  }
 0x174   :  { %2511 = vmatprep.subr.bf16.mxu0 %v3945_v16  ;;  %2726 = vmatprep.subr.bf16.mxu1 %v3946_v15  ;;  %v3951_v16 = vld [vmem:[%s6246_s1 + $0x1c0] ss:$16 sps:$4 sm:$0xff]   ;;  %v3952_v15 = vld [vmem:[%s6246_s1 + $0x1c8] ss:$16 sps:$4 sm:$0xff]  }
 0x177   :  { %2512 = vmatpush1.bf16.msra.mxu0 %v3947_v18  ;;  %2727 = vmatpush1.bf16.msra.mxu1 %v3948_v9  ;;  %v3953_v18 = vld [vmem:[%s6246_s1 + $0x1e4] ss:$16 sps:$4 sm:$0xff]   ;;  %v3954_v9 = vld [vmem:[%s6246_s1 + $0x1ec] ss:$16 sps:$4 sm:$0xff]  }
 0x178   :  { %2513 = vmatprep.subr.bf16.mxu0 %v3949_v13  ;;  %2728 = vmatprep.subr.bf16.mxu1 %v3950_v17  ;;  %v3878_v13 = vld [vmem:[%s6247_s0 + $0x50] ss:$40 sps:$4 sm:$0xff]  }
 0x179   :  { %v3955_v17 = vld [vmem:[%s6246_s1 + $0x1e0] ss:$16 sps:$4 sm:$0xff]  }
 0x17b   :  { %2514 = vmatpush1.bf16.msra.mxu0 %v3951_v16  ;;  %2729 = vmatpush1.bf16.msra.mxu1 %v3952_v15  ;;  %v3956_v16 = vld [vmem:[%s6246_s1 + $0x1e8] ss:$16 sps:$4 sm:$0xff]   ;;  %v3957_v15 = vld [vmem:[%s6246_s1 + $0x204] ss:$16 sps:$4 sm:$0xff]  }
 0x17c   :  { %2515 = vmatprep.subr.bf16.mxu0 %v3953_v18  ;;  %2730 = vmatprep.subr.bf16.mxu1 %v3954_v9  ;;  %v3958_v18 = vld [vmem:[%s6246_s1 + $0x20c] ss:$16 sps:$4 sm:$0xff]  }
 0x17d   :  { %v3883_v9 = vld [vmem:[%s6247_s0 + $0x5c] ss:$40 sps:$4 sm:$0xff]  }
 0x17f   :  { %2516 = vmatpush1.bf16.msra.mxu0 %v3955_v17  ;;  %2731 = vmatpush1.bf16.msra.mxu1 %v3956_v16  ;;  %v3959_v17 = vld [vmem:[%s6246_s1 + $0x200] ss:$16 sps:$4 sm:$0xff]   ;;  %v3960_v16 = vld [vmem:[%s6246_s1 + $0x208] ss:$16 sps:$4 sm:$0xff]  }
 0x180   :  { %2528 = vmatprep.subr.bf16.mxu0 %v3957_v15  ;;  %2743 = vmatprep.subr.bf16.mxu1 %v3958_v18  ;;  %v3961_v15 = vld [vmem:[%s6246_s1 + $0x224] ss:$16 sps:$4 sm:$0xff]   ;;  %v3962_v18 = vld [vmem:[%s6246_s1 + $0x22c] ss:$16 sps:$4 sm:$0xff]  }
 0x182   :  { %2518 = vmatmul.mubr.bf16.vlgmr.msra.gmra.mrb[4].mxu0 %v3878_v13  ;;  %2733 = vmatmul.mubr.bf16.vlgmr.msra.gmra.mrb[4].mxu1 %v3878_v13  ;;  %v3963_v13 = vld [vmem:[%s6246_s1 + $0x220] ss:$16 sps:$4 sm:$0xff]  }
 0x183   :  { %2529 = vmatpush1.bf16.msra.mxu0 %v3959_v17  ;;  %2744 = vmatpush1.bf16.msra.mxu1 %v3960_v16  ;;  %v3964_v17 = vld [vmem:[%s6246_s1 + $0x228] ss:$16 sps:$4 sm:$0xff]   ;;  %v3965_v16 = vld [vmem:[%s6246_s1 + $0x244] ss:$16 sps:$4 sm:$0xff]  }
 0x184   :  { %2530 = vmatprep.subr.bf16.mxu0 %v3961_v15  ;;  %2745 = vmatprep.subr.bf16.mxu1 %v3962_v18  ;;  %v3966_v15 = vld [vmem:[%s6246_s1 + $0x24c] ss:$16 sps:$4 sm:$0xff]   ;;  %v3968_v18 = vld [vmem:[%s6246_s1 + $0x248] ss:$16 sps:$4 sm:$0xff]  }
 0x185   :  { %2560 = vmatprep.mubr.bf16.mxu0 %v3883_v9  ;;  %2775 = vmatprep.mubr.bf16.mxu1 %v3883_v9  ;;  %v3967_v9 = vld [vmem:[%s6246_s1 + $0x240] ss:$16 sps:$4 sm:$0xff]  }
 0x187   :  { %2531 = vmatpush1.bf16.msra.mxu0 %v3963_v13  ;;  %2746 = vmatpush1.bf16.msra.mxu1 %v3964_v17  ;;  %v3969_v13 = vld [vmem:[%s6246_s1 + $0x264] ss:$16 sps:$4 sm:$0xff]   ;;  %v3970_v17 = vld [vmem:[%s6246_s1 + $0x26c] ss:$16 sps:$4 sm:$0xff]  }
 0x188   :  { %2532 = vmatprep.subr.bf16.mxu0 %v3965_v16  ;;  %2747 = vmatprep.subr.bf16.mxu1 %v3966_v15  ;;  %v3971_v16 = vld [vmem:[%s6246_s1 + $0x260] ss:$16 sps:$4 sm:$0xff]   ;;  %v3972_v15 = vld [vmem:[%s6246_s1 + $0x268] ss:$16 sps:$4 sm:$0xff]  }
 0x18b   :  { %2533 = vmatpush1.bf16.msra.mxu0 %v3967_v9  ;;  %2748 = vmatpush1.bf16.msra.mxu1 %v3968_v18  ;;  %v3973_v9 = vld [vmem:[%s6246_s1 + $0x284] ss:$16 sps:$4 sm:$0xff]   ;;  %v3974_v18 = vld [vmem:[%s6246_s1 + $0x28c] ss:$16 sps:$4 sm:$0xff]  }
 0x18c   :  { %2534 = vmatprep.subr.bf16.mxu0 %v3969_v13  ;;  %2749 = vmatprep.subr.bf16.mxu1 %v3970_v17  ;;  %v3975_v13 = vld [vmem:[%s6246_s1 + $0x280] ss:$16 sps:$4 sm:$0xff]   ;;  %v3976_v17 = vld [vmem:[%s6246_s1 + $0x288] ss:$16 sps:$4 sm:$0xff]  }
 0x18f   :  { %2535 = vmatpush1.bf16.msra.mxu0 %v3971_v16  ;;  %2750 = vmatpush1.bf16.msra.mxu1 %v3972_v15  ;;  %v3977_v16 = vld [vmem:[%s6246_s1 + $0x2a4] ss:$16 sps:$4 sm:$0xff]   ;;  %v3978_v15 = vld [vmem:[%s6246_s1 + $0x2ac] ss:$16 sps:$4 sm:$0xff]  }
 0x190   :  { %2536 = vmatprep.subr.bf16.mxu0 %v3973_v9  ;;  %2751 = vmatprep.subr.bf16.mxu1 %v3974_v18  ;;  %v3979_v9 = vld [vmem:[%s6246_s1 + $0x2a0] ss:$16 sps:$4 sm:$0xff]   ;;  %v3980_v18 = vld [vmem:[%s6246_s1 + $0x2a8] ss:$16 sps:$4 sm:$0xff]  }
 0x193   :  { %2537 = vmatpush1.bf16.msra.mxu0 %v3975_v13  ;;  %2752 = vmatpush1.bf16.msra.mxu1 %v3976_v17  ;;  %v3981_v13 = vld [vmem:[%s6246_s1 + $0x2c4] ss:$16 sps:$4 sm:$0xff]   ;;  %v3982_v17 = vld [vmem:[%s6246_s1 + $0x2cc] ss:$16 sps:$4 sm:$0xff]  }
 0x194   :  { %2538 = vmatprep.subr.bf16.mxu0 %v3977_v16  ;;  %2753 = vmatprep.subr.bf16.mxu1 %v3978_v15  ;;  %v3983_v16 = vld [vmem:[%s6246_s1 + $0x2c0] ss:$16 sps:$4 sm:$0xff]   ;;  %v3984_v15 = vld [vmem:[%s6246_s1 + $0x2c8] ss:$16 sps:$4 sm:$0xff]  }
 0x197   :  { %2539 = vmatpush1.bf16.msra.mxu0 %v3979_v9  ;;  %2754 = vmatpush1.bf16.msra.mxu1 %v3980_v18  ;;  %v3985_v9 = vld [vmem:[%s6246_s1 + $0x2e4] ss:$16 sps:$4 sm:$0xff]   ;;  %v3986_v18 = vld [vmem:[%s6246_s1 + $0x2ec] ss:$16 sps:$4 sm:$0xff]  }
 0x198   :  { %2540 = vmatprep.subr.bf16.mxu0 %v3981_v13  ;;  %2755 = vmatprep.subr.bf16.mxu1 %v3982_v17  ;;  %v3987_v13 = vld [vmem:[%s6246_s1 + $0x2e0] ss:$16 sps:$4 sm:$0xff]   ;;  %v3988_v17 = vld [vmem:[%s6246_s1 + $0x2e8] ss:$16 sps:$4 sm:$0xff]  }
 0x19b   :  { %2541 = vmatpush1.bf16.msra.mxu0 %v3983_v16  ;;  %2756 = vmatpush1.bf16.msra.mxu1 %v3984_v15  ;;  %v3989_v16 = vld [vmem:[%s6246_s1 + $0x304] ss:$16 sps:$4 sm:$0xff]   ;;  %v3990_v15 = vld [vmem:[%s6246_s1 + $0x30c] ss:$16 sps:$4 sm:$0xff]  }
 0x19c   :  { %2542 = vmatprep.subr.bf16.mxu0 %v3985_v9  ;;  %2757 = vmatprep.subr.bf16.mxu1 %v3986_v18  ;;  %v3991_v9 = vld [vmem:[%s6246_s1 + $0x300] ss:$16 sps:$4 sm:$0xff]   ;;  %v3992_v18 = vld [vmem:[%s6246_s1 + $0x308] ss:$16 sps:$4 sm:$0xff]  }
 0x19f   :  { %2543 = vmatpush1.bf16.msra.mxu0 %v3987_v13  ;;  %2758 = vmatpush1.bf16.msra.mxu1 %v3988_v17  ;;  %v3993_v13 = vld [vmem:[%s6246_s1 + $0x324] ss:$16 sps:$4 sm:$0xff]   ;;  %v3994_v17 = vld [vmem:[%s6246_s1 + $0x32c] ss:$16 sps:$4 sm:$0xff]  }
 0x1a0   :  { %2544 = vmatprep.subr.bf16.mxu0 %v3989_v16  ;;  %2759 = vmatprep.subr.bf16.mxu1 %v3990_v15  ;;  %v3995_v16 = vld [vmem:[%s6246_s1 + $0x320] ss:$16 sps:$4 sm:$0xff]   ;;  %v3996_v15 = vld [vmem:[%s6246_s1 + $0x328] ss:$16 sps:$4 sm:$0xff]  }
 0x1a3   :  { %2545 = vmatpush1.bf16.msra.mxu0 %v3991_v9  ;;  %2760 = vmatpush1.bf16.msra.mxu1 %v3992_v18  ;;  %v3997_v9 = vld [vmem:[%s6246_s1 + $0x344] ss:$16 sps:$4 sm:$0xff]   ;;  %v3998_v18 = vld [vmem:[%s6246_s1 + $0x34c] ss:$16 sps:$4 sm:$0xff]  }
 0x1a4   :  { %2546 = vmatprep.subr.bf16.mxu0 %v3993_v13  ;;  %2761 = vmatprep.subr.bf16.mxu1 %v3994_v17  ;;  %v3999_v13 = vld [vmem:[%s6246_s1 + $0x340] ss:$16 sps:$4 sm:$0xff]   ;;  %v4000_v17 = vld [vmem:[%s6246_s1 + $0x348] ss:$16 sps:$4 sm:$0xff]  }
 0x1a7   :  { %2547 = vmatpush1.bf16.msra.mxu0 %v3995_v16  ;;  %2762 = vmatpush1.bf16.msra.mxu1 %v3996_v15  ;;  %v4001_v16 = vld [vmem:[%s6246_s1 + $0x364] ss:$16 sps:$4 sm:$0xff]   ;;  %v4002_v15 = vld [vmem:[%s6246_s1 + $0x36c] ss:$16 sps:$4 sm:$0xff]  }
 0x1a8   :  { %2548 = vmatprep.subr.bf16.mxu0 %v3997_v9  ;;  %2763 = vmatprep.subr.bf16.mxu1 %v3998_v18  ;;  %v4003_v9 = vld [vmem:[%s6246_s1 + $0x360] ss:$16 sps:$4 sm:$0xff]   ;;  %v4004_v18 = vld [vmem:[%s6246_s1 + $0x368] ss:$16 sps:$4 sm:$0xff]  }
 0x1ab   :  { %2549 = vmatpush1.bf16.msra.mxu0 %v3999_v13  ;;  %2764 = vmatpush1.bf16.msra.mxu1 %v4000_v17  ;;  %v4005_v13 = vld [vmem:[%s6246_s1 + $0x384] ss:$16 sps:$4 sm:$0xff]   ;;  %v4006_v17 = vld [vmem:[%s6246_s1 + $0x38c] ss:$16 sps:$4 sm:$0xff]  }
 0x1ac   :  { %2550 = vmatprep.subr.bf16.mxu0 %v4001_v16  ;;  %2765 = vmatprep.subr.bf16.mxu1 %v4002_v15  ;;  %v4007_v16 = vld [vmem:[%s6246_s1 + $0x380] ss:$16 sps:$4 sm:$0xff]   ;;  %v4008_v15 = vld [vmem:[%s6246_s1 + $0x388] ss:$16 sps:$4 sm:$0xff]  }
 0x1af   :  { %2551 = vmatpush1.bf16.msra.mxu0 %v4003_v9  ;;  %2766 = vmatpush1.bf16.msra.mxu1 %v4004_v18  ;;  %v4009_v9 = vld [vmem:[%s6246_s1 + $0x3a4] ss:$16 sps:$4 sm:$0xff]   ;;  %v4010_v18 = vld [vmem:[%s6246_s1 + $0x3ac] ss:$16 sps:$4 sm:$0xff]  }
 0x1b0   :  { %2552 = vmatprep.subr.bf16.mxu0 %v4005_v13  ;;  %2767 = vmatprep.subr.bf16.mxu1 %v4006_v17  ;;  %v4011_v13 = vld [vmem:[%s6246_s1 + $0x3a0] ss:$16 sps:$4 sm:$0xff]   ;;  %v4012_v17 = vld [vmem:[%s6246_s1 + $0x3a8] ss:$16 sps:$4 sm:$0xff]  }
 0x1b3   :  { %2553 = vmatpush1.bf16.msra.mxu0 %v4007_v16  ;;  %2768 = vmatpush1.bf16.msra.mxu1 %v4008_v15  ;;  %v4013_v16 = vld [vmem:[%s6246_s1 + $0x3c4] ss:$16 sps:$4 sm:$0xff]   ;;  %v4014_v15 = vld [vmem:[%s6246_s1 + $0x3cc] ss:$16 sps:$4 sm:$0xff]  }
 0x1b4   :  { %2554 = vmatprep.subr.bf16.mxu0 %v4009_v9  ;;  %2769 = vmatprep.subr.bf16.mxu1 %v4010_v18  ;;  %v4015_v9 = vld [vmem:[%s6246_s1 + $0x3c0] ss:$16 sps:$4 sm:$0xff]   ;;  %v4016_v18 = vld [vmem:[%s6246_s1 + $0x3c8] ss:$16 sps:$4 sm:$0xff]  }
 0x1b7   :  { %2555 = vmatpush1.bf16.msra.mxu0 %v4011_v13  ;;  %2770 = vmatpush1.bf16.msra.mxu1 %v4012_v17  ;;  %v4017_v13 = vld [vmem:[%s6246_s1 + $0x3e4] ss:$16 sps:$4 sm:$0xff]   ;;  %v4018_v17 = vld [vmem:[%s6246_s1 + $0x3ec] ss:$16 sps:$4 sm:$0xff]  }
 0x1b8   :  { %2556 = vmatprep.subr.bf16.mxu0 %v4013_v16  ;;  %2771 = vmatprep.subr.bf16.mxu1 %v4014_v15  ;;  %v3881_v16 = vld [vmem:[%s6247_s0 + $0x58] ss:$40 sps:$4 sm:$0xff]  }
 0x1b9   :  { %v4019_v15 = vld [vmem:[%s6246_s1 + $0x3e0] ss:$16 sps:$4 sm:$0xff]  }
 0x1bb   :  { %2557 = vmatpush1.bf16.msra.mxu0 %v4015_v9  ;;  %2772 = vmatpush1.bf16.msra.mxu1 %v4016_v18  ;;  %v4020_v9 = vld [vmem:[%s6246_s1 + $0x3e8] ss:$16 sps:$4 sm:$0xff]   ;;  %v4021_v18 = vld [vmem:[%s6246_s1 + $0x404] ss:$16 sps:$4 sm:$0xff]  }
 0x1bc   :  { %2558 = vmatprep.subr.bf16.mxu0 %v4017_v13  ;;  %2773 = vmatprep.subr.bf16.mxu1 %v4018_v17  ;;  %v4022_v13 = vld [vmem:[%s6246_s1 + $0x40c] ss:$16 sps:$4 sm:$0xff]  }
 0x1bd   :  { %v3886_v17 = vld [vmem:[%s6247_s0 + $0x64] ss:$40 sps:$4 sm:$0xff]  }
 0x1bf   :  { %2559 = vmatpush1.bf16.msra.mxu0 %v4019_v15  ;;  %2774 = vmatpush1.bf16.msra.mxu1 %v4020_v9  ;;  %v4023_v15 = vld [vmem:[%s6246_s1 + $0x400] ss:$16 sps:$4 sm:$0xff]   ;;  %v4024_v9 = vld [vmem:[%s6246_s1 + $0x408] ss:$16 sps:$4 sm:$0xff]  }
 0x1c0   :  { %2571 = vmatprep.subr.bf16.mxu0 %v4021_v18  ;;  %2786 = vmatprep.subr.bf16.mxu1 %v4022_v13  ;;  %v4025_v18 = vld [vmem:[%s6246_s1 + $0x424] ss:$16 sps:$4 sm:$0xff]   ;;  %v4026_v13 = vld [vmem:[%s6246_s1 + $0x42c] ss:$16 sps:$4 sm:$0xff]  }
 0x1c2   :  { %2561 = vmatmul.mubr.bf16.vlgmr.msra.gmra.mrb[4].mxu0 %v3881_v16  ;;  %2776 = vmatmul.mubr.bf16.vlgmr.msra.gmra.mrb[4].mxu1 %v3881_v16  ;;  %v4027_v16 = vld [vmem:[%s6246_s1 + $0x420] ss:$16 sps:$4 sm:$0xff]  }
 0x1c3   :  { %2572 = vmatpush1.bf16.msra.mxu0 %v4023_v15  ;;  %2787 = vmatpush1.bf16.msra.mxu1 %v4024_v9  ;;  %v4028_v15 = vld [vmem:[%s6246_s1 + $0x428] ss:$16 sps:$4 sm:$0xff]   ;;  %v4029_v9 = vld [vmem:[%s6246_s1 + $0x444] ss:$16 sps:$4 sm:$0xff]  }
 0x1c4   :  { %2573 = vmatprep.subr.bf16.mxu0 %v4025_v18  ;;  %2788 = vmatprep.subr.bf16.mxu1 %v4026_v13  ;;  %v4030_v18 = vld [vmem:[%s6246_s1 + $0x44c] ss:$16 sps:$4 sm:$0xff]   ;;  %v4032_v13 = vld [vmem:[%s6246_s1 + $0x448] ss:$16 sps:$4 sm:$0xff]  }
 0x1c5   :  { %2603 = vmatprep.mubr.bf16.mxu0 %v3886_v17  ;;  %2818 = vmatprep.mubr.bf16.mxu1 %v3886_v17  ;;  %v4031_v17 = vld [vmem:[%s6246_s1 + $0x440] ss:$16 sps:$4 sm:$0xff]  }
 0x1c7   :  { %2574 = vmatpush1.bf16.msra.mxu0 %v4027_v16  ;;  %2789 = vmatpush1.bf16.msra.mxu1 %v4028_v15  ;;  %v4033_v16 = vld [vmem:[%s6246_s1 + $0x464] ss:$16 sps:$4 sm:$0xff]   ;;  %v4034_v15 = vld [vmem:[%s6246_s1 + $0x46c] ss:$16 sps:$4 sm:$0xff]  }
 0x1c8   :  { %2575 = vmatprep.subr.bf16.mxu0 %v4029_v9  ;;  %2790 = vmatprep.subr.bf16.mxu1 %v4030_v18  ;;  %v4035_v9 = vld [vmem:[%s6246_s1 + $0x460] ss:$16 sps:$4 sm:$0xff]   ;;  %v4036_v18 = vld [vmem:[%s6246_s1 + $0x468] ss:$16 sps:$4 sm:$0xff]  }
 0x1cb   :  { %2576 = vmatpush1.bf16.msra.mxu0 %v4031_v17  ;;  %2791 = vmatpush1.bf16.msra.mxu1 %v4032_v13  ;;  %v4037_v17 = vld [vmem:[%s6246_s1 + $0x484] ss:$16 sps:$4 sm:$0xff]   ;;  %v4038_v13 = vld [vmem:[%s6246_s1 + $0x48c] ss:$16 sps:$4 sm:$0xff]  }
 0x1cc   :  { %2577 = vmatprep.subr.bf16.mxu0 %v4033_v16  ;;  %2792 = vmatprep.subr.bf16.mxu1 %v4034_v15  ;;  %v4039_v16 = vld [vmem:[%s6246_s1 + $0x480] ss:$16 sps:$4 sm:$0xff]   ;;  %v4040_v15 = vld [vmem:[%s6246_s1 + $0x488] ss:$16 sps:$4 sm:$0xff]  }
 0x1cf   :  { %2578 = vmatpush1.bf16.msra.mxu0 %v4035_v9  ;;  %2793 = vmatpush1.bf16.msra.mxu1 %v4036_v18  ;;  %v4041_v9 = vld [vmem:[%s6246_s1 + $0x4a4] ss:$16 sps:$4 sm:$0xff]   ;;  %v4042_v18 = vld [vmem:[%s6246_s1 + $0x4ac] ss:$16 sps:$4 sm:$0xff]  }
 0x1d0   :  { %2579 = vmatprep.subr.bf16.mxu0 %v4037_v17  ;;  %2794 = vmatprep.subr.bf16.mxu1 %v4038_v13  ;;  %v4043_v17 = vld [vmem:[%s6246_s1 + $0x4a0] ss:$16 sps:$4 sm:$0xff]   ;;  %v4044_v13 = vld [vmem:[%s6246_s1 + $0x4a8] ss:$16 sps:$4 sm:$0xff]  }
 0x1d3   :  { %2580 = vmatpush1.bf16.msra.mxu0 %v4039_v16  ;;  %2795 = vmatpush1.bf16.msra.mxu1 %v4040_v15  ;;  %v4045_v16 = vld [vmem:[%s6246_s1 + $0x4c4] ss:$16 sps:$4 sm:$0xff]   ;;  %v4046_v15 = vld [vmem:[%s6246_s1 + $0x4cc] ss:$16 sps:$4 sm:$0xff]  }
 0x1d4   :  { %2581 = vmatprep.subr.bf16.mxu0 %v4041_v9  ;;  %2796 = vmatprep.subr.bf16.mxu1 %v4042_v18  ;;  %v4047_v9 = vld [vmem:[%s6246_s1 + $0x4c0] ss:$16 sps:$4 sm:$0xff]   ;;  %v4048_v18 = vld [vmem:[%s6246_s1 + $0x4c8] ss:$16 sps:$4 sm:$0xff]  }
 0x1d7   :  { %2582 = vmatpush1.bf16.msra.mxu0 %v4043_v17  ;;  %2797 = vmatpush1.bf16.msra.mxu1 %v4044_v13  ;;  %v4049_v17 = vld [vmem:[%s6246_s1 + $0x4e4] ss:$16 sps:$4 sm:$0xff]   ;;  %v4050_v13 = vld [vmem:[%s6246_s1 + $0x4ec] ss:$16 sps:$4 sm:$0xff]  }
 0x1d8   :  { %2583 = vmatprep.subr.bf16.mxu0 %v4045_v16  ;;  %2798 = vmatprep.subr.bf16.mxu1 %v4046_v15  ;;  %v4051_v16 = vld [vmem:[%s6246_s1 + $0x4e0] ss:$16 sps:$4 sm:$0xff]   ;;  %v4052_v15 = vld [vmem:[%s6246_s1 + $0x4e8] ss:$16 sps:$4 sm:$0xff]  }
 0x1db   :  { %2584 = vmatpush1.bf16.msra.mxu0 %v4047_v9  ;;  %2799 = vmatpush1.bf16.msra.mxu1 %v4048_v18  ;;  %v4053_v9 = vld [vmem:[%s6246_s1 + $0x504] ss:$16 sps:$4 sm:$0xff]   ;;  %v4054_v18 = vld [vmem:[%s6246_s1 + $0x50c] ss:$16 sps:$4 sm:$0xff]  }
 0x1dc   :  { %2585 = vmatprep.subr.bf16.mxu0 %v4049_v17  ;;  %2800 = vmatprep.subr.bf16.mxu1 %v4050_v13  ;;  %v4055_v17 = vld [vmem:[%s6246_s1 + $0x500] ss:$16 sps:$4 sm:$0xff]   ;;  %v4056_v13 = vld [vmem:[%s6246_s1 + $0x508] ss:$16 sps:$4 sm:$0xff]  }
 0x1df   :  { %2586 = vmatpush1.bf16.msra.mxu0 %v4051_v16  ;;  %2801 = vmatpush1.bf16.msra.mxu1 %v4052_v15  ;;  %v4057_v16 = vld [vmem:[%s6246_s1 + $0x524] ss:$16 sps:$4 sm:$0xff]   ;;  %v4058_v15 = vld [vmem:[%s6246_s1 + $0x52c] ss:$16 sps:$4 sm:$0xff]  }
 0x1e0   :  { %2587 = vmatprep.subr.bf16.mxu0 %v4053_v9  ;;  %2802 = vmatprep.subr.bf16.mxu1 %v4054_v18  ;;  %v4059_v9 = vld [vmem:[%s6246_s1 + $0x520] ss:$16 sps:$4 sm:$0xff]   ;;  %v4060_v18 = vld [vmem:[%s6246_s1 + $0x528] ss:$16 sps:$4 sm:$0xff]  }
 0x1e3   :  { %2588 = vmatpush1.bf16.msra.mxu0 %v4055_v17  ;;  %2803 = vmatpush1.bf16.msra.mxu1 %v4056_v13  ;;  %v4061_v17 = vld [vmem:[%s6246_s1 + $0x544] ss:$16 sps:$4 sm:$0xff]   ;;  %v4062_v13 = vld [vmem:[%s6246_s1 + $0x54c] ss:$16 sps:$4 sm:$0xff]  }
 0x1e4   :  { %2589 = vmatprep.subr.bf16.mxu0 %v4057_v16  ;;  %2804 = vmatprep.subr.bf16.mxu1 %v4058_v15  ;;  %v4063_v16 = vld [vmem:[%s6246_s1 + $0x540] ss:$16 sps:$4 sm:$0xff]   ;;  %v4064_v15 = vld [vmem:[%s6246_s1 + $0x548] ss:$16 sps:$4 sm:$0xff]  }
 0x1e7   :  { %2590 = vmatpush1.bf16.msra.mxu0 %v4059_v9  ;;  %2805 = vmatpush1.bf16.msra.mxu1 %v4060_v18  ;;  %v4065_v9 = vld [vmem:[%s6246_s1 + $0x564] ss:$16 sps:$4 sm:$0xff]   ;;  %v4066_v18 = vld [vmem:[%s6246_s1 + $0x56c] ss:$16 sps:$4 sm:$0xff]  }
 0x1e8   :  { %2591 = vmatprep.subr.bf16.mxu0 %v4061_v17  ;;  %2806 = vmatprep.subr.bf16.mxu1 %v4062_v13  ;;  %v4067_v17 = vld [vmem:[%s6246_s1 + $0x560] ss:$16 sps:$4 sm:$0xff]   ;;  %v4068_v13 = vld [vmem:[%s6246_s1 + $0x568] ss:$16 sps:$4 sm:$0xff]  }
 0x1eb   :  { %2592 = vmatpush1.bf16.msra.mxu0 %v4063_v16  ;;  %2807 = vmatpush1.bf16.msra.mxu1 %v4064_v15  ;;  %v4069_v16 = vld [vmem:[%s6246_s1 + $0x584] ss:$16 sps:$4 sm:$0xff]   ;;  %v4070_v15 = vld [vmem:[%s6246_s1 + $0x58c] ss:$16 sps:$4 sm:$0xff]  }
 0x1ec   :  { %2593 = vmatprep.subr.bf16.mxu0 %v4065_v9  ;;  %2808 = vmatprep.subr.bf16.mxu1 %v4066_v18  ;;  %v4071_v9 = vld [vmem:[%s6246_s1 + $0x580] ss:$16 sps:$4 sm:$0xff]   ;;  %v4072_v18 = vld [vmem:[%s6246_s1 + $0x588] ss:$16 sps:$4 sm:$0xff]  }
 0x1ef   :  { %2594 = vmatpush1.bf16.msra.mxu0 %v4067_v17  ;;  %2809 = vmatpush1.bf16.msra.mxu1 %v4068_v13  ;;  %v4073_v17 = vld [vmem:[%s6246_s1 + $0x5a4] ss:$16 sps:$4 sm:$0xff]   ;;  %v4074_v13 = vld [vmem:[%s6246_s1 + $0x5ac] ss:$16 sps:$4 sm:$0xff]  }
 0x1f0   :  { %2595 = vmatprep.subr.bf16.mxu0 %v4069_v16  ;;  %2810 = vmatprep.subr.bf16.mxu1 %v4070_v15  ;;  %v4075_v16 = vld [vmem:[%s6246_s1 + $0x5a0] ss:$16 sps:$4 sm:$0xff]   ;;  %v4076_v15 = vld [vmem:[%s6246_s1 + $0x5a8] ss:$16 sps:$4 sm:$0xff]  }
 0x1f3   :  { %2596 = vmatpush1.bf16.msra.mxu0 %v4071_v9  ;;  %2811 = vmatpush1.bf16.msra.mxu1 %v4072_v18  ;;  %v4077_v9 = vld [vmem:[%s6246_s1 + $0x5c4] ss:$16 sps:$4 sm:$0xff]   ;;  %v4078_v18 = vld [vmem:[%s6246_s1 + $0x5cc] ss:$16 sps:$4 sm:$0xff]  }
 0x1f4   :  { %2597 = vmatprep.subr.bf16.mxu0 %v4073_v17  ;;  %2812 = vmatprep.subr.bf16.mxu1 %v4074_v13  ;;  %v4079_v17 = vld [vmem:[%s6246_s1 + $0x5c0] ss:$16 sps:$4 sm:$0xff]   ;;  %v4080_v13 = vld [vmem:[%s6246_s1 + $0x5c8] ss:$16 sps:$4 sm:$0xff]  }
 0x1f7   :  { %2598 = vmatpush1.bf16.msra.mxu0 %v4075_v16  ;;  %2813 = vmatpush1.bf16.msra.mxu1 %v4076_v15  ;;  %v4081_v16 = vld [vmem:[%s6246_s1 + $0x5e4] ss:$16 sps:$4 sm:$0xff]   ;;  %v4082_v15 = vld [vmem:[%s6246_s1 + $0x5ec] ss:$16 sps:$4 sm:$0xff]  }
 0x1f8   :  { %2599 = vmatprep.subr.bf16.mxu0 %v4077_v9  ;;  %2814 = vmatprep.subr.bf16.mxu1 %v4078_v18  ;;  %v3884_v9 = vld [vmem:[%s6247_s0 + $0x60] ss:$40 sps:$4 sm:$0xff]  }
 0x1f9   :  { %v4083_v18 = vld [vmem:[%s6246_s1 + $0x5e0] ss:$16 sps:$4 sm:$0xff]  }
 0x1fb   :  { %2600 = vmatpush1.bf16.msra.mxu0 %v4079_v17  ;;  %2815 = vmatpush1.bf16.msra.mxu1 %v4080_v13  ;;  %v4084_v17 = vld [vmem:[%s6246_s1 + $0x5e8] ss:$16 sps:$4 sm:$0xff]   ;;  %v4085_v13 = vld [vmem:[%s6246_s1 + $0x604] ss:$16 sps:$4 sm:$0xff]  }
 0x1fc   :  { %2601 = vmatprep.subr.bf16.mxu0 %v4081_v16  ;;  %2816 = vmatprep.subr.bf16.mxu1 %v4082_v15  ;;  %v4086_v16 = vld [vmem:[%s6246_s1 + $0x60c] ss:$16 sps:$4 sm:$0xff]  }
 0x1fd   :  { %v3889_v15 = vld [vmem:[%s6247_s0 + $0x6c] ss:$40 sps:$4 sm:$0xff]  }
 0x1ff   :  { %2602 = vmatpush1.bf16.msra.mxu0 %v4083_v18  ;;  %2817 = vmatpush1.bf16.msra.mxu1 %v4084_v17  ;;  %v4087_v18 = vld [vmem:[%s6246_s1 + $0x600] ss:$16 sps:$4 sm:$0xff]   ;;  %v4088_v17 = vld [vmem:[%s6246_s1 + $0x608] ss:$16 sps:$4 sm:$0xff]  }
 0x200   :  { %2614 = vmatprep.subr.bf16.mxu0 %v4085_v13  ;;  %2829 = vmatprep.subr.bf16.mxu1 %v4086_v16  ;;  %v4089_v13 = vld [vmem:[%s6246_s1 + $0x624] ss:$16 sps:$4 sm:$0xff]   ;;  %v4090_v16 = vld [vmem:[%s6246_s1 + $0x62c] ss:$16 sps:$4 sm:$0xff]  }
 0x202   :  { %2604 = vmatmul.mubr.bf16.vlgmr.msra.gmra.mrb[4].mxu0 %v3884_v9  ;;  %2819 = vmatmul.mubr.bf16.vlgmr.msra.gmra.mrb[4].mxu1 %v3884_v9  ;;  %v4091_v9 = vld [vmem:[%s6246_s1 + $0x620] ss:$16 sps:$4 sm:$0xff]  }
 0x203   :  { %2615 = vmatpush1.bf16.msra.mxu0 %v4087_v18  ;;  %2830 = vmatpush1.bf16.msra.mxu1 %v4088_v17  ;;  %v4092_v18 = vld [vmem:[%s6246_s1 + $0x628] ss:$16 sps:$4 sm:$0xff]   ;;  %v4093_v17 = vld [vmem:[%s6246_s1 + $0x644] ss:$16 sps:$4 sm:$0xff]  }
 0x204   :  { %2616 = vmatprep.subr.bf16.mxu0 %v4089_v13  ;;  %2831 = vmatprep.subr.bf16.mxu1 %v4090_v16  ;;  %v4094_v13 = vld [vmem:[%s6246_s1 + $0x64c] ss:$16 sps:$4 sm:$0xff]   ;;  %v4096_v16 = vld [vmem:[%s6246_s1 + $0x648] ss:$16 sps:$4 sm:$0xff]  }
 0x205   :  { %2646 = vmatprep.mubr.bf16.mxu0 %v3889_v15  ;;  %2861 = vmatprep.mubr.bf16.mxu1 %v3889_v15  ;;  %v4095_v15 = vld [vmem:[%s6246_s1 + $0x640] ss:$16 sps:$4 sm:$0xff]  }
 0x207   :  { %2617 = vmatpush1.bf16.msra.mxu0 %v4091_v9  ;;  %2832 = vmatpush1.bf16.msra.mxu1 %v4092_v18  ;;  %v6414_v18 = vld [vmem:[#allocation50_spill] sm:$0xff] }
 0x208   :  { %2618 = vmatprep.subr.bf16.mxu0 %v4093_v17  ;;  %2833 = vmatprep.subr.bf16.mxu1 %v4094_v13  ;;  %v6415_v17 = vld [vmem:[#allocation51_spill] sm:$0xff]  ;;  %v6416_v13 = vld [vmem:[#allocation52_spill] sm:$0xff] }
 0x20b   :  { %2619 = vmatpush1.bf16.msra.mxu0 %v4095_v15  ;;  %2834 = vmatpush1.bf16.msra.mxu1 %v4096_v16  ;;  %v6417_v15 = vld [vmem:[#allocation53_spill] sm:$0xff]  ;;  %v6418_v16 = vld [vmem:[#allocation54_spill] sm:$0xff] }
 0x20c   :  { %2620 = vmatprep.subr.bf16.mxu0 %v4753_v19  ;;  %2835 = vmatprep.subr.bf16.mxu1 %v4758_v20 }
 0x20f   :  { %2621 = vmatpush1.bf16.msra.mxu0 %v4763_v21  ;;  %2836 = vmatpush1.bf16.msra.mxu1 %v4768_v22 }
 0x210   :  { %2622 = vmatprep.subr.bf16.mxu0 %v4773_v23  ;;  %2837 = vmatprep.subr.bf16.mxu1 %v4780_v24 }
 0x213   :  { %2623 = vmatpush1.bf16.msra.mxu0 %v4785_v25  ;;  %2838 = vmatpush1.bf16.msra.mxu1 %v4790_v26  ;;  %v3887_v26 = vld [vmem:[%s6247_s0 + $0x68] ss:$40 sps:$4 sm:$0xff]  }
 0x214   :  { %2624 = vmatprep.subr.bf16.mxu0 %v4797_v27  ;;  %2839 = vmatprep.subr.bf16.mxu1 %v4804_v28  ;;  %v3892_v27 = vld [vmem:[%s6247_s0 + $0x74] ss:$40 sps:$4 sm:$0xff]   ;;  %v6366_v28 = vld [vmem:[#allocation2_spill] sm:$0xff] }
 0x215   :  { %v6098_v9 = vpop.f32.mrb[0].mxu0  ;;  %v6100_v19 = vpop.f32.mrb[0].mxu1 }
 0x216   :  { %v6102_v20 = vpop.f32.mrb[1].mxu0  ;;  %v6104_v21 = vpop.f32.mrb[1].mxu1 }
 0x217   :  { %v6106_v22 = vpop.f32.mrb[2].mxu0  ;;  %v6108_v23 = vpop.f32.mrb[2].mxu1  ;;  %2625 = vmatpush1.bf16.msra.mxu0 %v4809_v29  ;;  %2840 = vmatpush1.bf16.msra.mxu1 %v4814_v30  ;;  %v6367_v29 = vld [vmem:[#allocation3_spill] sm:$0xff]  ;;  %v6368_v30 = vld [vmem:[#allocation4_spill] sm:$0xff] }
 0x218   :  { %v6112_v24 = vpop.f32.mrb[3].mxu0  ;;  %v6114_v25 = vpop.f32.mrb[3].mxu1  ;;  %2626 = vmatprep.subr.bf16.mxu0 %v4821_v31  ;;  %2841 = vmatprep.subr.bf16.mxu1 %v4828_v32  ;;  %v6369_v31 = vld [vmem:[#allocation5_spill] sm:$0xff]  ;;  %v6370_v32 = vld [vmem:[#allocation6_spill] sm:$0xff] }
 0x21b   :  { %2627 = vmatpush1.bf16.msra.mxu0 %v4833_v33  ;;  %2842 = vmatpush1.bf16.msra.mxu1 %v4838_v34  ;;  %v6371_v33 = vld [vmem:[#allocation7_spill] sm:$0xff]  ;;  %v6372_v34 = vld [vmem:[#allocation8_spill] sm:$0xff] }
 0x21c   :  { %2628 = vmatprep.subr.bf16.mxu0 %v4845_v35  ;;  %2843 = vmatprep.subr.bf16.mxu1 %v4852_v36  ;;  %v6373_v35 = vld [vmem:[#allocation9_spill] sm:$0xff]  ;;  %v6374_v36 = vld [vmem:[#allocation10_spill] sm:$0xff] }
 0x21f   :  { %2629 = vmatpush1.bf16.msra.mxu0 %v4857_v37  ;;  %2844 = vmatpush1.bf16.msra.mxu1 %v4862_v38  ;;  %v6375_v37 = vld [vmem:[#allocation11_spill] sm:$0xff]  ;;  %v6376_v38 = vld [vmem:[#allocation12_spill] sm:$0xff] }
 0x220   :  { %2630 = vmatprep.subr.bf16.mxu0 %v4867_v39  ;;  %2845 = vmatprep.subr.bf16.mxu1 %v4872_v40  ;;  %v6377_v39 = vld [vmem:[#allocation13_spill] sm:$0xff]  ;;  %v6378_v40 = vld [vmem:[#allocation14_spill] sm:$0xff] }
 0x223   :  { %2631 = vmatpush1.bf16.msra.mxu0 %v4883_v41  ;;  %2846 = vmatpush1.bf16.msra.mxu1 %v4888_v42  ;;  %v6379_v41 = vld [vmem:[#allocation15_spill] sm:$0xff]  ;;  %v6380_v42 = vld [vmem:[#allocation16_spill] sm:$0xff] }
 0x224   :  { %2632 = vmatprep.subr.bf16.mxu0 %v4895_v43  ;;  %2847 = vmatprep.subr.bf16.mxu1 %v4900_v44  ;;  %v6381_v43 = vld [vmem:[#allocation17_spill] sm:$0xff]  ;;  %v6382_v44 = vld [vmem:[#allocation18_spill] sm:$0xff] }
 0x227   :  { %2633 = vmatpush1.bf16.msra.mxu0 %v4907_v45  ;;  %2848 = vmatpush1.bf16.msra.mxu1 %v4912_v46  ;;  %v6383_v45 = vld [vmem:[#allocation19_spill] sm:$0xff]  ;;  %v6384_v46 = vld [vmem:[#allocation20_spill] sm:$0xff] }
 0x228   :  { %2634 = vmatprep.subr.bf16.mxu0 %v4919_v47  ;;  %2849 = vmatprep.subr.bf16.mxu1 %v4924_v48  ;;  %v6385_v47 = vld [vmem:[#allocation21_spill] sm:$0xff]  ;;  %v6386_v48 = vld [vmem:[#allocation22_spill] sm:$0xff] }
 0x22b   :  { %2635 = vmatpush1.bf16.msra.mxu0 %v4931_v49  ;;  %2850 = vmatpush1.bf16.msra.mxu1 %v4936_v50  ;;  %v6387_v49 = vld [vmem:[#allocation23_spill] sm:$0xff]  ;;  %v6388_v50 = vld [vmem:[#allocation24_spill] sm:$0xff] }
 0x22c   :  { %2636 = vmatprep.subr.bf16.mxu0 %v4943_v51  ;;  %2851 = vmatprep.subr.bf16.mxu1 %v4948_v52  ;;  %v6389_v51 = vld [vmem:[#allocation25_spill] sm:$0xff]  ;;  %v6390_v52 = vld [vmem:[#allocation26_spill] sm:$0xff] }
 0x22f   :  { %2637 = vmatpush1.bf16.msra.mxu0 %v4955_v53  ;;  %2852 = vmatpush1.bf16.msra.mxu1 %v4960_v54  ;;  %v6391_v53 = vld [vmem:[#allocation27_spill] sm:$0xff]  ;;  %v6392_v54 = vld [vmem:[#allocation28_spill] sm:$0xff] }
 0x230   :  { %2638 = vmatprep.subr.bf16.mxu0 %v4967_v55  ;;  %2853 = vmatprep.subr.bf16.mxu1 %v4972_v56  ;;  %v6393_v55 = vld [vmem:[#allocation29_spill] sm:$0xff]  ;;  %v6394_v56 = vld [vmem:[#allocation30_spill] sm:$0xff] }
 0x233   :  { %2639 = vmatpush1.bf16.msra.mxu0 %v4979_v57  ;;  %2854 = vmatpush1.bf16.msra.mxu1 %v4984_v58  ;;  %v6395_v57 = vld [vmem:[#allocation31_spill] sm:$0xff]  ;;  %v6396_v58 = vld [vmem:[#allocation32_spill] sm:$0xff] }
 0x234   :  { %2640 = vmatprep.subr.bf16.mxu0 %v4991_v59  ;;  %2855 = vmatprep.subr.bf16.mxu1 %v4996_v60  ;;  %v6397_v59 = vld [vmem:[#allocation33_spill] sm:$0xff]  ;;  %v6398_v60 = vld [vmem:[#allocation34_spill] sm:$0xff] }
 0x237   :  { %2641 = vmatpush1.bf16.msra.mxu0 %v5003_v61  ;;  %2856 = vmatpush1.bf16.msra.mxu1 %v5008_v62  ;;  %v6399_v61 = vld [vmem:[#allocation35_spill] sm:$0xff]  ;;  %v6400_v62 = vld [vmem:[#allocation36_spill] sm:$0xff] }
 0x238   :  { %2642 = vmatprep.subr.bf16.mxu0 %v5015_v63  ;;  %2857 = vmatprep.subr.bf16.mxu1 %v5020_v0  ;;  %v6401_v63 = vld [vmem:[#allocation37_spill] sm:$0xff]  ;;  %v6402_v0 = vld [vmem:[#allocation38_spill] sm:$0xff] }
 0x23b   :  { %2643 = vmatpush1.bf16.msra.mxu0 %v5027_v1  ;;  %2858 = vmatpush1.bf16.msra.mxu1 %v5032_v2  ;;  %v6403_v1 = vld [vmem:[#allocation39_spill] sm:$0xff]  ;;  %v6404_v2 = vld [vmem:[#allocation40_spill] sm:$0xff] }
 0x23c   :  { %2644 = vmatprep.subr.bf16.mxu0 %v5039_v3  ;;  %2859 = vmatprep.subr.bf16.mxu1 %v5044_v4  ;;  %v6405_v3 = vld [vmem:[#allocation41_spill] sm:$0xff]  ;;  %v6406_v4 = vld [vmem:[#allocation42_spill] sm:$0xff] }
 0x23f   :  { %2645 = vmatpush1.bf16.msra.mxu0 %v5051_v5  ;;  %2860 = vmatpush1.bf16.msra.mxu1 %v5056_v6  ;;  %v6407_v5 = vld [vmem:[#allocation43_spill] sm:$0xff]  ;;  %v6408_v6 = vld [vmem:[#allocation44_spill] sm:$0xff] }
 0x240   :  { %2657 = vmatprep.subr.bf16.mxu0 %v5063_v7  ;;  %2872 = vmatprep.subr.bf16.mxu1 %v5068_v8  ;;  %v6409_v7 = vld [vmem:[#allocation45_spill] sm:$0xff]  ;;  %v6410_v8 = vld [vmem:[#allocation46_spill] sm:$0xff] }
 0x242   :  { %2647 = vmatmul.mubr.bf16.vlgmr.msra.gmra.mrb[4].mxu0 %v3887_v26  ;;  %2862 = vmatmul.mubr.bf16.vlgmr.msra.gmra.mrb[4].mxu1 %v3887_v26  ;;  %v6419_v26 = vld [vmem:[#allocation55_spill] sm:$0xff] }
 0x243   :  { %2658 = vmatpush1.bf16.msra.mxu0 %v5078_v10  ;;  %2873 = vmatpush1.bf16.msra.mxu1 %v5083_v11  ;;  %v6411_v10 = vld [vmem:[#allocation47_spill] sm:$0xff]  ;;  %v6412_v11 = vld [vmem:[#allocation48_spill] sm:$0xff] }
 0x244   :  { %2659 = vmatprep.subr.bf16.mxu0 %v5090_v12  ;;  %2874 = vmatprep.subr.bf16.mxu1 %v6366_v28  ;;  %v6413_v12 = vld [vmem:[#allocation49_spill] sm:$0xff] }
 0x245   :  { %2689 = vmatprep.mubr.bf16.mxu0 %v3892_v27  ;;  %2904 = vmatprep.mubr.bf16.mxu1 %v3892_v27  ;;  %v6420_v27 = vld [vmem:[#allocation56_spill] sm:$0xff]  ;;  %v6421_v28 = vld [vmem:[#allocation57_spill] sm:$0xff] }
 0x247   :  { %2660 = vmatpush1.bf16.msra.mxu0 %v6367_v29  ;;  %2875 = vmatpush1.bf16.msra.mxu1 %v6368_v30  ;;  %v3890_v29 = vld [vmem:[%s6247_s0 + $0x70] ss:$40 sps:$4 sm:$0xff]   ;;  %v6422_v30 = vld [vmem:[#allocation58_spill] sm:$0xff] }
 0x248   :  { %2661 = vmatprep.subr.bf16.mxu0 %v6369_v31  ;;  %2876 = vmatprep.subr.bf16.mxu1 %v6370_v32  ;;  %v6423_v31 = vld [vmem:[#allocation59_spill] sm:$0xff]  ;;  %v2929_v32 = vlaneseq }
 0x24b   :  { %2662 = vmatpush1.bf16.msra.mxu0 %v6371_v33  ;;  %2877 = vmatpush1.bf16.msra.mxu1 %v6372_v34  ;;  %v2930_v33 = vshrl.u32 %v2929_v32, 7 }
 0x24c   :  { %2663 = vmatprep.subr.bf16.mxu0 %v6373_v35  ;;  %2878 = vmatprep.subr.bf16.mxu1 %v6374_v36  ;;  %v2927_v35 = vld [vmem:[%s6248_s2] sm:$0x3] }
 0x24d   :  { %v2931_v34 = vsub.s32 0, %v2930_v33 }
 0x24f   :  { %2664 = vmatpush1.bf16.msra.mxu0 %v6375_v37  ;;  %2879 = vmatpush1.bf16.msra.mxu1 %v6376_v38 }
 0x250   :  { %2665 = vmatprep.subr.bf16.mxu0 %v6377_v39  ;;  %2880 = vmatprep.subr.bf16.mxu1 %v6378_v40  ;;  %v2932_v40 = vrot.slane %v2927_v35, %v2931_v34 }
 0x253   :  { %2666 = vmatpush1.bf16.msra.mxu0 %v6379_v41  ;;  %2881 = vmatpush1.bf16.msra.mxu1 %v6380_v42 }
 0x254   :  { %2667 = vmatprep.subr.bf16.mxu0 %v6381_v43  ;;  %2882 = vmatprep.subr.bf16.mxu1 %v6382_v44 }
 0x257   :  { %2668 = vmatpush1.bf16.msra.mxu0 %v6383_v45  ;;  %2883 = vmatpush1.bf16.msra.mxu1 %v6384_v46 }
 0x258   :  { %2669 = vmatprep.subr.bf16.mxu0 %v6385_v47  ;;  %2884 = vmatprep.subr.bf16.mxu1 %v6386_v48 }
 0x25b   :  { %2670 = vmatpush1.bf16.msra.mxu0 %v6387_v49  ;;  %2885 = vmatpush1.bf16.msra.mxu1 %v6388_v50 }
 0x25c   :  { %2671 = vmatprep.subr.bf16.mxu0 %v6389_v51  ;;  %2886 = vmatprep.subr.bf16.mxu1 %v6390_v52 }
 0x25f   :  { %2672 = vmatpush1.bf16.msra.mxu0 %v6391_v53  ;;  %2887 = vmatpush1.bf16.msra.mxu1 %v6392_v54 }
 0x260   :  { %2673 = vmatprep.subr.bf16.mxu0 %v6393_v55  ;;  %2888 = vmatprep.subr.bf16.mxu1 %v6394_v56 }
 0x263   :  { %2674 = vmatpush1.bf16.msra.mxu0 %v6395_v57  ;;  %2889 = vmatpush1.bf16.msra.mxu1 %v6396_v58 }
 0x264   :  { %2675 = vmatprep.subr.bf16.mxu0 %v6397_v59  ;;  %2890 = vmatprep.subr.bf16.mxu1 %v6398_v60 }
 0x267   :  { %2676 = vmatpush1.bf16.msra.mxu0 %v6399_v61  ;;  %2891 = vmatpush1.bf16.msra.mxu1 %v6400_v62 }
 0x268   :  { %2677 = vmatprep.subr.bf16.mxu0 %v6401_v63  ;;  %2892 = vmatprep.subr.bf16.mxu1 %v6402_v0 }
 0x26b   :  { %2678 = vmatpush1.bf16.msra.mxu0 %v6403_v1  ;;  %2893 = vmatpush1.bf16.msra.mxu1 %v6404_v2 }
 0x26c   :  { %2679 = vmatprep.subr.bf16.mxu0 %v6405_v3  ;;  %2894 = vmatprep.subr.bf16.mxu1 %v6406_v4 }
 0x26f   :  { %2680 = vmatpush1.bf16.msra.mxu0 %v6407_v5  ;;  %2895 = vmatpush1.bf16.msra.mxu1 %v6408_v6 }
 0x270   :  { %2681 = vmatprep.subr.bf16.mxu0 %v6409_v7  ;;  %2896 = vmatprep.subr.bf16.mxu1 %v6410_v8 }
 0x273   :  { %2682 = vmatpush1.bf16.msra.mxu0 %v6411_v10  ;;  %2897 = vmatpush1.bf16.msra.mxu1 %v6412_v11 }
 0x274   :  { %2683 = vmatprep.subr.bf16.mxu0 %v6413_v12  ;;  %2898 = vmatprep.subr.bf16.mxu1 %v6414_v18 }
 0x277   :  { %2684 = vmatpush1.bf16.msra.mxu0 %v6415_v17  ;;  %2899 = vmatpush1.bf16.msra.mxu1 %v6416_v13 }
 0x278   :  { %2685 = vmatprep.subr.bf16.mxu0 %v6417_v15  ;;  %2900 = vmatprep.subr.bf16.mxu1 %v6418_v16 }
 0x27b   :  { %2686 = vmatpush1.bf16.msra.mxu0 %v6419_v26  ;;  %2901 = vmatpush1.bf16.msra.mxu1 %v6420_v27 }
 0x27c   :  { %2687 = vmatprep.subr.bf16.mxu0 %v5429_v14  ;;  %2902 = vmatprep.subr.bf16.mxu1 %v6421_v28  ;;  %v2935_v14 = vsub.s32 1, %v2930_v33 }
 0x27e   :  { %v2936_v45 = vrot.slane %v2927_v35, %v2935_v14 }
 0x27f   :  { %2688 = vmatpush1.bf16.msra.mxu0 %v6422_v30  ;;  %2903 = vmatpush1.bf16.msra.mxu1 %v6423_v31 }
 0x282   :  { %2690 = vmatmul.mubr.bf16.vlgmr.msra.gmra.mrb[4].mxu0 %v3890_v29  ;;  %2905 = vmatmul.mubr.bf16.vlgmr.msra.gmra.mrb[4].mxu1 %v3890_v29 }
 0x355   :  { %v2691_v36 = vpop.f32.mrb[4].mxu0  ;;  %v2906_v37 = vpop.f32.mrb[4].mxu1 }
 0x356   :  { %v2915_v38 = vmax.f32 %v6098_v9, %v2691_v36  ;;  %v2917_v39 = vmax.f32 %v6100_v19, %v2906_v37  ;;  %v2693_v41 = vpop.f32.mrb[5].mxu0  ;;  %v2908_v42 = vpop.f32.mrb[5].mxu1 }
 0x357   :  { %v2916_v43 = vmax.f32 %v6102_v20, %v2693_v41  ;;  %v2918_v44 = vmax.f32 %v6104_v21, %v2908_v42  ;;  %v2695_v46 = vpop.f32.mrb[6].mxu0  ;;  %v2910_v47 = vpop.f32.mrb[6].mxu1 }
 0x358   :  { %v2923_v48 = vmax.f32 %v2915_v38, %v2917_v39  ;;  %v2919_v49 = vmax.f32 %v6106_v22, %v2695_v46  ;;  %v2921_v50 = vmax.f32 %v6108_v23, %v2910_v47  ;;  %v2697_v51 = vpop.f32.mrb[7].mxu0  ;;  %v2912_v52 = vpop.f32.mrb[7].mxu1 }
 0x359   :  { %v2924_v9 = vmax.f32 %v2916_v43, %v2918_v44  ;;  %v2920_v19 = vmax.f32 %v6112_v24, %v2697_v51  ;;  %v2922_v53 = vmax.f32 %v6114_v25, %v2912_v52 }
 0x35a   :  { %v2939_v54 = vadd.f32 %v2932_v40, %v2923_v48  ;;  %v2925_v55 = vmax.f32 %v2919_v49, %v2921_v50 }
 0x35b   :  { %v2940_v20 = vadd.f32 %v2936_v45, %v2924_v9  ;;  %v2926_v56 = vmax.f32 %v2920_v19, %v2922_v53 }
 0x35c   :  { %v2943_v21 = vmax.f32 %v2939_v54, 0.0  ;;  %v2941_v57 = vadd.f32 %v2932_v40, %v2925_v55 }
 0x35d   :  { %v2944_v58 = vmax.f32 %v2940_v20, 0.0  ;;  %v2942_v59 = vadd.f32 %v2936_v45, %v2926_v56 }
 0x35e   :  { %v2945_v60 = vmax.f32 %v2941_v57, 0.0 }
 0x35f   :  { %v3317_v61 = vpack.c.bf16 %v2944_v58, %v2943_v21  ;;  %v2946_v22 = vmax.f32 %v2942_v59, 0.0 }
 0x361   :  { %2959 = vst [vmem:[%s6249_s3] sm:$0xff] %v3317_v61  ;;  %v3318_v23 = vpack.c.bf16 %v2946_v22, %v2945_v60 }
 0x363   :  { %2960 = vst [vmem:[%s6249_s3 + $0x8] sm:$0xff] %v3318_v23 }

</bundles_post_ra>
